<compile_context>
chip_gen: v7x
topology: tpu7x:2x2x1
jax: 0.10.0
libtpu: 0.0.40
codegen_flags: <defaults>
</compile_context>

<pallas_src>
import functools

import jax
import jax.numpy as jnp
from jax import lax
from jax.experimental import pallas as pl
from jax.experimental.pallas import tpu as pltpu


def mha_kernel(q_ref, k_ref, mq_ref, mk_ref,
               wq_ref, wk_ref, wv_ref, wu_ref, bu_ref,
               o_ref, *, emb_dim, heads, batch_tile, pack_lanes):
    e = emb_dim
    bt = batch_tile
    t_q = q_ref.shape[1] // bt
    t_k = k_ref.shape[1] // bt
    scale = float(e) ** -0.5

    # bf16 operands for every MXU pass; accumulate in f32.
    q2 = q_ref[0].astype(jnp.bfloat16)          # (bt*t_q, e)   batch folded into M
    k2 = k_ref[0].astype(jnp.bfloat16)          # (bt*t_k, e)

    wq = wq_ref[...]                            # (e, heads*e)  bf16 (cast in wrapper)
    wk = wk_ref[...]
    wv = wv_ref[...]
    wu = wu_ref[...]                            # (heads*e, e)  bf16
    bu = bu_ref[...].astype(jnp.float32)        # (1, e)        f32 (added post-matmul)

    # Full-width projections: one lane-dense MXU pass each (K=e -> N=heads*e).
    # The softmax scale (e**-0.5) is folded into Q only.
    qp = (jnp.dot(q2, wq, preferred_element_type=jnp.float32)
          * scale).astype(jnp.bfloat16)         # (bt*t_q, heads*e)
    kp = jnp.dot(k2, wk, preferred_element_type=jnp.float32).astype(jnp.bfloat16)
    vp = jnp.dot(k2, wv, preferred_element_type=jnp.float32).astype(jnp.bfloat16)

    mq_col = mq_ref[0]                          # (bt*t_q, 1)  f32
    mk_row = mk_ref[0]                          # (1, bt*t_k)  f32 (pre-transposed)

    # dot_general dim numbers: contract dim1 of both (A @ B^T, transpose in MXU)
    dims_nt = (((1,), (1,)), ((), ()))
    # plain A @ B
    dims_nn = (((1,), (0,)), ((), ()))

    # Hoisted loop invariants.
    bias_tq = jnp.zeros((t_q, e), jnp.float32) + bu                 # (t_q, e)
    wu_heads = [wu[h * e:(h + 1) * e, :] for h in range(heads)]     # sublane slices

    for bb in range(bt):
        qs, ks = bb * t_q, bb * t_k
        qb = qp[qs:qs + t_q]                    # (t_q, heads*e) bf16
        kb = kp[ks:ks + t_k]                    # (t_k, heads*e) bf16
        vb = vp[ks:ks + t_k]                    # (t_k, heads*e) bf16

        # Head-invariant mask, computed once per batch element (no transpose).
        neg = jnp.logical_or(mq_col[qs:qs + t_q] == 0.0,
                             mk_row[:, ks:ks + t_k] == 0.0)         # (t_q, t_k)

        # Fused unify-heads: out @ Wu == sum_h O_h @ Wu[h*e:(h+1)*e, :].
        # Accumulate in f32; no per-head output list, no lane concatenation.
        acc = bias_tq
        for hh in range(heads):
            s = hh * e
            qh = qb[:, s:s + e]                 # (t_q, e) bf16
            kh = kb[:, s:s + e]                 # (t_k, e) bf16
            vh = vb[:, s:s + e]                 # (t_k, e) bf16

            dot = lax.dot_general(qh, kh, dims_nt,
                                  preferred_element_type=jnp.float32)   # (t_q, t_k)
            dot = jnp.where(neg, -1e9, dot)
            dot = dot - jnp.max(dot, axis=-1, keepdims=True)
            p = jnp.exp(dot)
            # reciprocal on the EUP slot instead of a VALU divide
            p = p * pl.reciprocal(jnp.sum(p, axis=-1, keepdims=True), approx=True)

            oh = lax.dot_general(p.astype(jnp.bfloat16), vh, dims_nn,
                                 preferred_element_type=jnp.float32)    # (t_q, e)
            acc = acc + lax.dot_general(oh.astype(jnp.bfloat16), wu_heads[hh],
                                        dims_nn,
                                        preferred_element_type=jnp.float32)

        if pack_lanes:
            # Lane-packed output: (t_q, bt*e), batch element bb owns lanes
            # [bb*e, (bb+1)*e).  Used when e < 128.
            o_ref[0, :, bb * e:(bb + 1) * e] = acc.astype(o_ref.dtype)
        else:
            # e is a multiple of 128: store (t_q, e) directly, no packing.
            o_ref[bb] = acc.astype(o_ref.dtype)


def _pick_num_blocks(b, t_q, t_k, e, heads):
    """Number of grid steps: 1 on single-TC chips (v5e/v6e), >=2 on v7x,
    always bounded by a conservative per-step VMEM budget."""
    try:
        kind = jax.devices()[0].device_kind.lower()
    except Exception:  # pragma: no cover
        kind = ""
    two_tc = "7" in kind                       # v7x has 2 TensorCores per chip
    base_nb = 2 if (two_tc and b >= 2) else 1
    vmem_budget = 24 << 20                     # fits every generation's scoped default

    def step_bytes(bt):
        rows_q, rows_k = bt * t_q, bt * t_k
        io = 2 * 4 * (rows_q + rows_k) * e             # double-buffered q/k blocks (f32)
        proj = 2 * (rows_q + 2 * rows_k) * heads * e   # qp/kp/vp bf16 intermediates
        out = 2 * 4 * rows_q * e                       # double-buffered output block
        return io + proj + out

    for d in range(1, b + 1):
        if b % d == 0 and d >= base_nb and step_bytes(b // d) <= vmem_budget:
            return d
    return b


def mha_forward(q, k, mask_q, mask_k, params, *, emb_dim, heads, num_blocks=None):
    b, t_q, e = q.shape
    _, t_k, _ = k.shape
    assert e == emb_dim

    if mask_q is None:
        mask_q = jnp.ones((b, t_q, 1), jnp.float32)
    if mask_k is None:
        mask_k = jnp.ones((b, t_k, 1), jnp.float32)

    nb = _pick_num_blocks(b, t_q, t_k, e, heads) if num_blocks is None else num_blocks
    assert b % nb == 0
    bt = b // nb

    # Wrapper-side layout plumbing (cheap XLA reshapes): fold the batch tile
    # into the row (M) dimension of each block; mask_k is pre-transposed so the
    # kernel never transposes it.
    q_r = q.reshape(nb, bt * t_q, e)
    k_r = k.reshape(nb, bt * t_k, e)
    mq_r = mask_q.astype(jnp.float32).reshape(nb, bt * t_q, 1)
    mk_r = mask_k.astype(jnp.float32).reshape(nb, 1, bt * t_k)

    # bf16 weights: halves weight DMA bytes and VMEM footprint; bias stays f32.
    wq = params["wq"].astype(jnp.bfloat16)
    wk = params["wk"].astype(jnp.bfloat16)
    wv = params["wv"].astype(jnp.bfloat16)
    wu = params["wu"].astype(jnp.bfloat16)
    bu = params["bu"].astype(jnp.float32)

    # Single-buffered, grid-invariant weights: untiled, fully resident in VMEM.
    weight_specs = [pl.BlockSpec(memory_space=pltpu.MemorySpace.VMEM)
                    for _ in range(5)]

    pack_lanes = (e % 128 != 0)
    if pack_lanes:
        out_shape = jax.ShapeDtypeStruct((nb, t_q, bt * e), jnp.float32)
        out_spec = pl.BlockSpec((1, t_q, bt * e), lambda i: (i, 0, 0))
    else:
        out_shape = jax.ShapeDtypeStruct((b, t_q, e), jnp.float32)
        out_spec = pl.BlockSpec((bt, t_q, e), lambda i: (i, 0, 0))

    grid_spec = pltpu.PrefetchScalarGridSpec(
        num_scalar_prefetch=0,
        grid=(nb,),
        in_specs=[
            pl.BlockSpec((1, bt * t_q, e), lambda i: (i, 0, 0)),
            pl.BlockSpec((1, bt * t_k, e), lambda i: (i, 0, 0)),
            pl.BlockSpec((1, bt * t_q, 1), lambda i: (i, 0, 0)),
            pl.BlockSpec((1, 1, bt * t_k), lambda i: (i, 0, 0)),
        ] + weight_specs,
        out_specs=out_spec,
    )

    kernel = functools.partial(mha_kernel, emb_dim=e, heads=heads,
                               batch_tile=bt, pack_lanes=pack_lanes)
    out = pl.pallas_call(
        kernel,
        out_shape=out_shape,
        grid_spec=grid_spec,
        compiler_params=pltpu.CompilerParams(dimension_semantics=("parallel",)),
    )(q_r, k_r, mq_r, mk_r, wq, wk, wv, wu, bu)

    if pack_lanes:
        # Unpack the lane-packed batch tile back to (b, t_q, e).
        out = out.reshape(nb, t_q, bt, e).transpose(0, 2, 1, 3).reshape(b, t_q, e)
    return out


def ref_forward(q, k, mq, mk, p, *, emb_dim, heads):
    """Pure-JAX (f32) mirror of the PyTorch MultiHeadAttention forward."""
    b, t_q, e = q.shape
    _, t_k, _ = k.shape
    h = heads
    scale = float(e) ** -0.25

    queries = (q @ p["wq"]).reshape(b, t_q, h, e) * scale
    keys = (k @ p["wk"]).reshape(b, t_k, h, e) * scale
    values = (k @ p["wv"]).reshape(b, t_k, h, e)

    dot = jnp.einsum("bqhe,bkhe->bhqk", queries, keys)
    mask = mq[:, None, :, :] * jnp.swapaxes(mk, 1, 2)[:, None, :, :]   # (b,1,t_q,t_k)
    dot = jnp.where(mask == 0, -1e9, dot)
    dot = jax.nn.softmax(dot, axis=-1)

    out = jnp.einsum("bhqk,bkhe->bqhe", dot, values).reshape(b, t_q, h * e)
    return out @ p["wu"] + p["bu"]


if __name__ == "__main__":
    emb_dim, heads = 32, 4
    b, t_q, t_k = 8, 8, 8

    key = jax.random.PRNGKey(0)
    ks = jax.random.split(key, 8)

    def rnd(k_, shape, s=0.05):
        return jax.random.normal(k_, shape, jnp.float32) * s

    params = {
        "wq": rnd(ks[0], (emb_dim, heads * emb_dim)),
        "wk": rnd(ks[1], (emb_dim, heads * emb_dim)),
        "wv": rnd(ks[2], (emb_dim, heads * emb_dim)),
        "wu": rnd(ks[3], (heads * emb_dim, emb_dim)),
        "bu": rnd(ks[4], (1, emb_dim)),
    }

    q = jax.random.normal(ks[5], (b, t_q, emb_dim), jnp.float32)
    k = jax.random.normal(ks[6], (b, t_k, emb_dim), jnp.float32)
    # masks: all queries valid, the last 2 key positions masked out
    mask_q = jnp.ones((b, t_q, 1), jnp.float32)
    mask_k = jnp.ones((b, t_k, 1), jnp.float32).at[:, -2:, :].set(0.0)

    out = mha_forward(q, k, mask_q, mask_k, params, emb_dim=emb_dim, heads=heads)
    out = jax.block_until_ready(out)

    ref = ref_forward(q, k, mask_q, mask_k, params, emb_dim=emb_dim, heads=heads)
    assert out.shape == (b, t_q, emb_dim)
    # bf16 MXU operands + approx reciprocal vs a pure-f32 reference: use bf16-level tolerance.
    assert jnp.allclose(out, ref, rtol=2e-2, atol=2e-2), "mismatch vs JAX reference"
    print("KERNEL_OK")
</pallas_src>

<mosaic_0001>
module attributes {stable_mosaic.version = 11 : i64} {
  func.func @mha_kernel(%arg0: i32, %arg1: memref<1x64x32xf32, #tpu.memory_space<vmem>>, %arg2: memref<1x64x32xf32, #tpu.memory_space<vmem>>, %arg3: memref<1x64x1xf32, #tpu.memory_space<vmem>>, %arg4: memref<1x1x64xf32, #tpu.memory_space<vmem>>, %arg5: memref<32x128xbf16, #tpu.memory_space<vmem>>, %arg6: memref<32x128xbf16, #tpu.memory_space<vmem>>, %arg7: memref<32x128xbf16, #tpu.memory_space<vmem>>, %arg8: memref<128x32xbf16, #tpu.memory_space<vmem>>, %arg9: memref<1x32xf32, #tpu.memory_space<vmem>>, %arg10: memref<1x8x256xf32, #tpu.memory_space<vmem>>) attributes {dimension_semantics = [#tpu.dimension_semantics<parallel>], iteration_bounds = array<i64: 1>, scalar_prefetch = 0 : i64, scratch_operands = 0 : i64, tpu.core_type = #tpu.core_type<tc>, window_params = [{transform_indices = @transform_0, window_bounds = array<i64: 1, 64, 32>}, {transform_indices = @transform_1, window_bounds = array<i64: 1, 64, 32>}, {transform_indices = @transform_2, window_bounds = array<i64: 1, 64, 1>}, {transform_indices = @transform_3, window_bounds = array<i64: 1, 1, 64>}, {pipeline_mode = #tpu.pipeline_mode<synchronous>, transform_indices = @transform_4, window_bounds = array<i64: 32, 128>}, {pipeline_mode = #tpu.pipeline_mode<synchronous>, transform_indices = @transform_5, window_bounds = array<i64: 32, 128>}, {pipeline_mode = #tpu.pipeline_mode<synchronous>, transform_indices = @transform_6, window_bounds = array<i64: 32, 128>}, {pipeline_mode = #tpu.pipeline_mode<synchronous>, transform_indices = @transform_7, window_bounds = array<i64: 128, 32>}, {pipeline_mode = #tpu.pipeline_mode<synchronous>, transform_indices = @transform_8, window_bounds = array<i64: 1, 32>}, {transform_indices = @transform_9, window_bounds = array<i64: 1, 8, 256>}]} {
    %c0 = arith.constant 0 : index
    %c0_0 = arith.constant 0 : index
    %c0_1 = arith.constant 0 : index
    %0 = vector.load %arg1[%c0, %c0_0, %c0_1] : memref<1x64x32xf32, #tpu.memory_space<vmem>>, vector<1x64x32xf32>
    %1 = vector.shape_cast %0 : vector<1x64x32xf32> to vector<64x32xf32>
    %2 = arith.truncf %1 : vector<64x32xf32> to vector<64x32xbf16>
    %c0_2 = arith.constant 0 : index
    %c0_3 = arith.constant 0 : index
    %c0_4 = arith.constant 0 : index
    %3 = vector.load %arg2[%c0_2, %c0_3, %c0_4] : memref<1x64x32xf32, #tpu.memory_space<vmem>>, vector<1x64x32xf32>
    %4 = vector.shape_cast %3 : vector<1x64x32xf32> to vector<64x32xf32>
    %5 = arith.truncf %4 : vector<64x32xf32> to vector<64x32xbf16>
    %c0_5 = arith.constant 0 : index
    %c0_6 = arith.constant 0 : index
    %6 = vector.load %arg5[%c0_5, %c0_6] : memref<32x128xbf16, #tpu.memory_space<vmem>>, vector<32x128xbf16>
    %c0_7 = arith.constant 0 : index
    %c0_8 = arith.constant 0 : index
    %7 = vector.load %arg6[%c0_7, %c0_8] : memref<32x128xbf16, #tpu.memory_space<vmem>>, vector<32x128xbf16>
    %c0_9 = arith.constant 0 : index
    %c0_10 = arith.constant 0 : index
    %8 = vector.load %arg7[%c0_9, %c0_10] : memref<32x128xbf16, #tpu.memory_space<vmem>>, vector<32x128xbf16>
    %c0_11 = arith.constant 0 : index
    %c0_12 = arith.constant 0 : index
    %9 = vector.load %arg8[%c0_11, %c0_12] : memref<128x32xbf16, #tpu.memory_space<vmem>>, vector<128x32xbf16>
    %c0_13 = arith.constant 0 : index
    %c0_14 = arith.constant 0 : index
    %10 = vector.load %arg9[%c0_13, %c0_14] : memref<1x32xf32, #tpu.memory_space<vmem>>, vector<1x32xf32>
    %cst = arith.constant dense<0.000000e+00> : vector<64x128xf32>
    %11 = tpu.matmul %2, %6, %cst {dimension_numbers = #tpu.dot_dimension_numbers<[1], [0], [0], [1], [0, 0, 1, 1], [], []>} : vector<64x32xbf16>, vector<32x128xbf16>, vector<64x128xf32> -> vector<64x128xf32>
    %cst_15 = arith.constant 0.176776692 : f32
    %12 = vector.broadcast %cst_15 : f32 to vector<64x128xf32>
    %13 = arith.mulf %11, %12 : vector<64x128xf32>
    %14 = arith.truncf %13 : vector<64x128xf32> to vector<64x128xbf16>
    %cst_16 = arith.constant dense<0.000000e+00> : vector<64x128xf32>
    %15 = tpu.matmul %5, %7, %cst_16 {dimension_numbers = #tpu.dot_dimension_numbers<[1], [0], [0], [1], [0, 0, 1, 1], [], []>} : vector<64x32xbf16>, vector<32x128xbf16>, vector<64x128xf32> -> vector<64x128xf32>
    %16 = arith.truncf %15 : vector<64x128xf32> to vector<64x128xbf16>
    %cst_17 = arith.constant dense<0.000000e+00> : vector<64x128xf32>
    %17 = tpu.matmul %5, %8, %cst_17 {dimension_numbers = #tpu.dot_dimension_numbers<[1], [0], [0], [1], [0, 0, 1, 1], [], []>} : vector<64x32xbf16>, vector<32x128xbf16>, vector<64x128xf32> -> vector<64x128xf32>
    %18 = arith.truncf %17 : vector<64x128xf32> to vector<64x128xbf16>
    %c0_18 = arith.constant 0 : index
    %c0_19 = arith.constant 0 : index
    %c0_20 = arith.constant 0 : index
    %19 = vector.load %arg3[%c0_18, %c0_19, %c0_20] : memref<1x64x1xf32, #tpu.memory_space<vmem>>, vector<1x64x1xf32>
    %20 = vector.shape_cast %19 : vector<1x64x1xf32> to vector<64x1xf32>
    %c0_21 = arith.constant 0 : index
    %c0_22 = arith.constant 0 : index
    %c0_23 = arith.constant 0 : index
    %21 = vector.load %arg4[%c0_21, %c0_22, %c0_23] : memref<1x1x64xf32, #tpu.memory_space<vmem>>, vector<1x1x64xf32>
    %22 = vector.shape_cast %21 : vector<1x1x64xf32> to vector<1x64xf32>
    %cst_24 = arith.constant 0.000000e+00 : f32
    %23 = vector.broadcast %cst_24 : f32 to vector<8x32xf32>
    %24 = vector.broadcast %10 : vector<1x32xf32> to vector<8x32xf32>
    %25 = arith.addf %23, %24 : vector<8x32xf32>
    %26 = vector.extract_strided_slice %9 {offsets = [0, 0], sizes = [32, 32], strides = [1, 1]} : vector<128x32xbf16> to vector<32x32xbf16>
    %27 = vector.extract_strided_slice %9 {offsets = [32, 0], sizes = [32, 32], strides = [1, 1]} : vector<128x32xbf16> to vector<32x32xbf16>
    %28 = vector.extract_strided_slice %9 {offsets = [64, 0], sizes = [32, 32], strides = [1, 1]} : vector<128x32xbf16> to vector<32x32xbf16>
    %29 = vector.extract_strided_slice %9 {offsets = [96, 0], sizes = [32, 32], strides = [1, 1]} : vector<128x32xbf16> to vector<32x32xbf16>
    %30 = vector.extract_strided_slice %14 {offsets = [0, 0], sizes = [8, 128], strides = [1, 1]} : vector<64x128xbf16> to vector<8x128xbf16>
    %31 = vector.extract_strided_slice %16 {offsets = [0, 0], sizes = [8, 128], strides = [1, 1]} : vector<64x128xbf16> to vector<8x128xbf16>
    %32 = vector.extract_strided_slice %18 {offsets = [0, 0], sizes = [8, 128], strides = [1, 1]} : vector<64x128xbf16> to vector<8x128xbf16>
    %33 = vector.extract_strided_slice %20 {offsets = [0, 0], sizes = [8, 1], strides = [1, 1]} : vector<64x1xf32> to vector<8x1xf32>
    %cst_25 = arith.constant 0.000000e+00 : f32
    %34 = vector.broadcast %cst_25 : f32 to vector<8x1xf32>
    %35 = arith.cmpf oeq, %33, %34 : vector<8x1xf32>
    %36 = vector.extract_strided_slice %22 {offsets = [0, 0], sizes = [1, 8], strides = [1, 1]} : vector<1x64xf32> to vector<1x8xf32>
    %cst_26 = arith.constant 0.000000e+00 : f32
    %37 = vector.broadcast %cst_26 : f32 to vector<1x8xf32>
    %38 = arith.cmpf oeq, %36, %37 : vector<1x8xf32>
    %39 = vector.broadcast %35 : vector<8x1xi1> to vector<8x8xi1>
    %40 = vector.broadcast %38 : vector<1x8xi1> to vector<8x8xi1>
    %41 = arith.ori %39, %40 : vector<8x8xi1>
    %42 = vector.extract_strided_slice %30 {offsets = [0, 0], sizes = [8, 32], strides = [1, 1]} : vector<8x128xbf16> to vector<8x32xbf16>
    %43 = vector.extract_strided_slice %31 {offsets = [0, 0], sizes = [8, 32], strides = [1, 1]} : vector<8x128xbf16> to vector<8x32xbf16>
    %44 = vector.extract_strided_slice %32 {offsets = [0, 0], sizes = [8, 32], strides = [1, 1]} : vector<8x128xbf16> to vector<8x32xbf16>
    %cst_27 = arith.constant dense<0.000000e+00> : vector<8x8xf32>
    %45 = tpu.matmul %42, %43, %cst_27 {dimension_numbers = #tpu.dot_dimension_numbers<[1], [1], [0], [0], [0, 0, 1, 0], [], []>} : vector<8x32xbf16>, vector<8x32xbf16>, vector<8x8xf32> -> vector<8x8xf32>
    %cst_28 = arith.constant -1.000000e+09 : f32
    %46 = vector.broadcast %cst_28 : f32 to vector<8x8xf32>
    %47 = arith.select %41, %46, %45 : vector<8x8xi1>, vector<8x8xf32>
    %cst_29 = arith.constant dense<0xFF800000> : vector<8xf32>
    %48 = vector.multi_reduction <maximumf>, %47, %cst_29 [1] : vector<8x8xf32> to vector<8xf32>
    %49 = vector.shape_cast %48 : vector<8xf32> to vector<8x1xf32>
    %50 = vector.broadcast %49 : vector<8x1xf32> to vector<8x8xf32>
    %51 = arith.subf %47, %50 : vector<8x8xf32>
    %52 = math.exp %51 : vector<8x8xf32>
    %cst_30 = arith.constant dense<0.000000e+00> : vector<8xf32>
    %53 = vector.multi_reduction <add>, %52, %cst_30 [1] : vector<8x8xf32> to vector<8xf32>
    %54 = vector.shape_cast %53 : vector<8xf32> to vector<8x1xf32>
    %55 = tpu.reciprocal %54 {approx = true} : vector<8x1xf32> -> vector<8x1xf32>
    %56 = vector.broadcast %55 : vector<8x1xf32> to vector<8x8xf32>
    %57 = arith.mulf %52, %56 : vector<8x8xf32>
    %58 = arith.truncf %57 : vector<8x8xf32> to vector<8x8xbf16>
    %cst_31 = arith.constant dense<0.000000e+00> : vector<8x32xf32>
    %59 = tpu.matmul %58, %44, %cst_31 {dimension_numbers = #tpu.dot_dimension_numbers<[1], [0], [0], [1], [0, 0, 1, 1], [], []>} : vector<8x8xbf16>, vector<8x32xbf16>, vector<8x32xf32> -> vector<8x32xf32>
    %60 = arith.truncf %59 : vector<8x32xf32> to vector<8x32xbf16>
    %cst_32 = arith.constant dense<0.000000e+00> : vector<8x32xf32>
    %61 = tpu.matmul %60, %26, %cst_32 {dimension_numbers = #tpu.dot_dimension_numbers<[1], [0], [0], [1], [0, 0, 1, 1], [], []>} : vector<8x32xbf16>, vector<32x32xbf16>, vector<8x32xf32> -> vector<8x32xf32>
    %62 = arith.addf %25, %61 : vector<8x32xf32>
    %63 = vector.extract_strided_slice %30 {offsets = [0, 32], sizes = [8, 32], strides = [1, 1]} : vector<8x128xbf16> to vector<8x32xbf16>
    %64 = vector.extract_strided_slice %31 {offsets = [0, 32], sizes = [8, 32], strides = [1, 1]} : vector<8x128xbf16> to vector<8x32xbf16>
    %65 = vector.extract_strided_slice %32 {offsets = [0, 32], sizes = [8, 32], strides = [1, 1]} : vector<8x128xbf16> to vector<8x32xbf16>
    %cst_33 = arith.constant dense<0.000000e+00> : vector<8x8xf32>
    %66 = tpu.matmul %63, %64, %cst_33 {dimension_numbers = #tpu.dot_dimension_numbers<[1], [1], [0], [0], [0, 0, 1, 0], [], []>} : vector<8x32xbf16>, vector<8x32xbf16>, vector<8x8xf32> -> vector<8x8xf32>
    %cst_34 = arith.constant -1.000000e+09 : f32
    %67 = vector.broadcast %cst_34 : f32 to vector<8x8xf32>
    %68 = arith.select %41, %67, %66 : vector<8x8xi1>, vector<8x8xf32>
    %cst_35 = arith.constant dense<0xFF800000> : vector<8xf32>
    %69 = vector.multi_reduction <maximumf>, %68, %cst_35 [1] : vector<8x8xf32> to vector<8xf32>
    %70 = vector.shape_cast %69 : vector<8xf32> to vector<8x1xf32>
    %71 = vector.broadcast %70 : vector<8x1xf32> to vector<8x8xf32>
    %72 = arith.subf %68, %71 : vector<8x8xf32>
    %73 = math.exp %72 : vector<8x8xf32>
    %cst_36 = arith.constant dense<0.000000e+00> : vector<8xf32>
    %74 = vector.multi_reduction <add>, %73, %cst_36 [1] : vector<8x8xf32> to vector<8xf32>
    %75 = vector.shape_cast %74 : vector<8xf32> to vector<8x1xf32>
    %76 = tpu.reciprocal %75 {approx = true} : vector<8x1xf32> -> vector<8x1xf32>
    %77 = vector.broadcast %76 : vector<8x1xf32> to vector<8x8xf32>
    %78 = arith.mulf %73, %77 : vector<8x8xf32>
    %79 = arith.truncf %78 : vector<8x8xf32> to vector<8x8xbf16>
    %cst_37 = arith.constant dense<0.000000e+00> : vector<8x32xf32>
    %80 = tpu.matmul %79, %65, %cst_37 {dimension_numbers = #tpu.dot_dimension_numbers<[1], [0], [0], [1], [0, 0, 1, 1], [], []>} : vector<8x8xbf16>, vector<8x32xbf16>, vector<8x32xf32> -> vector<8x32xf32>
    %81 = arith.truncf %80 : vector<8x32xf32> to vector<8x32xbf16>
    %cst_38 = arith.constant dense<0.000000e+00> : vector<8x32xf32>
    %82 = tpu.matmul %81, %27, %cst_38 {dimension_numbers = #tpu.dot_dimension_numbers<[1], [0], [0], [1], [0, 0, 1, 1], [], []>} : vector<8x32xbf16>, vector<32x32xbf16>, vector<8x32xf32> -> vector<8x32xf32>
    %83 = arith.addf %62, %82 : vector<8x32xf32>
    %84 = vector.extract_strided_slice %30 {offsets = [0, 64], sizes = [8, 32], strides = [1, 1]} : vector<8x128xbf16> to vector<8x32xbf16>
    %85 = vector.extract_strided_slice %31 {offsets = [0, 64], sizes = [8, 32], strides = [1, 1]} : vector<8x128xbf16> to vector<8x32xbf16>
    %86 = vector.extract_strided_slice %32 {offsets = [0, 64], sizes = [8, 32], strides = [1, 1]} : vector<8x128xbf16> to vector<8x32xbf16>
    %cst_39 = arith.constant dense<0.000000e+00> : vector<8x8xf32>
    %87 = tpu.matmul %84, %85, %cst_39 {dimension_numbers = #tpu.dot_dimension_numbers<[1], [1], [0], [0], [0, 0, 1, 0], [], []>} : vector<8x32xbf16>, vector<8x32xbf16>, vector<8x8xf32> -> vector<8x8xf32>
    %cst_40 = arith.constant -1.000000e+09 : f32
    %88 = vector.broadcast %cst_40 : f32 to vector<8x8xf32>
    %89 = arith.select %41, %88, %87 : vector<8x8xi1>, vector<8x8xf32>
    %cst_41 = arith.constant dense<0xFF800000> : vector<8xf32>
    %90 = vector.multi_reduction <maximumf>, %89, %cst_41 [1] : vector<8x8xf32> to vector<8xf32>
    %91 = vector.shape_cast %90 : vector<8xf32> to vector<8x1xf32>
    %92 = vector.broadcast %91 : vector<8x1xf32> to vector<8x8xf32>
    %93 = arith.subf %89, %92 : vector<8x8xf32>
    %94 = math.exp %93 : vector<8x8xf32>
    %cst_42 = arith.constant dense<0.000000e+00> : vector<8xf32>
    %95 = vector.multi_reduction <add>, %94, %cst_42 [1] : vector<8x8xf32> to vector<8xf32>
    %96 = vector.shape_cast %95 : vector<8xf32> to vector<8x1xf32>
    %97 = tpu.reciprocal %96 {approx = true} : vector<8x1xf32> -> vector<8x1xf32>
    %98 = vector.broadcast %97 : vector<8x1xf32> to vector<8x8xf32>
    %99 = arith.mulf %94, %98 : vector<8x8xf32>
    %100 = arith.truncf %99 : vector<8x8xf32> to vector<8x8xbf16>
    %cst_43 = arith.constant dense<0.000000e+00> : vector<8x32xf32>
    %101 = tpu.matmul %100, %86, %cst_43 {dimension_numbers = #tpu.dot_dimension_numbers<[1], [0], [0], [1], [0, 0, 1, 1], [], []>} : vector<8x8xbf16>, vector<8x32xbf16>, vector<8x32xf32> -> vector<8x32xf32>
    %102 = arith.truncf %101 : vector<8x32xf32> to vector<8x32xbf16>
    %cst_44 = arith.constant dense<0.000000e+00> : vector<8x32xf32>
    %103 = tpu.matmul %102, %28, %cst_44 {dimension_numbers = #tpu.dot_dimension_numbers<[1], [0], [0], [1], [0, 0, 1, 1], [], []>} : vector<8x32xbf16>, vector<32x32xbf16>, vector<8x32xf32> -> vector<8x32xf32>
    %104 = arith.addf %83, %103 : vector<8x32xf32>
    %105 = vector.extract_strided_slice %30 {offsets = [0, 96], sizes = [8, 32], strides = [1, 1]} : vector<8x128xbf16> to vector<8x32xbf16>
    %106 = vector.extract_strided_slice %31 {offsets = [0, 96], sizes = [8, 32], strides = [1, 1]} : vector<8x128xbf16> to vector<8x32xbf16>
    %107 = vector.extract_strided_slice %32 {offsets = [0, 96], sizes = [8, 32], strides = [1, 1]} : vector<8x128xbf16> to vector<8x32xbf16>
    %cst_45 = arith.constant dense<0.000000e+00> : vector<8x8xf32>
    %108 = tpu.matmul %105, %106, %cst_45 {dimension_numbers = #tpu.dot_dimension_numbers<[1], [1], [0], [0], [0, 0, 1, 0], [], []>} : vector<8x32xbf16>, vector<8x32xbf16>, vector<8x8xf32> -> vector<8x8xf32>
    %cst_46 = arith.constant -1.000000e+09 : f32
    %109 = vector.broadcast %cst_46 : f32 to vector<8x8xf32>
    %110 = arith.select %41, %109, %108 : vector<8x8xi1>, vector<8x8xf32>
    %cst_47 = arith.constant dense<0xFF800000> : vector<8xf32>
    %111 = vector.multi_reduction <maximumf>, %110, %cst_47 [1] : vector<8x8xf32> to vector<8xf32>
    %112 = vector.shape_cast %111 : vector<8xf32> to vector<8x1xf32>
    %113 = vector.broadcast %112 : vector<8x1xf32> to vector<8x8xf32>
    %114 = arith.subf %110, %113 : vector<8x8xf32>
    %115 = math.exp %114 : vector<8x8xf32>
    %cst_48 = arith.constant dense<0.000000e+00> : vector<8xf32>
    %116 = vector.multi_reduction <add>, %115, %cst_48 [1] : vector<8x8xf32> to vector<8xf32>
    %117 = vector.shape_cast %116 : vector<8xf32> to vector<8x1xf32>
    %118 = tpu.reciprocal %117 {approx = true} : vector<8x1xf32> -> vector<8x1xf32>
    %119 = vector.broadcast %118 : vector<8x1xf32> to vector<8x8xf32>
    %120 = arith.mulf %115, %119 : vector<8x8xf32>
    %121 = arith.truncf %120 : vector<8x8xf32> to vector<8x8xbf16>
    %cst_49 = arith.constant dense<0.000000e+00> : vector<8x32xf32>
    %122 = tpu.matmul %121, %107, %cst_49 {dimension_numbers = #tpu.dot_dimension_numbers<[1], [0], [0], [1], [0, 0, 1, 1], [], []>} : vector<8x8xbf16>, vector<8x32xbf16>, vector<8x32xf32> -> vector<8x32xf32>
    %123 = arith.truncf %122 : vector<8x32xf32> to vector<8x32xbf16>
    %cst_50 = arith.constant dense<0.000000e+00> : vector<8x32xf32>
    %124 = tpu.matmul %123, %29, %cst_50 {dimension_numbers = #tpu.dot_dimension_numbers<[1], [0], [0], [1], [0, 0, 1, 1], [], []>} : vector<8x32xbf16>, vector<32x32xbf16>, vector<8x32xf32> -> vector<8x32xf32>
    %125 = arith.addf %104, %124 : vector<8x32xf32>
    %c0_51 = arith.constant 0 : index
    %c0_52 = arith.constant 0 : index
    %c0_53 = arith.constant 0 : index
    %126 = vector.load %arg10[%c0_51, %c0_52, %c0_53] : memref<1x8x256xf32, #tpu.memory_space<vmem>>, vector<1x8x32xf32>
    %127 = vector.shape_cast %126 : vector<1x8x32xf32> to vector<8x32xf32>
    %128 = vector.shape_cast %125 : vector<8x32xf32> to vector<1x8x32xf32>
    tpu.vector_store %arg10[%c0_51, %c0_52, %c0_53], %128 {strides = array<i32>} : memref<1x8x256xf32, #tpu.memory_space<vmem>>, vector<1x8x32xf32>,
    %129 = vector.extract_strided_slice %14 {offsets = [8, 0], sizes = [8, 128], strides = [1, 1]} : vector<64x128xbf16> to vector<8x128xbf16>
    %130 = vector.extract_strided_slice %16 {offsets = [8, 0], sizes = [8, 128], strides = [1, 1]} : vector<64x128xbf16> to vector<8x128xbf16>
    %131 = vector.extract_strided_slice %18 {offsets = [8, 0], sizes = [8, 128], strides = [1, 1]} : vector<64x128xbf16> to vector<8x128xbf16>
    %132 = vector.extract_strided_slice %20 {offsets = [8, 0], sizes = [8, 1], strides = [1, 1]} : vector<64x1xf32> to vector<8x1xf32>
    %cst_54 = arith.constant 0.000000e+00 : f32
    %133 = vector.broadcast %cst_54 : f32 to vector<8x1xf32>
    %134 = arith.cmpf oeq, %132, %133 : vector<8x1xf32>
    %135 = vector.extract_strided_slice %22 {offsets = [0, 8], sizes = [1, 8], strides = [1, 1]} : vector<1x64xf32> to vector<1x8xf32>
    %cst_55 = arith.constant 0.000000e+00 : f32
    %136 = vector.broadcast %cst_55 : f32 to vector<1x8xf32>
    %137 = arith.cmpf oeq, %135, %136 : vector<1x8xf32>
    %138 = vector.broadcast %134 : vector<8x1xi1> to vector<8x8xi1>
    %139 = vector.broadcast %137 : vector<1x8xi1> to vector<8x8xi1>
    %140 = arith.ori %138, %139 : vector<8x8xi1>
    %141 = vector.extract_strided_slice %129 {offsets = [0, 0], sizes = [8, 32], strides = [1, 1]} : vector<8x128xbf16> to vector<8x32xbf16>
    %142 = vector.extract_strided_slice %130 {offsets = [0, 0], sizes = [8, 32], strides = [1, 1]} : vector<8x128xbf16> to vector<8x32xbf16>
    %143 = vector.extract_strided_slice %131 {offsets = [0, 0], sizes = [8, 32], strides = [1, 1]} : vector<8x128xbf16> to vector<8x32xbf16>
    %cst_56 = arith.constant dense<0.000000e+00> : vector<8x8xf32>
    %144 = tpu.matmul %141, %142, %cst_56 {dimension_numbers = #tpu.dot_dimension_numbers<[1], [1], [0], [0], [0, 0, 1, 0], [], []>} : vector<8x32xbf16>, vector<8x32xbf16>, vector<8x8xf32> -> vector<8x8xf32>
    %cst_57 = arith.constant -1.000000e+09 : f32
    %145 = vector.broadcast %cst_57 : f32 to vector<8x8xf32>
    %146 = arith.select %140, %145, %144 : vector<8x8xi1>, vector<8x8xf32>
    %cst_58 = arith.constant dense<0xFF800000> : vector<8xf32>
    %147 = vector.multi_reduction <maximumf>, %146, %cst_58 [1] : vector<8x8xf32> to vector<8xf32>
    %148 = vector.shape_cast %147 : vector<8xf32> to vector<8x1xf32>
    %149 = vector.broadcast %148 : vector<8x1xf32> to vector<8x8xf32>
    %150 = arith.subf %146, %149 : vector<8x8xf32>
    %151 = math.exp %150 : vector<8x8xf32>
    %cst_59 = arith.constant dense<0.000000e+00> : vector<8xf32>
    %152 = vector.multi_reduction <add>, %151, %cst_59 [1] : vector<8x8xf32> to vector<8xf32>
    %153 = vector.shape_cast %152 : vector<8xf32> to vector<8x1xf32>
    %154 = tpu.reciprocal %153 {approx = true} : vector<8x1xf32> -> vector<8x1xf32>
    %155 = vector.broadcast %154 : vector<8x1xf32> to vector<8x8xf32>
    %156 = arith.mulf %151, %155 : vector<8x8xf32>
    %157 = arith.truncf %156 : vector<8x8xf32> to vector<8x8xbf16>
    %cst_60 = arith.constant dense<0.000000e+00> : vector<8x32xf32>
    %158 = tpu.matmul %157, %143, %cst_60 {dimension_numbers = #tpu.dot_dimension_numbers<[1], [0], [0], [1], [0, 0, 1, 1], [], []>} : vector<8x8xbf16>, vector<8x32xbf16>, vector<8x32xf32> -> vector<8x32xf32>
    %159 = arith.truncf %158 : vector<8x32xf32> to vector<8x32xbf16>
    %cst_61 = arith.constant dense<0.000000e+00> : vector<8x32xf32>
    %160 = tpu.matmul %159, %26, %cst_61 {dimension_numbers = #tpu.dot_dimension_numbers<[1], [0], [0], [1], [0, 0, 1, 1], [], []>} : vector<8x32xbf16>, vector<32x32xbf16>, vector<8x32xf32> -> vector<8x32xf32>
    %161 = arith.addf %25, %160 : vector<8x32xf32>
    %162 = vector.extract_strided_slice %129 {offsets = [0, 32], sizes = [8, 32], strides = [1, 1]} : vector<8x128xbf16> to vector<8x32xbf16>
    %163 = vector.extract_strided_slice %130 {offsets = [0, 32], sizes = [8, 32], strides = [1, 1]} : vector<8x128xbf16> to vector<8x32xbf16>
    %164 = vector.extract_strided_slice %131 {offsets = [0, 32], sizes = [8, 32], strides = [1, 1]} : vector<8x128xbf16> to vector<8x32xbf16>
    %cst_62 = arith.constant dense<0.000000e+00> : vector<8x8xf32>
    %165 = tpu.matmul %162, %163, %cst_62 {dimension_numbers = #tpu.dot_dimension_numbers<[1], [1], [0], [0], [0, 0, 1, 0], [], []>} : vector<8x32xbf16>, vector<8x32xbf16>, vector<8x8xf32> -> vector<8x8xf32>
    %cst_63 = arith.constant -1.000000e+09 : f32
    %166 = vector.broadcast %cst_63 : f32 to vector<8x8xf32>
    %167 = arith.select %140, %166, %165 : vector<8x8xi1>, vector<8x8xf32>
    %cst_64 = arith.constant dense<0xFF800000> : vector<8xf32>
    %168 = vector.multi_reduction <maximumf>, %167, %cst_64 [1] : vector<8x8xf32> to vector<8xf32>
    %169 = vector.shape_cast %168 : vector<8xf32> to vector<8x1xf32>
    %170 = vector.broadcast %169 : vector<8x1xf32> to vector<8x8xf32>
    %171 = arith.subf %167, %170 : vector<8x8xf32>
    %172 = math.exp %171 : vector<8x8xf32>
    %cst_65 = arith.constant dense<0.000000e+00> : vector<8xf32>
    %173 = vector.multi_reduction <add>, %172, %cst_65 [1] : vector<8x8xf32> to vector<8xf32>
    %174 = vector.shape_cast %173 : vector<8xf32> to vector<8x1xf32>
    %175 = tpu.reciprocal %174 {approx = true} : vector<8x1xf32> -> vector<8x1xf32>
    %176 = vector.broadcast %175 : vector<8x1xf32> to vector<8x8xf32>
    %177 = arith.mulf %172, %176 : vector<8x8xf32>
    %178 = arith.truncf %177 : vector<8x8xf32> to vector<8x8xbf16>
    %cst_66 = arith.constant dense<0.000000e+00> : vector<8x32xf32>
    %179 = tpu.matmul %178, %164, %cst_66 {dimension_numbers = #tpu.dot_dimension_numbers<[1], [0], [0], [1], [0, 0, 1, 1], [], []>} : vector<8x8xbf16>, vector<8x32xbf16>, vector<8x32xf32> -> vector<8x32xf32>
    %180 = arith.truncf %179 : vector<8x32xf32> to vector<8x32xbf16>
    %cst_67 = arith.constant dense<0.000000e+00> : vector<8x32xf32>
    %181 = tpu.matmul %180, %27, %cst_67 {dimension_numbers = #tpu.dot_dimension_numbers<[1], [0], [0], [1], [0, 0, 1, 1], [], []>} : vector<8x32xbf16>, vector<32x32xbf16>, vector<8x32xf32> -> vector<8x32xf32>
    %182 = arith.addf %161, %181 : vector<8x32xf32>
    %183 = vector.extract_strided_slice %129 {offsets = [0, 64], sizes = [8, 32], strides = [1, 1]} : vector<8x128xbf16> to vector<8x32xbf16>
    %184 = vector.extract_strided_slice %130 {offsets = [0, 64], sizes = [8, 32], strides = [1, 1]} : vector<8x128xbf16> to vector<8x32xbf16>
    %185 = vector.extract_strided_slice %131 {offsets = [0, 64], sizes = [8, 32], strides = [1, 1]} : vector<8x128xbf16> to vector<8x32xbf16>
    %cst_68 = arith.constant dense<0.000000e+00> : vector<8x8xf32>
    %186 = tpu.matmul %183, %184, %cst_68 {dimension_numbers = #tpu.dot_dimension_numbers<[1], [1], [0], [0], [0, 0, 1, 0], [], []>} : vector<8x32xbf16>, vector<8x32xbf16>, vector<8x8xf32> -> vector<8x8xf32>
    %cst_69 = arith.constant -1.000000e+09 : f32
    %187 = vector.broadcast %cst_69 : f32 to vector<8x8xf32>
    %188 = arith.select %140, %187, %186 : vector<8x8xi1>, vector<8x8xf32>
    %cst_70 = arith.constant dense<0xFF800000> : vector<8xf32>
    %189 = vector.multi_reduction <maximumf>, %188, %cst_70 [1] : vector<8x8xf32> to vector<8xf32>
    %190 = vector.shape_cast %189 : vector<8xf32> to vector<8x1xf32>
    %191 = vector.broadcast %190 : vector<8x1xf32> to vector<8x8xf32>
    %192 = arith.subf %188, %191 : vector<8x8xf32>
    %193 = math.exp %192 : vector<8x8xf32>
    %cst_71 = arith.constant dense<0.000000e+00> : vector<8xf32>
    %194 = vector.multi_reduction <add>, %193, %cst_71 [1] : vector<8x8xf32> to vector<8xf32>
    %195 = vector.shape_cast %194 : vector<8xf32> to vector<8x1xf32>
    %196 = tpu.reciprocal %195 {approx = true} : vector<8x1xf32> -> vector<8x1xf32>
    %197 = vector.broadcast %196 : vector<8x1xf32> to vector<8x8xf32>
    %198 = arith.mulf %193, %197 : vector<8x8xf32>
    %199 = arith.truncf %198 : vector<8x8xf32> to vector<8x8xbf16>
    %cst_72 = arith.constant dense<0.000000e+00> : vector<8x32xf32>
    %200 = tpu.matmul %199, %185, %cst_72 {dimension_numbers = #tpu.dot_dimension_numbers<[1], [0], [0], [1], [0, 0, 1, 1], [], []>} : vector<8x8xbf16>, vector<8x32xbf16>, vector<8x32xf32> -> vector<8x32xf32>
    %201 = arith.truncf %200 : vector<8x32xf32> to vector<8x32xbf16>
    %cst_73 = arith.constant dense<0.000000e+00> : vector<8x32xf32>
    %202 = tpu.matmul %201, %28, %cst_73 {dimension_numbers = #tpu.dot_dimension_numbers<[1], [0], [0], [1], [0, 0, 1, 1], [], []>} : vector<8x32xbf16>, vector<32x32xbf16>, vector<8x32xf32> -> vector<8x32xf32>
    %203 = arith.addf %182, %202 : vector<8x32xf32>
    %204 = vector.extract_strided_slice %129 {offsets = [0, 96], sizes = [8, 32], strides = [1, 1]} : vector<8x128xbf16> to vector<8x32xbf16>
    %205 = vector.extract_strided_slice %130 {offsets = [0, 96], sizes = [8, 32], strides = [1, 1]} : vector<8x128xbf16> to vector<8x32xbf16>
    %206 = vector.extract_strided_slice %131 {offsets = [0, 96], sizes = [8, 32], strides = [1, 1]} : vector<8x128xbf16> to vector<8x32xbf16>
    %cst_74 = arith.constant dense<0.000000e+00> : vector<8x8xf32>
    %207 = tpu.matmul %204, %205, %cst_74 {dimension_numbers = #tpu.dot_dimension_numbers<[1], [1], [0], [0], [0, 0, 1, 0], [], []>} : vector<8x32xbf16>, vector<8x32xbf16>, vector<8x8xf32> -> vector<8x8xf32>
    %cst_75 = arith.constant -1.000000e+09 : f32
    %208 = vector.broadcast %cst_75 : f32 to vector<8x8xf32>
    %209 = arith.select %140, %208, %207 : vector<8x8xi1>, vector<8x8xf32>
    %cst_76 = arith.constant dense<0xFF800000> : vector<8xf32>
    %210 = vector.multi_reduction <maximumf>, %209, %cst_76 [1] : vector<8x8xf32> to vector<8xf32>
    %211 = vector.shape_cast %210 : vector<8xf32> to vector<8x1xf32>
    %212 = vector.broadcast %211 : vector<8x1xf32> to vector<8x8xf32>
    %213 = arith.subf %209, %212 : vector<8x8xf32>
    %214 = math.exp %213 : vector<8x8xf32>
    %cst_77 = arith.constant dense<0.000000e+00> : vector<8xf32>
    %215 = vector.multi_reduction <add>, %214, %cst_77 [1] : vector<8x8xf32> to vector<8xf32>
    %216 = vector.shape_cast %215 : vector<8xf32> to vector<8x1xf32>
    %217 = tpu.reciprocal %216 {approx = true} : vector<8x1xf32> -> vector<8x1xf32>
    %218 = vector.broadcast %217 : vector<8x1xf32> to vector<8x8xf32>
    %219 = arith.mulf %214, %218 : vector<8x8xf32>
    %220 = arith.truncf %219 : vector<8x8xf32> to vector<8x8xbf16>
    %cst_78 = arith.constant dense<0.000000e+00> : vector<8x32xf32>
    %221 = tpu.matmul %220, %206, %cst_78 {dimension_numbers = #tpu.dot_dimension_numbers<[1], [0], [0], [1], [0, 0, 1, 1], [], []>} : vector<8x8xbf16>, vector<8x32xbf16>, vector<8x32xf32> -> vector<8x32xf32>
    %222 = arith.truncf %221 : vector<8x32xf32> to vector<8x32xbf16>
    %cst_79 = arith.constant dense<0.000000e+00> : vector<8x32xf32>
    %223 = tpu.matmul %222, %29, %cst_79 {dimension_numbers = #tpu.dot_dimension_numbers<[1], [0], [0], [1], [0, 0, 1, 1], [], []>} : vector<8x32xbf16>, vector<32x32xbf16>, vector<8x32xf32> -> vector<8x32xf32>
    %224 = arith.addf %203, %223 : vector<8x32xf32>
    %c0_80 = arith.constant 0 : index
    %c0_81 = arith.constant 0 : index
    %c32 = arith.constant 32 : index
    %225 = vector.load %arg10[%c0_80, %c0_81, %c32] : memref<1x8x256xf32, #tpu.memory_space<vmem>>, vector<1x8x32xf32>
    %226 = vector.shape_cast %225 : vector<1x8x32xf32> to vector<8x32xf32>
    %227 = vector.shape_cast %224 : vector<8x32xf32> to vector<1x8x32xf32>
    tpu.vector_store %arg10[%c0_80, %c0_81, %c32], %227 {strides = array<i32>} : memref<1x8x256xf32, #tpu.memory_space<vmem>>, vector<1x8x32xf32>,
    %228 = vector.extract_strided_slice %14 {offsets = [16, 0], sizes = [8, 128], strides = [1, 1]} : vector<64x128xbf16> to vector<8x128xbf16>
    %229 = vector.extract_strided_slice %16 {offsets = [16, 0], sizes = [8, 128], strides = [1, 1]} : vector<64x128xbf16> to vector<8x128xbf16>
    %230 = vector.extract_strided_slice %18 {offsets = [16, 0], sizes = [8, 128], strides = [1, 1]} : vector<64x128xbf16> to vector<8x128xbf16>
    %231 = vector.extract_strided_slice %20 {offsets = [16, 0], sizes = [8, 1], strides = [1, 1]} : vector<64x1xf32> to vector<8x1xf32>
    %cst_82 = arith.constant 0.000000e+00 : f32
    %232 = vector.broadcast %cst_82 : f32 to vector<8x1xf32>
    %233 = arith.cmpf oeq, %231, %232 : vector<8x1xf32>
    %234 = vector.extract_strided_slice %22 {offsets = [0, 16], sizes = [1, 8], strides = [1, 1]} : vector<1x64xf32> to vector<1x8xf32>
    %cst_83 = arith.constant 0.000000e+00 : f32
    %235 = vector.broadcast %cst_83 : f32 to vector<1x8xf32>
    %236 = arith.cmpf oeq, %234, %235 : vector<1x8xf32>
    %237 = vector.broadcast %233 : vector<8x1xi1> to vector<8x8xi1>
    %238 = vector.broadcast %236 : vector<1x8xi1> to vector<8x8xi1>
    %239 = arith.ori %237, %238 : vector<8x8xi1>
    %240 = vector.extract_strided_slice %228 {offsets = [0, 0], sizes = [8, 32], strides = [1, 1]} : vector<8x128xbf16> to vector<8x32xbf16>
    %241 = vector.extract_strided_slice %229 {offsets = [0, 0], sizes = [8, 32], strides = [1, 1]} : vector<8x128xbf16> to vector<8x32xbf16>
    %242 = vector.extract_strided_slice %230 {offsets = [0, 0], sizes = [8, 32], strides = [1, 1]} : vector<8x128xbf16> to vector<8x32xbf16>
    %cst_84 = arith.constant dense<0.000000e+00> : vector<8x8xf32>
    %243 = tpu.matmul %240, %241, %cst_84 {dimension_numbers = #tpu.dot_dimension_numbers<[1], [1], [0], [0], [0, 0, 1, 0], [], []>} : vector<8x32xbf16>, vector<8x32xbf16>, vector<8x8xf32> -> vector<8x8xf32>
    %cst_85 = arith.constant -1.000000e+09 : f32
    %244 = vector.broadcast %cst_85 : f32 to vector<8x8xf32>
    %245 = arith.select %239, %244, %243 : vector<8x8xi1>, vector<8x8xf32>
    %cst_86 = arith.constant dense<0xFF800000> : vector<8xf32>
    %246 = vector.multi_reduction <maximumf>, %245, %cst_86 [1] : vector<8x8xf32> to vector<8xf32>
    %247 = vector.shape_cast %246 : vector<8xf32> to vector<8x1xf32>
    %248 = vector.broadcast %247 : vector<8x1xf32> to vector<8x8xf32>
    %249 = arith.subf %245, %248 : vector<8x8xf32>
    %250 = math.exp %249 : vector<8x8xf32>
    %cst_87 = arith.constant dense<0.000000e+00> : vector<8xf32>
    %251 = vector.multi_reduction <add>, %250, %cst_87 [1] : vector<8x8xf32> to vector<8xf32>
    %252 = vector.shape_cast %251 : vector<8xf32> to vector<8x1xf32>
    %253 = tpu.reciprocal %252 {approx = true} : vector<8x1xf32> -> vector<8x1xf32>
    %254 = vector.broadcast %253 : vector<8x1xf32> to vector<8x8xf32>
    %255 = arith.mulf %250, %254 : vector<8x8xf32>
    %256 = arith.truncf %255 : vector<8x8xf32> to vector<8x8xbf16>
    %cst_88 = arith.constant dense<0.000000e+00> : vector<8x32xf32>
    %257 = tpu.matmul %256, %242, %cst_88 {dimension_numbers = #tpu.dot_dimension_numbers<[1], [0], [0], [1], [0, 0, 1, 1], [], []>} : vector<8x8xbf16>, vector<8x32xbf16>, vector<8x32xf32> -> vector<8x32xf32>
    %258 = arith.truncf %257 : vector<8x32xf32> to vector<8x32xbf16>
    %cst_89 = arith.constant dense<0.000000e+00> : vector<8x32xf32>
    %259 = tpu.matmul %258, %26, %cst_89 {dimension_numbers = #tpu.dot_dimension_numbers<[1], [0], [0], [1], [0, 0, 1, 1], [], []>} : vector<8x32xbf16>, vector<32x32xbf16>, vector<8x32xf32> -> vector<8x32xf32>
    %260 = arith.addf %25, %259 : vector<8x32xf32>
    %261 = vector.extract_strided_slice %228 {offsets = [0, 32], sizes = [8, 32], strides = [1, 1]} : vector<8x128xbf16> to vector<8x32xbf16>
    %262 = vector.extract_strided_slice %229 {offsets = [0, 32], sizes = [8, 32], strides = [1, 1]} : vector<8x128xbf16> to vector<8x32xbf16>
    %263 = vector.extract_strided_slice %230 {offsets = [0, 32], sizes = [8, 32], strides = [1, 1]} : vector<8x128xbf16> to vector<8x32xbf16>
    %cst_90 = arith.constant dense<0.000000e+00> : vector<8x8xf32>
    %264 = tpu.matmul %261, %262, %cst_90 {dimension_numbers = #tpu.dot_dimension_numbers<[1], [1], [0], [0], [0, 0, 1, 0], [], []>} : vector<8x32xbf16>, vector<8x32xbf16>, vector<8x8xf32> -> vector<8x8xf32>
    %cst_91 = arith.constant -1.000000e+09 : f32
    %265 = vector.broadcast %cst_91 : f32 to vector<8x8xf32>
    %266 = arith.select %239, %265, %264 : vector<8x8xi1>, vector<8x8xf32>
    %cst_92 = arith.constant dense<0xFF800000> : vector<8xf32>
    %267 = vector.multi_reduction <maximumf>, %266, %cst_92 [1] : vector<8x8xf32> to vector<8xf32>
    %268 = vector.shape_cast %267 : vector<8xf32> to vector<8x1xf32>
    %269 = vector.broadcast %268 : vector<8x1xf32> to vector<8x8xf32>
    %270 = arith.subf %266, %269 : vector<8x8xf32>
    %271 = math.exp %270 : vector<8x8xf32>
    %cst_93 = arith.constant dense<0.000000e+00> : vector<8xf32>
    %272 = vector.multi_reduction <add>, %271, %cst_93 [1] : vector<8x8xf32> to vector<8xf32>
    %273 = vector.shape_cast %272 : vector<8xf32> to vector<8x1xf32>
    %274 = tpu.reciprocal %273 {approx = true} : vector<8x1xf32> -> vector<8x1xf32>
    %275 = vector.broadcast %274 : vector<8x1xf32> to vector<8x8xf32>
    %276 = arith.mulf %271, %275 : vector<8x8xf32>
    %277 = arith.truncf %276 : vector<8x8xf32> to vector<8x8xbf16>
    %cst_94 = arith.constant dense<0.000000e+00> : vector<8x32xf32>
    %278 = tpu.matmul %277, %263, %cst_94 {dimension_numbers = #tpu.dot_dimension_numbers<[1], [0], [0], [1], [0, 0, 1, 1], [], []>} : vector<8x8xbf16>, vector<8x32xbf16>, vector<8x32xf32> -> vector<8x32xf32>
    %279 = arith.truncf %278 : vector<8x32xf32> to vector<8x32xbf16>
    %cst_95 = arith.constant dense<0.000000e+00> : vector<8x32xf32>
    %280 = tpu.matmul %279, %27, %cst_95 {dimension_numbers = #tpu.dot_dimension_numbers<[1], [0], [0], [1], [0, 0, 1, 1], [], []>} : vector<8x32xbf16>, vector<32x32xbf16>, vector<8x32xf32> -> vector<8x32xf32>
    %281 = arith.addf %260, %280 : vector<8x32xf32>
    %282 = vector.extract_strided_slice %228 {offsets = [0, 64], sizes = [8, 32], strides = [1, 1]} : vector<8x128xbf16> to vector<8x32xbf16>
    %283 = vector.extract_strided_slice %229 {offsets = [0, 64], sizes = [8, 32], strides = [1, 1]} : vector<8x128xbf16> to vector<8x32xbf16>
    %284 = vector.extract_strided_slice %230 {offsets = [0, 64], sizes = [8, 32], strides = [1, 1]} : vector<8x128xbf16> to vector<8x32xbf16>
    %cst_96 = arith.constant dense<0.000000e+00> : vector<8x8xf32>
    %285 = tpu.matmul %282, %283, %cst_96 {dimension_numbers = #tpu.dot_dimension_numbers<[1], [1], [0], [0], [0, 0, 1, 0], [], []>} : vector<8x32xbf16>, vector<8x32xbf16>, vector<8x8xf32> -> vector<8x8xf32>
    %cst_97 = arith.constant -1.000000e+09 : f32
    %286 = vector.broadcast %cst_97 : f32 to vector<8x8xf32>
    %287 = arith.select %239, %286, %285 : vector<8x8xi1>, vector<8x8xf32>
    %cst_98 = arith.constant dense<0xFF800000> : vector<8xf32>
    %288 = vector.multi_reduction <maximumf>, %287, %cst_98 [1] : vector<8x8xf32> to vector<8xf32>
    %289 = vector.shape_cast %288 : vector<8xf32> to vector<8x1xf32>
    %290 = vector.broadcast %289 : vector<8x1xf32> to vector<8x8xf32>
    %291 = arith.subf %287, %290 : vector<8x8xf32>
    %292 = math.exp %291 : vector<8x8xf32>
    %cst_99 = arith.constant dense<0.000000e+00> : vector<8xf32>
    %293 = vector.multi_reduction <add>, %292, %cst_99 [1] : vector<8x8xf32> to vector<8xf32>
    %294 = vector.shape_cast %293 : vector<8xf32> to vector<8x1xf32>
    %295 = tpu.reciprocal %294 {approx = true} : vector<8x1xf32> -> vector<8x1xf32>
    %296 = vector.broadcast %295 : vector<8x1xf32> to vector<8x8xf32>
    %297 = arith.mulf %292, %296 : vector<8x8xf32>
    %298 = arith.truncf %297 : vector<8x8xf32> to vector<8x8xbf16>
    %cst_100 = arith.constant dense<0.000000e+00> : vector<8x32xf32>
    %299 = tpu.matmul %298, %284, %cst_100 {dimension_numbers = #tpu.dot_dimension_numbers<[1], [0], [0], [1], [0, 0, 1, 1], [], []>} : vector<8x8xbf16>, vector<8x32xbf16>, vector<8x32xf32> -> vector<8x32xf32>
    %300 = arith.truncf %299 : vector<8x32xf32> to vector<8x32xbf16>
    %cst_101 = arith.constant dense<0.000000e+00> : vector<8x32xf32>
    %301 = tpu.matmul %300, %28, %cst_101 {dimension_numbers = #tpu.dot_dimension_numbers<[1], [0], [0], [1], [0, 0, 1, 1], [], []>} : vector<8x32xbf16>, vector<32x32xbf16>, vector<8x32xf32> -> vector<8x32xf32>
    %302 = arith.addf %281, %301 : vector<8x32xf32>
    %303 = vector.extract_strided_slice %228 {offsets = [0, 96], sizes = [8, 32], strides = [1, 1]} : vector<8x128xbf16> to vector<8x32xbf16>
    %304 = vector.extract_strided_slice %229 {offsets = [0, 96], sizes = [8, 32], strides = [1, 1]} : vector<8x128xbf16> to vector<8x32xbf16>
    %305 = vector.extract_strided_slice %230 {offsets = [0, 96], sizes = [8, 32], strides = [1, 1]} : vector<8x128xbf16> to vector<8x32xbf16>
    %cst_102 = arith.constant dense<0.000000e+00> : vector<8x8xf32>
    %306 = tpu.matmul %303, %304, %cst_102 {dimension_numbers = #tpu.dot_dimension_numbers<[1], [1], [0], [0], [0, 0, 1, 0], [], []>} : vector<8x32xbf16>, vector<8x32xbf16>, vector<8x8xf32> -> vector<8x8xf32>
    %cst_103 = arith.constant -1.000000e+09 : f32
    %307 = vector.broadcast %cst_103 : f32 to vector<8x8xf32>
    %308 = arith.select %239, %307, %306 : vector<8x8xi1>, vector<8x8xf32>
    %cst_104 = arith.constant dense<0xFF800000> : vector<8xf32>
    %309 = vector.multi_reduction <maximumf>, %308, %cst_104 [1] : vector<8x8xf32> to vector<8xf32>
    %310 = vector.shape_cast %309 : vector<8xf32> to vector<8x1xf32>
    %311 = vector.broadcast %310 : vector<8x1xf32> to vector<8x8xf32>
    %312 = arith.subf %308, %311 : vector<8x8xf32>
    %313 = math.exp %312 : vector<8x8xf32>
    %cst_105 = arith.constant dense<0.000000e+00> : vector<8xf32>
    %314 = vector.multi_reduction <add>, %313, %cst_105 [1] : vector<8x8xf32> to vector<8xf32>
    %315 = vector.shape_cast %314 : vector<8xf32> to vector<8x1xf32>
    %316 = tpu.reciprocal %315 {approx = true} : vector<8x1xf32> -> vector<8x1xf32>
    %317 = vector.broadcast %316 : vector<8x1xf32> to vector<8x8xf32>
    %318 = arith.mulf %313, %317 : vector<8x8xf32>
    %319 = arith.truncf %318 : vector<8x8xf32> to vector<8x8xbf16>
    %cst_106 = arith.constant dense<0.000000e+00> : vector<8x32xf32>
    %320 = tpu.matmul %319, %305, %cst_106 {dimension_numbers = #tpu.dot_dimension_numbers<[1], [0], [0], [1], [0, 0, 1, 1], [], []>} : vector<8x8xbf16>, vector<8x32xbf16>, vector<8x32xf32> -> vector<8x32xf32>
    %321 = arith.truncf %320 : vector<8x32xf32> to vector<8x32xbf16>
    %cst_107 = arith.constant dense<0.000000e+00> : vector<8x32xf32>
    %322 = tpu.matmul %321, %29, %cst_107 {dimension_numbers = #tpu.dot_dimension_numbers<[1], [0], [0], [1], [0, 0, 1, 1], [], []>} : vector<8x32xbf16>, vector<32x32xbf16>, vector<8x32xf32> -> vector<8x32xf32>
    %323 = arith.addf %302, %322 : vector<8x32xf32>
    %c0_108 = arith.constant 0 : index
    %c0_109 = arith.constant 0 : index
    %c64 = arith.constant 64 : index
    %324 = vector.load %arg10[%c0_108, %c0_109, %c64] : memref<1x8x256xf32, #tpu.memory_space<vmem>>, vector<1x8x32xf32>
    %325 = vector.shape_cast %324 : vector<1x8x32xf32> to vector<8x32xf32>
    %326 = vector.shape_cast %323 : vector<8x32xf32> to vector<1x8x32xf32>
    tpu.vector_store %arg10[%c0_108, %c0_109, %c64], %326 {strides = array<i32>} : memref<1x8x256xf32, #tpu.memory_space<vmem>>, vector<1x8x32xf32>,
    %327 = vector.extract_strided_slice %14 {offsets = [24, 0], sizes = [8, 128], strides = [1, 1]} : vector<64x128xbf16> to vector<8x128xbf16>
    %328 = vector.extract_strided_slice %16 {offsets = [24, 0], sizes = [8, 128], strides = [1, 1]} : vector<64x128xbf16> to vector<8x128xbf16>
    %329 = vector.extract_strided_slice %18 {offsets = [24, 0], sizes = [8, 128], strides = [1, 1]} : vector<64x128xbf16> to vector<8x128xbf16>
    %330 = vector.extract_strided_slice %20 {offsets = [24, 0], sizes = [8, 1], strides = [1, 1]} : vector<64x1xf32> to vector<8x1xf32>
    %cst_110 = arith.constant 0.000000e+00 : f32
    %331 = vector.broadcast %cst_110 : f32 to vector<8x1xf32>
    %332 = arith.cmpf oeq, %330, %331 : vector<8x1xf32>
    %333 = vector.extract_strided_slice %22 {offsets = [0, 24], sizes = [1, 8], strides = [1, 1]} : vector<1x64xf32> to vector<1x8xf32>
    %cst_111 = arith.constant 0.000000e+00 : f32
    %334 = vector.broadcast %cst_111 : f32 to vector<1x8xf32>
    %335 = arith.cmpf oeq, %333, %334 : vector<1x8xf32>
    %336 = vector.broadcast %332 : vector<8x1xi1> to vector<8x8xi1>
    %337 = vector.broadcast %335 : vector<1x8xi1> to vector<8x8xi1>
    %338 = arith.ori %336, %337 : vector<8x8xi1>
    %339 = vector.extract_strided_slice %327 {offsets = [0, 0], sizes = [8, 32], strides = [1, 1]} : vector<8x128xbf16> to vector<8x32xbf16>
    %340 = vector.extract_strided_slice %328 {offsets = [0, 0], sizes = [8, 32], strides = [1, 1]} : vector<8x128xbf16> to vector<8x32xbf16>
    %341 = vector.extract_strided_slice %329 {offsets = [0, 0], sizes = [8, 32], strides = [1, 1]} : vector<8x128xbf16> to vector<8x32xbf16>
    %cst_112 = arith.constant dense<0.000000e+00> : vector<8x8xf32>
    %342 = tpu.matmul %339, %340, %cst_112 {dimension_numbers = #tpu.dot_dimension_numbers<[1], [1], [0], [0], [0, 0, 1, 0], [], []>} : vector<8x32xbf16>, vector<8x32xbf16>, vector<8x8xf32> -> vector<8x8xf32>
    %cst_113 = arith.constant -1.000000e+09 : f32
    %343 = vector.broadcast %cst_113 : f32 to vector<8x8xf32>
    %344 = arith.select %338, %343, %342 : vector<8x8xi1>, vector<8x8xf32>
    %cst_114 = arith.constant dense<0xFF800000> : vector<8xf32>
    %345 = vector.multi_reduction <maximumf>, %344, %cst_114 [1] : vector<8x8xf32> to vector<8xf32>
    %346 = vector.shape_cast %345 : vector<8xf32> to vector<8x1xf32>
    %347 = vector.broadcast %346 : vector<8x1xf32> to vector<8x8xf32>
    %348 = arith.subf %344, %347 : vector<8x8xf32>
    %349 = math.exp %348 : vector<8x8xf32>
    %cst_115 = arith.constant dense<0.000000e+00> : vector<8xf32>
    %350 = vector.multi_reduction <add>, %349, %cst_115 [1] : vector<8x8xf32> to vector<8xf32>
    %351 = vector.shape_cast %350 : vector<8xf32> to vector<8x1xf32>
    %352 = tpu.reciprocal %351 {approx = true} : vector<8x1xf32> -> vector<8x1xf32>
    %353 = vector.broadcast %352 : vector<8x1xf32> to vector<8x8xf32>
    %354 = arith.mulf %349, %353 : vector<8x8xf32>
    %355 = arith.truncf %354 : vector<8x8xf32> to vector<8x8xbf16>
    %cst_116 = arith.constant dense<0.000000e+00> : vector<8x32xf32>
    %356 = tpu.matmul %355, %341, %cst_116 {dimension_numbers = #tpu.dot_dimension_numbers<[1], [0], [0], [1], [0, 0, 1, 1], [], []>} : vector<8x8xbf16>, vector<8x32xbf16>, vector<8x32xf32> -> vector<8x32xf32>
    %357 = arith.truncf %356 : vector<8x32xf32> to vector<8x32xbf16>
    %cst_117 = arith.constant dense<0.000000e+00> : vector<8x32xf32>
    %358 = tpu.matmul %357, %26, %cst_117 {dimension_numbers = #tpu.dot_dimension_numbers<[1], [0], [0], [1], [0, 0, 1, 1], [], []>} : vector<8x32xbf16>, vector<32x32xbf16>, vector<8x32xf32> -> vector<8x32xf32>
    %359 = arith.addf %25, %358 : vector<8x32xf32>
    %360 = vector.extract_strided_slice %327 {offsets = [0, 32], sizes = [8, 32], strides = [1, 1]} : vector<8x128xbf16> to vector<8x32xbf16>
    %361 = vector.extract_strided_slice %328 {offsets = [0, 32], sizes = [8, 32], strides = [1, 1]} : vector<8x128xbf16> to vector<8x32xbf16>
    %362 = vector.extract_strided_slice %329 {offsets = [0, 32], sizes = [8, 32], strides = [1, 1]} : vector<8x128xbf16> to vector<8x32xbf16>
    %cst_118 = arith.constant dense<0.000000e+00> : vector<8x8xf32>
    %363 = tpu.matmul %360, %361, %cst_118 {dimension_numbers = #tpu.dot_dimension_numbers<[1], [1], [0], [0], [0, 0, 1, 0], [], []>} : vector<8x32xbf16>, vector<8x32xbf16>, vector<8x8xf32> -> vector<8x8xf32>
    %cst_119 = arith.constant -1.000000e+09 : f32
    %364 = vector.broadcast %cst_119 : f32 to vector<8x8xf32>
    %365 = arith.select %338, %364, %363 : vector<8x8xi1>, vector<8x8xf32>
    %cst_120 = arith.constant dense<0xFF800000> : vector<8xf32>
    %366 = vector.multi_reduction <maximumf>, %365, %cst_120 [1] : vector<8x8xf32> to vector<8xf32>
    %367 = vector.shape_cast %366 : vector<8xf32> to vector<8x1xf32>
    %368 = vector.broadcast %367 : vector<8x1xf32> to vector<8x8xf32>
    %369 = arith.subf %365, %368 : vector<8x8xf32>
    %370 = math.exp %369 : vector<8x8xf32>
    %cst_121 = arith.constant dense<0.000000e+00> : vector<8xf32>
    %371 = vector.multi_reduction <add>, %370, %cst_121 [1] : vector<8x8xf32> to vector<8xf32>
    %372 = vector.shape_cast %371 : vector<8xf32> to vector<8x1xf32>
    %373 = tpu.reciprocal %372 {approx = true} : vector<8x1xf32> -> vector<8x1xf32>
    %374 = vector.broadcast %373 : vector<8x1xf32> to vector<8x8xf32>
    %375 = arith.mulf %370, %374 : vector<8x8xf32>
    %376 = arith.truncf %375 : vector<8x8xf32> to vector<8x8xbf16>
    %cst_122 = arith.constant dense<0.000000e+00> : vector<8x32xf32>
    %377 = tpu.matmul %376, %362, %cst_122 {dimension_numbers = #tpu.dot_dimension_numbers<[1], [0], [0], [1], [0, 0, 1, 1], [], []>} : vector<8x8xbf16>, vector<8x32xbf16>, vector<8x32xf32> -> vector<8x32xf32>
    %378 = arith.truncf %377 : vector<8x32xf32> to vector<8x32xbf16>
    %cst_123 = arith.constant dense<0.000000e+00> : vector<8x32xf32>
    %379 = tpu.matmul %378, %27, %cst_123 {dimension_numbers = #tpu.dot_dimension_numbers<[1], [0], [0], [1], [0, 0, 1, 1], [], []>} : vector<8x32xbf16>, vector<32x32xbf16>, vector<8x32xf32> -> vector<8x32xf32>
    %380 = arith.addf %359, %379 : vector<8x32xf32>
    %381 = vector.extract_strided_slice %327 {offsets = [0, 64], sizes = [8, 32], strides = [1, 1]} : vector<8x128xbf16> to vector<8x32xbf16>
    %382 = vector.extract_strided_slice %328 {offsets = [0, 64], sizes = [8, 32], strides = [1, 1]} : vector<8x128xbf16> to vector<8x32xbf16>
    %383 = vector.extract_strided_slice %329 {offsets = [0, 64], sizes = [8, 32], strides = [1, 1]} : vector<8x128xbf16> to vector<8x32xbf16>
    %cst_124 = arith.constant dense<0.000000e+00> : vector<8x8xf32>
    %384 = tpu.matmul %381, %382, %cst_124 {dimension_numbers = #tpu.dot_dimension_numbers<[1], [1], [0], [0], [0, 0, 1, 0], [], []>} : vector<8x32xbf16>, vector<8x32xbf16>, vector<8x8xf32> -> vector<8x8xf32>
    %cst_125 = arith.constant -1.000000e+09 : f32
    %385 = vector.broadcast %cst_125 : f32 to vector<8x8xf32>
    %386 = arith.select %338, %385, %384 : vector<8x8xi1>, vector<8x8xf32>
    %cst_126 = arith.constant dense<0xFF800000> : vector<8xf32>
    %387 = vector.multi_reduction <maximumf>, %386, %cst_126 [1] : vector<8x8xf32> to vector<8xf32>
    %388 = vector.shape_cast %387 : vector<8xf32> to vector<8x1xf32>
    %389 = vector.broadcast %388 : vector<8x1xf32> to vector<8x8xf32>
    %390 = arith.subf %386, %389 : vector<8x8xf32>
    %391 = math.exp %390 : vector<8x8xf32>
    %cst_127 = arith.constant dense<0.000000e+00> : vector<8xf32>
    %392 = vector.multi_reduction <add>, %391, %cst_127 [1] : vector<8x8xf32> to vector<8xf32>
    %393 = vector.shape_cast %392 : vector<8xf32> to vector<8x1xf32>
    %394 = tpu.reciprocal %393 {approx = true} : vector<8x1xf32> -> vector<8x1xf32>
    %395 = vector.broadcast %394 : vector<8x1xf32> to vector<8x8xf32>
    %396 = arith.mulf %391, %395 : vector<8x8xf32>
    %397 = arith.truncf %396 : vector<8x8xf32> to vector<8x8xbf16>
    %cst_128 = arith.constant dense<0.000000e+00> : vector<8x32xf32>
    %398 = tpu.matmul %397, %383, %cst_128 {dimension_numbers = #tpu.dot_dimension_numbers<[1], [0], [0], [1], [0, 0, 1, 1], [], []>} : vector<8x8xbf16>, vector<8x32xbf16>, vector<8x32xf32> -> vector<8x32xf32>
    %399 = arith.truncf %398 : vector<8x32xf32> to vector<8x32xbf16>
    %cst_129 = arith.constant dense<0.000000e+00> : vector<8x32xf32>
    %400 = tpu.matmul %399, %28, %cst_129 {dimension_numbers = #tpu.dot_dimension_numbers<[1], [0], [0], [1], [0, 0, 1, 1], [], []>} : vector<8x32xbf16>, vector<32x32xbf16>, vector<8x32xf32> -> vector<8x32xf32>
    %401 = arith.addf %380, %400 : vector<8x32xf32>
    %402 = vector.extract_strided_slice %327 {offsets = [0, 96], sizes = [8, 32], strides = [1, 1]} : vector<8x128xbf16> to vector<8x32xbf16>
    %403 = vector.extract_strided_slice %328 {offsets = [0, 96], sizes = [8, 32], strides = [1, 1]} : vector<8x128xbf16> to vector<8x32xbf16>
    %404 = vector.extract_strided_slice %329 {offsets = [0, 96], sizes = [8, 32], strides = [1, 1]} : vector<8x128xbf16> to vector<8x32xbf16>
    %cst_130 = arith.constant dense<0.000000e+00> : vector<8x8xf32>
    %405 = tpu.matmul %402, %403, %cst_130 {dimension_numbers = #tpu.dot_dimension_numbers<[1], [1], [0], [0], [0, 0, 1, 0], [], []>} : vector<8x32xbf16>, vector<8x32xbf16>, vector<8x8xf32> -> vector<8x8xf32>
    %cst_131 = arith.constant -1.000000e+09 : f32
    %406 = vector.broadcast %cst_131 : f32 to vector<8x8xf32>
    %407 = arith.select %338, %406, %405 : vector<8x8xi1>, vector<8x8xf32>
    %cst_132 = arith.constant dense<0xFF800000> : vector<8xf32>
    %408 = vector.multi_reduction <maximumf>, %407, %cst_132 [1] : vector<8x8xf32> to vector<8xf32>
    %409 = vector.shape_cast %408 : vector<8xf32> to vector<8x1xf32>
    %410 = vector.broadcast %409 : vector<8x1xf32> to vector<8x8xf32>
    %411 = arith.subf %407, %410 : vector<8x8xf32>
    %412 = math.exp %411 : vector<8x8xf32>
    %cst_133 = arith.constant dense<0.000000e+00> : vector<8xf32>
    %413 = vector.multi_reduction <add>, %412, %cst_133 [1] : vector<8x8xf32> to vector<8xf32>
    %414 = vector.shape_cast %413 : vector<8xf32> to vector<8x1xf32>
    %415 = tpu.reciprocal %414 {approx = true} : vector<8x1xf32> -> vector<8x1xf32>
    %416 = vector.broadcast %415 : vector<8x1xf32> to vector<8x8xf32>
    %417 = arith.mulf %412, %416 : vector<8x8xf32>
    %418 = arith.truncf %417 : vector<8x8xf32> to vector<8x8xbf16>
    %cst_134 = arith.constant dense<0.000000e+00> : vector<8x32xf32>
    %419 = tpu.matmul %418, %404, %cst_134 {dimension_numbers = #tpu.dot_dimension_numbers<[1], [0], [0], [1], [0, 0, 1, 1], [], []>} : vector<8x8xbf16>, vector<8x32xbf16>, vector<8x32xf32> -> vector<8x32xf32>
    %420 = arith.truncf %419 : vector<8x32xf32> to vector<8x32xbf16>
    %cst_135 = arith.constant dense<0.000000e+00> : vector<8x32xf32>
    %421 = tpu.matmul %420, %29, %cst_135 {dimension_numbers = #tpu.dot_dimension_numbers<[1], [0], [0], [1], [0, 0, 1, 1], [], []>} : vector<8x32xbf16>, vector<32x32xbf16>, vector<8x32xf32> -> vector<8x32xf32>
    %422 = arith.addf %401, %421 : vector<8x32xf32>
    %c0_136 = arith.constant 0 : index
    %c0_137 = arith.constant 0 : index
    %c96 = arith.constant 96 : index
    %423 = vector.load %arg10[%c0_136, %c0_137, %c96] : memref<1x8x256xf32, #tpu.memory_space<vmem>>, vector<1x8x32xf32>
    %424 = vector.shape_cast %423 : vector<1x8x32xf32> to vector<8x32xf32>
    %425 = vector.shape_cast %422 : vector<8x32xf32> to vector<1x8x32xf32>
    tpu.vector_store %arg10[%c0_136, %c0_137, %c96], %425 {strides = array<i32>} : memref<1x8x256xf32, #tpu.memory_space<vmem>>, vector<1x8x32xf32>,
    %426 = vector.extract_strided_slice %14 {offsets = [32, 0], sizes = [8, 128], strides = [1, 1]} : vector<64x128xbf16> to vector<8x128xbf16>
    %427 = vector.extract_strided_slice %16 {offsets = [32, 0], sizes = [8, 128], strides = [1, 1]} : vector<64x128xbf16> to vector<8x128xbf16>
    %428 = vector.extract_strided_slice %18 {offsets = [32, 0], sizes = [8, 128], strides = [1, 1]} : vector<64x128xbf16> to vector<8x128xbf16>
    %429 = vector.extract_strided_slice %20 {offsets = [32, 0], sizes = [8, 1], strides = [1, 1]} : vector<64x1xf32> to vector<8x1xf32>
    %cst_138 = arith.constant 0.000000e+00 : f32
    %430 = vector.broadcast %cst_138 : f32 to vector<8x1xf32>
    %431 = arith.cmpf oeq, %429, %430 : vector<8x1xf32>
    %432 = vector.extract_strided_slice %22 {offsets = [0, 32], sizes = [1, 8], strides = [1, 1]} : vector<1x64xf32> to vector<1x8xf32>
    %cst_139 = arith.constant 0.000000e+00 : f32
    %433 = vector.broadcast %cst_139 : f32 to vector<1x8xf32>
    %434 = arith.cmpf oeq, %432, %433 : vector<1x8xf32>
    %435 = vector.broadcast %431 : vector<8x1xi1> to vector<8x8xi1>
    %436 = vector.broadcast %434 : vector<1x8xi1> to vector<8x8xi1>
    %437 = arith.ori %435, %436 : vector<8x8xi1>
    %438 = vector.extract_strided_slice %426 {offsets = [0, 0], sizes = [8, 32], strides = [1, 1]} : vector<8x128xbf16> to vector<8x32xbf16>
    %439 = vector.extract_strided_slice %427 {offsets = [0, 0], sizes = [8, 32], strides = [1, 1]} : vector<8x128xbf16> to vector<8x32xbf16>
    %440 = vector.extract_strided_slice %428 {offsets = [0, 0], sizes = [8, 32], strides = [1, 1]} : vector<8x128xbf16> to vector<8x32xbf16>
    %cst_140 = arith.constant dense<0.000000e+00> : vector<8x8xf32>
    %441 = tpu.matmul %438, %439, %cst_140 {dimension_numbers = #tpu.dot_dimension_numbers<[1], [1], [0], [0], [0, 0, 1, 0], [], []>} : vector<8x32xbf16>, vector<8x32xbf16>, vector<8x8xf32> -> vector<8x8xf32>
    %cst_141 = arith.constant -1.000000e+09 : f32
    %442 = vector.broadcast %cst_141 : f32 to vector<8x8xf32>
    %443 = arith.select %437, %442, %441 : vector<8x8xi1>, vector<8x8xf32>
    %cst_142 = arith.constant dense<0xFF800000> : vector<8xf32>
    %444 = vector.multi_reduction <maximumf>, %443, %cst_142 [1] : vector<8x8xf32> to vector<8xf32>
    %445 = vector.shape_cast %444 : vector<8xf32> to vector<8x1xf32>
    %446 = vector.broadcast %445 : vector<8x1xf32> to vector<8x8xf32>
    %447 = arith.subf %443, %446 : vector<8x8xf32>
    %448 = math.exp %447 : vector<8x8xf32>
    %cst_143 = arith.constant dense<0.000000e+00> : vector<8xf32>
    %449 = vector.multi_reduction <add>, %448, %cst_143 [1] : vector<8x8xf32> to vector<8xf32>
    %450 = vector.shape_cast %449 : vector<8xf32> to vector<8x1xf32>
    %451 = tpu.reciprocal %450 {approx = true} : vector<8x1xf32> -> vector<8x1xf32>
    %452 = vector.broadcast %451 : vector<8x1xf32> to vector<8x8xf32>
    %453 = arith.mulf %448, %452 : vector<8x8xf32>
    %454 = arith.truncf %453 : vector<8x8xf32> to vector<8x8xbf16>
    %cst_144 = arith.constant dense<0.000000e+00> : vector<8x32xf32>
    %455 = tpu.matmul %454, %440, %cst_144 {dimension_numbers = #tpu.dot_dimension_numbers<[1], [0], [0], [1], [0, 0, 1, 1], [], []>} : vector<8x8xbf16>, vector<8x32xbf16>, vector<8x32xf32> -> vector<8x32xf32>
    %456 = arith.truncf %455 : vector<8x32xf32> to vector<8x32xbf16>
    %cst_145 = arith.constant dense<0.000000e+00> : vector<8x32xf32>
    %457 = tpu.matmul %456, %26, %cst_145 {dimension_numbers = #tpu.dot_dimension_numbers<[1], [0], [0], [1], [0, 0, 1, 1], [], []>} : vector<8x32xbf16>, vector<32x32xbf16>, vector<8x32xf32> -> vector<8x32xf32>
    %458 = arith.addf %25, %457 : vector<8x32xf32>
    %459 = vector.extract_strided_slice %426 {offsets = [0, 32], sizes = [8, 32], strides = [1, 1]} : vector<8x128xbf16> to vector<8x32xbf16>
    %460 = vector.extract_strided_slice %427 {offsets = [0, 32], sizes = [8, 32], strides = [1, 1]} : vector<8x128xbf16> to vector<8x32xbf16>
    %461 = vector.extract_strided_slice %428 {offsets = [0, 32], sizes = [8, 32], strides = [1, 1]} : vector<8x128xbf16> to vector<8x32xbf16>
    %cst_146 = arith.constant dense<0.000000e+00> : vector<8x8xf32>
    %462 = tpu.matmul %459, %460, %cst_146 {dimension_numbers = #tpu.dot_dimension_numbers<[1], [1], [0], [0], [0, 0, 1, 0], [], []>} : vector<8x32xbf16>, vector<8x32xbf16>, vector<8x8xf32> -> vector<8x8xf32>
    %cst_147 = arith.constant -1.000000e+09 : f32
    %463 = vector.broadcast %cst_147 : f32 to vector<8x8xf32>
    %464 = arith.select %437, %463, %462 : vector<8x8xi1>, vector<8x8xf32>
    %cst_148 = arith.constant dense<0xFF800000> : vector<8xf32>
    %465 = vector.multi_reduction <maximumf>, %464, %cst_148 [1] : vector<8x8xf32> to vector<8xf32>
    %466 = vector.shape_cast %465 : vector<8xf32> to vector<8x1xf32>
    %467 = vector.broadcast %466 : vector<8x1xf32> to vector<8x8xf32>
    %468 = arith.subf %464, %467 : vector<8x8xf32>
    %469 = math.exp %468 : vector<8x8xf32>
    %cst_149 = arith.constant dense<0.000000e+00> : vector<8xf32>
    %470 = vector.multi_reduction <add>, %469, %cst_149 [1] : vector<8x8xf32> to vector<8xf32>
    %471 = vector.shape_cast %470 : vector<8xf32> to vector<8x1xf32>
    %472 = tpu.reciprocal %471 {approx = true} : vector<8x1xf32> -> vector<8x1xf32>
    %473 = vector.broadcast %472 : vector<8x1xf32> to vector<8x8xf32>
    %474 = arith.mulf %469, %473 : vector<8x8xf32>
    %475 = arith.truncf %474 : vector<8x8xf32> to vector<8x8xbf16>
    %cst_150 = arith.constant dense<0.000000e+00> : vector<8x32xf32>
    %476 = tpu.matmul %475, %461, %cst_150 {dimension_numbers = #tpu.dot_dimension_numbers<[1], [0], [0], [1], [0, 0, 1, 1], [], []>} : vector<8x8xbf16>, vector<8x32xbf16>, vector<8x32xf32> -> vector<8x32xf32>
    %477 = arith.truncf %476 : vector<8x32xf32> to vector<8x32xbf16>
    %cst_151 = arith.constant dense<0.000000e+00> : vector<8x32xf32>
    %478 = tpu.matmul %477, %27, %cst_151 {dimension_numbers = #tpu.dot_dimension_numbers<[1], [0], [0], [1], [0, 0, 1, 1], [], []>} : vector<8x32xbf16>, vector<32x32xbf16>, vector<8x32xf32> -> vector<8x32xf32>
    %479 = arith.addf %458, %478 : vector<8x32xf32>
    %480 = vector.extract_strided_slice %426 {offsets = [0, 64], sizes = [8, 32], strides = [1, 1]} : vector<8x128xbf16> to vector<8x32xbf16>
    %481 = vector.extract_strided_slice %427 {offsets = [0, 64], sizes = [8, 32], strides = [1, 1]} : vector<8x128xbf16> to vector<8x32xbf16>
    %482 = vector.extract_strided_slice %428 {offsets = [0, 64], sizes = [8, 32], strides = [1, 1]} : vector<8x128xbf16> to vector<8x32xbf16>
    %cst_152 = arith.constant dense<0.000000e+00> : vector<8x8xf32>
    %483 = tpu.matmul %480, %481, %cst_152 {dimension_numbers = #tpu.dot_dimension_numbers<[1], [1], [0], [0], [0, 0, 1, 0], [], []>} : vector<8x32xbf16>, vector<8x32xbf16>, vector<8x8xf32> -> vector<8x8xf32>
    %cst_153 = arith.constant -1.000000e+09 : f32
    %484 = vector.broadcast %cst_153 : f32 to vector<8x8xf32>
    %485 = arith.select %437, %484, %483 : vector<8x8xi1>, vector<8x8xf32>
    %cst_154 = arith.constant dense<0xFF800000> : vector<8xf32>
    %486 = vector.multi_reduction <maximumf>, %485, %cst_154 [1] : vector<8x8xf32> to vector<8xf32>
    %487 = vector.shape_cast %486 : vector<8xf32> to vector<8x1xf32>
    %488 = vector.broadcast %487 : vector<8x1xf32> to vector<8x8xf32>
    %489 = arith.subf %485, %488 : vector<8x8xf32>
    %490 = math.exp %489 : vector<8x8xf32>
    %cst_155 = arith.constant dense<0.000000e+00> : vector<8xf32>
    %491 = vector.multi_reduction <add>, %490, %cst_155 [1] : vector<8x8xf32> to vector<8xf32>
    %492 = vector.shape_cast %491 : vector<8xf32> to vector<8x1xf32>
    %493 = tpu.reciprocal %492 {approx = true} : vector<8x1xf32> -> vector<8x1xf32>
    %494 = vector.broadcast %493 : vector<8x1xf32> to vector<8x8xf32>
    %495 = arith.mulf %490, %494 : vector<8x8xf32>
    %496 = arith.truncf %495 : vector<8x8xf32> to vector<8x8xbf16>
    %cst_156 = arith.constant dense<0.000000e+00> : vector<8x32xf32>
    %497 = tpu.matmul %496, %482, %cst_156 {dimension_numbers = #tpu.dot_dimension_numbers<[1], [0], [0], [1], [0, 0, 1, 1], [], []>} : vector<8x8xbf16>, vector<8x32xbf16>, vector<8x32xf32> -> vector<8x32xf32>
    %498 = arith.truncf %497 : vector<8x32xf32> to vector<8x32xbf16>
    %cst_157 = arith.constant dense<0.000000e+00> : vector<8x32xf32>
    %499 = tpu.matmul %498, %28, %cst_157 {dimension_numbers = #tpu.dot_dimension_numbers<[1], [0], [0], [1], [0, 0, 1, 1], [], []>} : vector<8x32xbf16>, vector<32x32xbf16>, vector<8x32xf32> -> vector<8x32xf32>
    %500 = arith.addf %479, %499 : vector<8x32xf32>
    %501 = vector.extract_strided_slice %426 {offsets = [0, 96], sizes = [8, 32], strides = [1, 1]} : vector<8x128xbf16> to vector<8x32xbf16>
    %502 = vector.extract_strided_slice %427 {offsets = [0, 96], sizes = [8, 32], strides = [1, 1]} : vector<8x128xbf16> to vector<8x32xbf16>
    %503 = vector.extract_strided_slice %428 {offsets = [0, 96], sizes = [8, 32], strides = [1, 1]} : vector<8x128xbf16> to vector<8x32xbf16>
    %cst_158 = arith.constant dense<0.000000e+00> : vector<8x8xf32>
    %504 = tpu.matmul %501, %502, %cst_158 {dimension_numbers = #tpu.dot_dimension_numbers<[1], [1], [0], [0], [0, 0, 1, 0], [], []>} : vector<8x32xbf16>, vector<8x32xbf16>, vector<8x8xf32> -> vector<8x8xf32>
    %cst_159 = arith.constant -1.000000e+09 : f32
    %505 = vector.broadcast %cst_159 : f32 to vector<8x8xf32>
    %506 = arith.select %437, %505, %504 : vector<8x8xi1>, vector<8x8xf32>
    %cst_160 = arith.constant dense<0xFF800000> : vector<8xf32>
    %507 = vector.multi_reduction <maximumf>, %506, %cst_160 [1] : vector<8x8xf32> to vector<8xf32>
    %508 = vector.shape_cast %507 : vector<8xf32> to vector<8x1xf32>
    %509 = vector.broadcast %508 : vector<8x1xf32> to vector<8x8xf32>
    %510 = arith.subf %506, %509 : vector<8x8xf32>
    %511 = math.exp %510 : vector<8x8xf32>
    %cst_161 = arith.constant dense<0.000000e+00> : vector<8xf32>
    %512 = vector.multi_reduction <add>, %511, %cst_161 [1] : vector<8x8xf32> to vector<8xf32>
    %513 = vector.shape_cast %512 : vector<8xf32> to vector<8x1xf32>
    %514 = tpu.reciprocal %513 {approx = true} : vector<8x1xf32> -> vector<8x1xf32>
    %515 = vector.broadcast %514 : vector<8x1xf32> to vector<8x8xf32>
    %516 = arith.mulf %511, %515 : vector<8x8xf32>
    %517 = arith.truncf %516 : vector<8x8xf32> to vector<8x8xbf16>
    %cst_162 = arith.constant dense<0.000000e+00> : vector<8x32xf32>
    %518 = tpu.matmul %517, %503, %cst_162 {dimension_numbers = #tpu.dot_dimension_numbers<[1], [0], [0], [1], [0, 0, 1, 1], [], []>} : vector<8x8xbf16>, vector<8x32xbf16>, vector<8x32xf32> -> vector<8x32xf32>
    %519 = arith.truncf %518 : vector<8x32xf32> to vector<8x32xbf16>
    %cst_163 = arith.constant dense<0.000000e+00> : vector<8x32xf32>
    %520 = tpu.matmul %519, %29, %cst_163 {dimension_numbers = #tpu.dot_dimension_numbers<[1], [0], [0], [1], [0, 0, 1, 1], [], []>} : vector<8x32xbf16>, vector<32x32xbf16>, vector<8x32xf32> -> vector<8x32xf32>
    %521 = arith.addf %500, %520 : vector<8x32xf32>
    %c0_164 = arith.constant 0 : index
    %c0_165 = arith.constant 0 : index
    %c128 = arith.constant 128 : index
    %522 = vector.load %arg10[%c0_164, %c0_165, %c128] : memref<1x8x256xf32, #tpu.memory_space<vmem>>, vector<1x8x32xf32>
    %523 = vector.shape_cast %522 : vector<1x8x32xf32> to vector<8x32xf32>
    %524 = vector.shape_cast %521 : vector<8x32xf32> to vector<1x8x32xf32>
    tpu.vector_store %arg10[%c0_164, %c0_165, %c128], %524 {strides = array<i32>} : memref<1x8x256xf32, #tpu.memory_space<vmem>>, vector<1x8x32xf32>,
    %525 = vector.extract_strided_slice %14 {offsets = [40, 0], sizes = [8, 128], strides = [1, 1]} : vector<64x128xbf16> to vector<8x128xbf16>
    %526 = vector.extract_strided_slice %16 {offsets = [40, 0], sizes = [8, 128], strides = [1, 1]} : vector<64x128xbf16> to vector<8x128xbf16>
    %527 = vector.extract_strided_slice %18 {offsets = [40, 0], sizes = [8, 128], strides = [1, 1]} : vector<64x128xbf16> to vector<8x128xbf16>
    %528 = vector.extract_strided_slice %20 {offsets = [40, 0], sizes = [8, 1], strides = [1, 1]} : vector<64x1xf32> to vector<8x1xf32>
    %cst_166 = arith.constant 0.000000e+00 : f32
    %529 = vector.broadcast %cst_166 : f32 to vector<8x1xf32>
    %530 = arith.cmpf oeq, %528, %529 : vector<8x1xf32>
    %531 = vector.extract_strided_slice %22 {offsets = [0, 40], sizes = [1, 8], strides = [1, 1]} : vector<1x64xf32> to vector<1x8xf32>
    %cst_167 = arith.constant 0.000000e+00 : f32
    %532 = vector.broadcast %cst_167 : f32 to vector<1x8xf32>
    %533 = arith.cmpf oeq, %531, %532 : vector<1x8xf32>
    %534 = vector.broadcast %530 : vector<8x1xi1> to vector<8x8xi1>
    %535 = vector.broadcast %533 : vector<1x8xi1> to vector<8x8xi1>
    %536 = arith.ori %534, %535 : vector<8x8xi1>
    %537 = vector.extract_strided_slice %525 {offsets = [0, 0], sizes = [8, 32], strides = [1, 1]} : vector<8x128xbf16> to vector<8x32xbf16>
    %538 = vector.extract_strided_slice %526 {offsets = [0, 0], sizes = [8, 32], strides = [1, 1]} : vector<8x128xbf16> to vector<8x32xbf16>
    %539 = vector.extract_strided_slice %527 {offsets = [0, 0], sizes = [8, 32], strides = [1, 1]} : vector<8x128xbf16> to vector<8x32xbf16>
    %cst_168 = arith.constant dense<0.000000e+00> : vector<8x8xf32>
    %540 = tpu.matmul %537, %538, %cst_168 {dimension_numbers = #tpu.dot_dimension_numbers<[1], [1], [0], [0], [0, 0, 1, 0], [], []>} : vector<8x32xbf16>, vector<8x32xbf16>, vector<8x8xf32> -> vector<8x8xf32>
    %cst_169 = arith.constant -1.000000e+09 : f32
    %541 = vector.broadcast %cst_169 : f32 to vector<8x8xf32>
    %542 = arith.select %536, %541, %540 : vector<8x8xi1>, vector<8x8xf32>
    %cst_170 = arith.constant dense<0xFF800000> : vector<8xf32>
    %543 = vector.multi_reduction <maximumf>, %542, %cst_170 [1] : vector<8x8xf32> to vector<8xf32>
    %544 = vector.shape_cast %543 : vector<8xf32> to vector<8x1xf32>
    %545 = vector.broadcast %544 : vector<8x1xf32> to vector<8x8xf32>
    %546 = arith.subf %542, %545 : vector<8x8xf32>
    %547 = math.exp %546 : vector<8x8xf32>
    %cst_171 = arith.constant dense<0.000000e+00> : vector<8xf32>
    %548 = vector.multi_reduction <add>, %547, %cst_171 [1] : vector<8x8xf32> to vector<8xf32>
    %549 = vector.shape_cast %548 : vector<8xf32> to vector<8x1xf32>
    %550 = tpu.reciprocal %549 {approx = true} : vector<8x1xf32> -> vector<8x1xf32>
    %551 = vector.broadcast %550 : vector<8x1xf32> to vector<8x8xf32>
    %552 = arith.mulf %547, %551 : vector<8x8xf32>
    %553 = arith.truncf %552 : vector<8x8xf32> to vector<8x8xbf16>
    %cst_172 = arith.constant dense<0.000000e+00> : vector<8x32xf32>
    %554 = tpu.matmul %553, %539, %cst_172 {dimension_numbers = #tpu.dot_dimension_numbers<[1], [0], [0], [1], [0, 0, 1, 1], [], []>} : vector<8x8xbf16>, vector<8x32xbf16>, vector<8x32xf32> -> vector<8x32xf32>
    %555 = arith.truncf %554 : vector<8x32xf32> to vector<8x32xbf16>
    %cst_173 = arith.constant dense<0.000000e+00> : vector<8x32xf32>
    %556 = tpu.matmul %555, %26, %cst_173 {dimension_numbers = #tpu.dot_dimension_numbers<[1], [0], [0], [1], [0, 0, 1, 1], [], []>} : vector<8x32xbf16>, vector<32x32xbf16>, vector<8x32xf32> -> vector<8x32xf32>
    %557 = arith.addf %25, %556 : vector<8x32xf32>
    %558 = vector.extract_strided_slice %525 {offsets = [0, 32], sizes = [8, 32], strides = [1, 1]} : vector<8x128xbf16> to vector<8x32xbf16>
    %559 = vector.extract_strided_slice %526 {offsets = [0, 32], sizes = [8, 32], strides = [1, 1]} : vector<8x128xbf16> to vector<8x32xbf16>
    %560 = vector.extract_strided_slice %527 {offsets = [0, 32], sizes = [8, 32], strides = [1, 1]} : vector<8x128xbf16> to vector<8x32xbf16>
    %cst_174 = arith.constant dense<0.000000e+00> : vector<8x8xf32>
    %561 = tpu.matmul %558, %559, %cst_174 {dimension_numbers = #tpu.dot_dimension_numbers<[1], [1], [0], [0], [0, 0, 1, 0], [], []>} : vector<8x32xbf16>, vector<8x32xbf16>, vector<8x8xf32> -> vector<8x8xf32>
    %cst_175 = arith.constant -1.000000e+09 : f32
    %562 = vector.broadcast %cst_175 : f32 to vector<8x8xf32>
    %563 = arith.select %536, %562, %561 : vector<8x8xi1>, vector<8x8xf32>
    %cst_176 = arith.constant dense<0xFF800000> : vector<8xf32>
    %564 = vector.multi_reduction <maximumf>, %563, %cst_176 [1] : vector<8x8xf32> to vector<8xf32>
    %565 = vector.shape_cast %564 : vector<8xf32> to vector<8x1xf32>
    %566 = vector.broadcast %565 : vector<8x1xf32> to vector<8x8xf32>
    %567 = arith.subf %563, %566 : vector<8x8xf32>
    %568 = math.exp %567 : vector<8x8xf32>
    %cst_177 = arith.constant dense<0.000000e+00> : vector<8xf32>
    %569 = vector.multi_reduction <add>, %568, %cst_177 [1] : vector<8x8xf32> to vector<8xf32>
    %570 = vector.shape_cast %569 : vector<8xf32> to vector<8x1xf32>
    %571 = tpu.reciprocal %570 {approx = true} : vector<8x1xf32> -> vector<8x1xf32>
    %572 = vector.broadcast %571 : vector<8x1xf32> to vector<8x8xf32>
    %573 = arith.mulf %568, %572 : vector<8x8xf32>
    %574 = arith.truncf %573 : vector<8x8xf32> to vector<8x8xbf16>
    %cst_178 = arith.constant dense<0.000000e+00> : vector<8x32xf32>
    %575 = tpu.matmul %574, %560, %cst_178 {dimension_numbers = #tpu.dot_dimension_numbers<[1], [0], [0], [1], [0, 0, 1, 1], [], []>} : vector<8x8xbf16>, vector<8x32xbf16>, vector<8x32xf32> -> vector<8x32xf32>
    %576 = arith.truncf %575 : vector<8x32xf32> to vector<8x32xbf16>
    %cst_179 = arith.constant dense<0.000000e+00> : vector<8x32xf32>
    %577 = tpu.matmul %576, %27, %cst_179 {dimension_numbers = #tpu.dot_dimension_numbers<[1], [0], [0], [1], [0, 0, 1, 1], [], []>} : vector<8x32xbf16>, vector<32x32xbf16>, vector<8x32xf32> -> vector<8x32xf32>
    %578 = arith.addf %557, %577 : vector<8x32xf32>
    %579 = vector.extract_strided_slice %525 {offsets = [0, 64], sizes = [8, 32], strides = [1, 1]} : vector<8x128xbf16> to vector<8x32xbf16>
    %580 = vector.extract_strided_slice %526 {offsets = [0, 64], sizes = [8, 32], strides = [1, 1]} : vector<8x128xbf16> to vector<8x32xbf16>
    %581 = vector.extract_strided_slice %527 {offsets = [0, 64], sizes = [8, 32], strides = [1, 1]} : vector<8x128xbf16> to vector<8x32xbf16>
    %cst_180 = arith.constant dense<0.000000e+00> : vector<8x8xf32>
    %582 = tpu.matmul %579, %580, %cst_180 {dimension_numbers = #tpu.dot_dimension_numbers<[1], [1], [0], [0], [0, 0, 1, 0], [], []>} : vector<8x32xbf16>, vector<8x32xbf16>, vector<8x8xf32> -> vector<8x8xf32>
    %cst_181 = arith.constant -1.000000e+09 : f32
    %583 = vector.broadcast %cst_181 : f32 to vector<8x8xf32>
    %584 = arith.select %536, %583, %582 : vector<8x8xi1>, vector<8x8xf32>
    %cst_182 = arith.constant dense<0xFF800000> : vector<8xf32>
    %585 = vector.multi_reduction <maximumf>, %584, %cst_182 [1] : vector<8x8xf32> to vector<8xf32>
    %586 = vector.shape_cast %585 : vector<8xf32> to vector<8x1xf32>
    %587 = vector.broadcast %586 : vector<8x1xf32> to vector<8x8xf32>
    %588 = arith.subf %584, %587 : vector<8x8xf32>
    %589 = math.exp %588 : vector<8x8xf32>
    %cst_183 = arith.constant dense<0.000000e+00> : vector<8xf32>
    %590 = vector.multi_reduction <add>, %589, %cst_183 [1] : vector<8x8xf32> to vector<8xf32>
    %591 = vector.shape_cast %590 : vector<8xf32> to vector<8x1xf32>
    %592 = tpu.reciprocal %591 {approx = true} : vector<8x1xf32> -> vector<8x1xf32>
    %593 = vector.broadcast %592 : vector<8x1xf32> to vector<8x8xf32>
    %594 = arith.mulf %589, %593 : vector<8x8xf32>
    %595 = arith.truncf %594 : vector<8x8xf32> to vector<8x8xbf16>
    %cst_184 = arith.constant dense<0.000000e+00> : vector<8x32xf32>
    %596 = tpu.matmul %595, %581, %cst_184 {dimension_numbers = #tpu.dot_dimension_numbers<[1], [0], [0], [1], [0, 0, 1, 1], [], []>} : vector<8x8xbf16>, vector<8x32xbf16>, vector<8x32xf32> -> vector<8x32xf32>
    %597 = arith.truncf %596 : vector<8x32xf32> to vector<8x32xbf16>
    %cst_185 = arith.constant dense<0.000000e+00> : vector<8x32xf32>
    %598 = tpu.matmul %597, %28, %cst_185 {dimension_numbers = #tpu.dot_dimension_numbers<[1], [0], [0], [1], [0, 0, 1, 1], [], []>} : vector<8x32xbf16>, vector<32x32xbf16>, vector<8x32xf32> -> vector<8x32xf32>
    %599 = arith.addf %578, %598 : vector<8x32xf32>
    %600 = vector.extract_strided_slice %525 {offsets = [0, 96], sizes = [8, 32], strides = [1, 1]} : vector<8x128xbf16> to vector<8x32xbf16>
    %601 = vector.extract_strided_slice %526 {offsets = [0, 96], sizes = [8, 32], strides = [1, 1]} : vector<8x128xbf16> to vector<8x32xbf16>
    %602 = vector.extract_strided_slice %527 {offsets = [0, 96], sizes = [8, 32], strides = [1, 1]} : vector<8x128xbf16> to vector<8x32xbf16>
    %cst_186 = arith.constant dense<0.000000e+00> : vector<8x8xf32>
    %603 = tpu.matmul %600, %601, %cst_186 {dimension_numbers = #tpu.dot_dimension_numbers<[1], [1], [0], [0], [0, 0, 1, 0], [], []>} : vector<8x32xbf16>, vector<8x32xbf16>, vector<8x8xf32> -> vector<8x8xf32>
    %cst_187 = arith.constant -1.000000e+09 : f32
    %604 = vector.broadcast %cst_187 : f32 to vector<8x8xf32>
    %605 = arith.select %536, %604, %603 : vector<8x8xi1>, vector<8x8xf32>
    %cst_188 = arith.constant dense<0xFF800000> : vector<8xf32>
    %606 = vector.multi_reduction <maximumf>, %605, %cst_188 [1] : vector<8x8xf32> to vector<8xf32>
    %607 = vector.shape_cast %606 : vector<8xf32> to vector<8x1xf32>
    %608 = vector.broadcast %607 : vector<8x1xf32> to vector<8x8xf32>
    %609 = arith.subf %605, %608 : vector<8x8xf32>
    %610 = math.exp %609 : vector<8x8xf32>
    %cst_189 = arith.constant dense<0.000000e+00> : vector<8xf32>
    %611 = vector.multi_reduction <add>, %610, %cst_189 [1] : vector<8x8xf32> to vector<8xf32>
    %612 = vector.shape_cast %611 : vector<8xf32> to vector<8x1xf32>
    %613 = tpu.reciprocal %612 {approx = true} : vector<8x1xf32> -> vector<8x1xf32>
    %614 = vector.broadcast %613 : vector<8x1xf32> to vector<8x8xf32>
    %615 = arith.mulf %610, %614 : vector<8x8xf32>
    %616 = arith.truncf %615 : vector<8x8xf32> to vector<8x8xbf16>
    %cst_190 = arith.constant dense<0.000000e+00> : vector<8x32xf32>
    %617 = tpu.matmul %616, %602, %cst_190 {dimension_numbers = #tpu.dot_dimension_numbers<[1], [0], [0], [1], [0, 0, 1, 1], [], []>} : vector<8x8xbf16>, vector<8x32xbf16>, vector<8x32xf32> -> vector<8x32xf32>
    %618 = arith.truncf %617 : vector<8x32xf32> to vector<8x32xbf16>
    %cst_191 = arith.constant dense<0.000000e+00> : vector<8x32xf32>
    %619 = tpu.matmul %618, %29, %cst_191 {dimension_numbers = #tpu.dot_dimension_numbers<[1], [0], [0], [1], [0, 0, 1, 1], [], []>} : vector<8x32xbf16>, vector<32x32xbf16>, vector<8x32xf32> -> vector<8x32xf32>
    %620 = arith.addf %599, %619 : vector<8x32xf32>
    %c0_192 = arith.constant 0 : index
    %c0_193 = arith.constant 0 : index
    %c160 = arith.constant 160 : index
    %621 = vector.load %arg10[%c0_192, %c0_193, %c160] : memref<1x8x256xf32, #tpu.memory_space<vmem>>, vector<1x8x32xf32>
    %622 = vector.shape_cast %621 : vector<1x8x32xf32> to vector<8x32xf32>
    %623 = vector.shape_cast %620 : vector<8x32xf32> to vector<1x8x32xf32>
    tpu.vector_store %arg10[%c0_192, %c0_193, %c160], %623 {strides = array<i32>} : memref<1x8x256xf32, #tpu.memory_space<vmem>>, vector<1x8x32xf32>,
    %624 = vector.extract_strided_slice %14 {offsets = [48, 0], sizes = [8, 128], strides = [1, 1]} : vector<64x128xbf16> to vector<8x128xbf16>
    %625 = vector.extract_strided_slice %16 {offsets = [48, 0], sizes = [8, 128], strides = [1, 1]} : vector<64x128xbf16> to vector<8x128xbf16>
    %626 = vector.extract_strided_slice %18 {offsets = [48, 0], sizes = [8, 128], strides = [1, 1]} : vector<64x128xbf16> to vector<8x128xbf16>
    %627 = vector.extract_strided_slice %20 {offsets = [48, 0], sizes = [8, 1], strides = [1, 1]} : vector<64x1xf32> to vector<8x1xf32>
    %cst_194 = arith.constant 0.000000e+00 : f32
    %628 = vector.broadcast %cst_194 : f32 to vector<8x1xf32>
    %629 = arith.cmpf oeq, %627, %628 : vector<8x1xf32>
    %630 = vector.extract_strided_slice %22 {offsets = [0, 48], sizes = [1, 8], strides = [1, 1]} : vector<1x64xf32> to vector<1x8xf32>
    %cst_195 = arith.constant 0.000000e+00 : f32
    %631 = vector.broadcast %cst_195 : f32 to vector<1x8xf32>
    %632 = arith.cmpf oeq, %630, %631 : vector<1x8xf32>
    %633 = vector.broadcast %629 : vector<8x1xi1> to vector<8x8xi1>
    %634 = vector.broadcast %632 : vector<1x8xi1> to vector<8x8xi1>
    %635 = arith.ori %633, %634 : vector<8x8xi1>
    %636 = vector.extract_strided_slice %624 {offsets = [0, 0], sizes = [8, 32], strides = [1, 1]} : vector<8x128xbf16> to vector<8x32xbf16>
    %637 = vector.extract_strided_slice %625 {offsets = [0, 0], sizes = [8, 32], strides = [1, 1]} : vector<8x128xbf16> to vector<8x32xbf16>
    %638 = vector.extract_strided_slice %626 {offsets = [0, 0], sizes = [8, 32], strides = [1, 1]} : vector<8x128xbf16> to vector<8x32xbf16>
    %cst_196 = arith.constant dense<0.000000e+00> : vector<8x8xf32>
    %639 = tpu.matmul %636, %637, %cst_196 {dimension_numbers = #tpu.dot_dimension_numbers<[1], [1], [0], [0], [0, 0, 1, 0], [], []>} : vector<8x32xbf16>, vector<8x32xbf16>, vector<8x8xf32> -> vector<8x8xf32>
    %cst_197 = arith.constant -1.000000e+09 : f32
    %640 = vector.broadcast %cst_197 : f32 to vector<8x8xf32>
    %641 = arith.select %635, %640, %639 : vector<8x8xi1>, vector<8x8xf32>
    %cst_198 = arith.constant dense<0xFF800000> : vector<8xf32>
    %642 = vector.multi_reduction <maximumf>, %641, %cst_198 [1] : vector<8x8xf32> to vector<8xf32>
    %643 = vector.shape_cast %642 : vector<8xf32> to vector<8x1xf32>
    %644 = vector.broadcast %643 : vector<8x1xf32> to vector<8x8xf32>
    %645 = arith.subf %641, %644 : vector<8x8xf32>
    %646 = math.exp %645 : vector<8x8xf32>
    %cst_199 = arith.constant dense<0.000000e+00> : vector<8xf32>
    %647 = vector.multi_reduction <add>, %646, %cst_199 [1] : vector<8x8xf32> to vector<8xf32>
    %648 = vector.shape_cast %647 : vector<8xf32> to vector<8x1xf32>
    %649 = tpu.reciprocal %648 {approx = true} : vector<8x1xf32> -> vector<8x1xf32>
    %650 = vector.broadcast %649 : vector<8x1xf32> to vector<8x8xf32>
    %651 = arith.mulf %646, %650 : vector<8x8xf32>
    %652 = arith.truncf %651 : vector<8x8xf32> to vector<8x8xbf16>
    %cst_200 = arith.constant dense<0.000000e+00> : vector<8x32xf32>
    %653 = tpu.matmul %652, %638, %cst_200 {dimension_numbers = #tpu.dot_dimension_numbers<[1], [0], [0], [1], [0, 0, 1, 1], [], []>} : vector<8x8xbf16>, vector<8x32xbf16>, vector<8x32xf32> -> vector<8x32xf32>
    %654 = arith.truncf %653 : vector<8x32xf32> to vector<8x32xbf16>
    %cst_201 = arith.constant dense<0.000000e+00> : vector<8x32xf32>
    %655 = tpu.matmul %654, %26, %cst_201 {dimension_numbers = #tpu.dot_dimension_numbers<[1], [0], [0], [1], [0, 0, 1, 1], [], []>} : vector<8x32xbf16>, vector<32x32xbf16>, vector<8x32xf32> -> vector<8x32xf32>
    %656 = arith.addf %25, %655 : vector<8x32xf32>
    %657 = vector.extract_strided_slice %624 {offsets = [0, 32], sizes = [8, 32], strides = [1, 1]} : vector<8x128xbf16> to vector<8x32xbf16>
    %658 = vector.extract_strided_slice %625 {offsets = [0, 32], sizes = [8, 32], strides = [1, 1]} : vector<8x128xbf16> to vector<8x32xbf16>
    %659 = vector.extract_strided_slice %626 {offsets = [0, 32], sizes = [8, 32], strides = [1, 1]} : vector<8x128xbf16> to vector<8x32xbf16>
    %cst_202 = arith.constant dense<0.000000e+00> : vector<8x8xf32>
    %660 = tpu.matmul %657, %658, %cst_202 {dimension_numbers = #tpu.dot_dimension_numbers<[1], [1], [0], [0], [0, 0, 1, 0], [], []>} : vector<8x32xbf16>, vector<8x32xbf16>, vector<8x8xf32> -> vector<8x8xf32>
    %cst_203 = arith.constant -1.000000e+09 : f32
    %661 = vector.broadcast %cst_203 : f32 to vector<8x8xf32>
    %662 = arith.select %635, %661, %660 : vector<8x8xi1>, vector<8x8xf32>
    %cst_204 = arith.constant dense<0xFF800000> : vector<8xf32>
    %663 = vector.multi_reduction <maximumf>, %662, %cst_204 [1] : vector<8x8xf32> to vector<8xf32>
    %664 = vector.shape_cast %663 : vector<8xf32> to vector<8x1xf32>
    %665 = vector.broadcast %664 : vector<8x1xf32> to vector<8x8xf32>
    %666 = arith.subf %662, %665 : vector<8x8xf32>
    %667 = math.exp %666 : vector<8x8xf32>
    %cst_205 = arith.constant dense<0.000000e+00> : vector<8xf32>
    %668 = vector.multi_reduction <add>, %667, %cst_205 [1] : vector<8x8xf32> to vector<8xf32>
    %669 = vector.shape_cast %668 : vector<8xf32> to vector<8x1xf32>
    %670 = tpu.reciprocal %669 {approx = true} : vector<8x1xf32> -> vector<8x1xf32>
    %671 = vector.broadcast %670 : vector<8x1xf32> to vector<8x8xf32>
    %672 = arith.mulf %667, %671 : vector<8x8xf32>
    %673 = arith.truncf %672 : vector<8x8xf32> to vector<8x8xbf16>
    %cst_206 = arith.constant dense<0.000000e+00> : vector<8x32xf32>
    %674 = tpu.matmul %673, %659, %cst_206 {dimension_numbers = #tpu.dot_dimension_numbers<[1], [0], [0], [1], [0, 0, 1, 1], [], []>} : vector<8x8xbf16>, vector<8x32xbf16>, vector<8x32xf32> -> vector<8x32xf32>
    %675 = arith.truncf %674 : vector<8x32xf32> to vector<8x32xbf16>
    %cst_207 = arith.constant dense<0.000000e+00> : vector<8x32xf32>
    %676 = tpu.matmul %675, %27, %cst_207 {dimension_numbers = #tpu.dot_dimension_numbers<[1], [0], [0], [1], [0, 0, 1, 1], [], []>} : vector<8x32xbf16>, vector<32x32xbf16>, vector<8x32xf32> -> vector<8x32xf32>
    %677 = arith.addf %656, %676 : vector<8x32xf32>
    %678 = vector.extract_strided_slice %624 {offsets = [0, 64], sizes = [8, 32], strides = [1, 1]} : vector<8x128xbf16> to vector<8x32xbf16>
    %679 = vector.extract_strided_slice %625 {offsets = [0, 64], sizes = [8, 32], strides = [1, 1]} : vector<8x128xbf16> to vector<8x32xbf16>
    %680 = vector.extract_strided_slice %626 {offsets = [0, 64], sizes = [8, 32], strides = [1, 1]} : vector<8x128xbf16> to vector<8x32xbf16>
    %cst_208 = arith.constant dense<0.000000e+00> : vector<8x8xf32>
    %681 = tpu.matmul %678, %679, %cst_208 {dimension_numbers = #tpu.dot_dimension_numbers<[1], [1], [0], [0], [0, 0, 1, 0], [], []>} : vector<8x32xbf16>, vector<8x32xbf16>, vector<8x8xf32> -> vector<8x8xf32>
    %cst_209 = arith.constant -1.000000e+09 : f32
    %682 = vector.broadcast %cst_209 : f32 to vector<8x8xf32>
    %683 = arith.select %635, %682, %681 : vector<8x8xi1>, vector<8x8xf32>
    %cst_210 = arith.constant dense<0xFF800000> : vector<8xf32>
    %684 = vector.multi_reduction <maximumf>, %683, %cst_210 [1] : vector<8x8xf32> to vector<8xf32>
    %685 = vector.shape_cast %684 : vector<8xf32> to vector<8x1xf32>
    %686 = vector.broadcast %685 : vector<8x1xf32> to vector<8x8xf32>
    %687 = arith.subf %683, %686 : vector<8x8xf32>
    %688 = math.exp %687 : vector<8x8xf32>
    %cst_211 = arith.constant dense<0.000000e+00> : vector<8xf32>
    %689 = vector.multi_reduction <add>, %688, %cst_211 [1] : vector<8x8xf32> to vector<8xf32>
    %690 = vector.shape_cast %689 : vector<8xf32> to vector<8x1xf32>
    %691 = tpu.reciprocal %690 {approx = true} : vector<8x1xf32> -> vector<8x1xf32>
    %692 = vector.broadcast %691 : vector<8x1xf32> to vector<8x8xf32>
    %693 = arith.mulf %688, %692 : vector<8x8xf32>
    %694 = arith.truncf %693 : vector<8x8xf32> to vector<8x8xbf16>
    %cst_212 = arith.constant dense<0.000000e+00> : vector<8x32xf32>
    %695 = tpu.matmul %694, %680, %cst_212 {dimension_numbers = #tpu.dot_dimension_numbers<[1], [0], [0], [1], [0, 0, 1, 1], [], []>} : vector<8x8xbf16>, vector<8x32xbf16>, vector<8x32xf32> -> vector<8x32xf32>
    %696 = arith.truncf %695 : vector<8x32xf32> to vector<8x32xbf16>
    %cst_213 = arith.constant dense<0.000000e+00> : vector<8x32xf32>
    %697 = tpu.matmul %696, %28, %cst_213 {dimension_numbers = #tpu.dot_dimension_numbers<[1], [0], [0], [1], [0, 0, 1, 1], [], []>} : vector<8x32xbf16>, vector<32x32xbf16>, vector<8x32xf32> -> vector<8x32xf32>
    %698 = arith.addf %677, %697 : vector<8x32xf32>
    %699 = vector.extract_strided_slice %624 {offsets = [0, 96], sizes = [8, 32], strides = [1, 1]} : vector<8x128xbf16> to vector<8x32xbf16>
    %700 = vector.extract_strided_slice %625 {offsets = [0, 96], sizes = [8, 32], strides = [1, 1]} : vector<8x128xbf16> to vector<8x32xbf16>
    %701 = vector.extract_strided_slice %626 {offsets = [0, 96], sizes = [8, 32], strides = [1, 1]} : vector<8x128xbf16> to vector<8x32xbf16>
    %cst_214 = arith.constant dense<0.000000e+00> : vector<8x8xf32>
    %702 = tpu.matmul %699, %700, %cst_214 {dimension_numbers = #tpu.dot_dimension_numbers<[1], [1], [0], [0], [0, 0, 1, 0], [], []>} : vector<8x32xbf16>, vector<8x32xbf16>, vector<8x8xf32> -> vector<8x8xf32>
    %cst_215 = arith.constant -1.000000e+09 : f32
    %703 = vector.broadcast %cst_215 : f32 to vector<8x8xf32>
    %704 = arith.select %635, %703, %702 : vector<8x8xi1>, vector<8x8xf32>
    %cst_216 = arith.constant dense<0xFF800000> : vector<8xf32>
    %705 = vector.multi_reduction <maximumf>, %704, %cst_216 [1] : vector<8x8xf32> to vector<8xf32>
    %706 = vector.shape_cast %705 : vector<8xf32> to vector<8x1xf32>
    %707 = vector.broadcast %706 : vector<8x1xf32> to vector<8x8xf32>
    %708 = arith.subf %704, %707 : vector<8x8xf32>
    %709 = math.exp %708 : vector<8x8xf32>
    %cst_217 = arith.constant dense<0.000000e+00> : vector<8xf32>
    %710 = vector.multi_reduction <add>, %709, %cst_217 [1] : vector<8x8xf32> to vector<8xf32>
    %711 = vector.shape_cast %710 : vector<8xf32> to vector<8x1xf32>
    %712 = tpu.reciprocal %711 {approx = true} : vector<8x1xf32> -> vector<8x1xf32>
    %713 = vector.broadcast %712 : vector<8x1xf32> to vector<8x8xf32>
    %714 = arith.mulf %709, %713 : vector<8x8xf32>
    %715 = arith.truncf %714 : vector<8x8xf32> to vector<8x8xbf16>
    %cst_218 = arith.constant dense<0.000000e+00> : vector<8x32xf32>
    %716 = tpu.matmul %715, %701, %cst_218 {dimension_numbers = #tpu.dot_dimension_numbers<[1], [0], [0], [1], [0, 0, 1, 1], [], []>} : vector<8x8xbf16>, vector<8x32xbf16>, vector<8x32xf32> -> vector<8x32xf32>
    %717 = arith.truncf %716 : vector<8x32xf32> to vector<8x32xbf16>
    %cst_219 = arith.constant dense<0.000000e+00> : vector<8x32xf32>
    %718 = tpu.matmul %717, %29, %cst_219 {dimension_numbers = #tpu.dot_dimension_numbers<[1], [0], [0], [1], [0, 0, 1, 1], [], []>} : vector<8x32xbf16>, vector<32x32xbf16>, vector<8x32xf32> -> vector<8x32xf32>
    %719 = arith.addf %698, %718 : vector<8x32xf32>
    %c0_220 = arith.constant 0 : index
    %c0_221 = arith.constant 0 : index
    %c192 = arith.constant 192 : index
    %720 = vector.load %arg10[%c0_220, %c0_221, %c192] : memref<1x8x256xf32, #tpu.memory_space<vmem>>, vector<1x8x32xf32>
    %721 = vector.shape_cast %720 : vector<1x8x32xf32> to vector<8x32xf32>
    %722 = vector.shape_cast %719 : vector<8x32xf32> to vector<1x8x32xf32>
    tpu.vector_store %arg10[%c0_220, %c0_221, %c192], %722 {strides = array<i32>} : memref<1x8x256xf32, #tpu.memory_space<vmem>>, vector<1x8x32xf32>,
    %723 = vector.extract_strided_slice %14 {offsets = [56, 0], sizes = [8, 128], strides = [1, 1]} : vector<64x128xbf16> to vector<8x128xbf16>
    %724 = vector.extract_strided_slice %16 {offsets = [56, 0], sizes = [8, 128], strides = [1, 1]} : vector<64x128xbf16> to vector<8x128xbf16>
    %725 = vector.extract_strided_slice %18 {offsets = [56, 0], sizes = [8, 128], strides = [1, 1]} : vector<64x128xbf16> to vector<8x128xbf16>
    %726 = vector.extract_strided_slice %20 {offsets = [56, 0], sizes = [8, 1], strides = [1, 1]} : vector<64x1xf32> to vector<8x1xf32>
    %cst_222 = arith.constant 0.000000e+00 : f32
    %727 = vector.broadcast %cst_222 : f32 to vector<8x1xf32>
    %728 = arith.cmpf oeq, %726, %727 : vector<8x1xf32>
    %729 = vector.extract_strided_slice %22 {offsets = [0, 56], sizes = [1, 8], strides = [1, 1]} : vector<1x64xf32> to vector<1x8xf32>
    %cst_223 = arith.constant 0.000000e+00 : f32
    %730 = vector.broadcast %cst_223 : f32 to vector<1x8xf32>
    %731 = arith.cmpf oeq, %729, %730 : vector<1x8xf32>
    %732 = vector.broadcast %728 : vector<8x1xi1> to vector<8x8xi1>
    %733 = vector.broadcast %731 : vector<1x8xi1> to vector<8x8xi1>
    %734 = arith.ori %732, %733 : vector<8x8xi1>
    %735 = vector.extract_strided_slice %723 {offsets = [0, 0], sizes = [8, 32], strides = [1, 1]} : vector<8x128xbf16> to vector<8x32xbf16>
    %736 = vector.extract_strided_slice %724 {offsets = [0, 0], sizes = [8, 32], strides = [1, 1]} : vector<8x128xbf16> to vector<8x32xbf16>
    %737 = vector.extract_strided_slice %725 {offsets = [0, 0], sizes = [8, 32], strides = [1, 1]} : vector<8x128xbf16> to vector<8x32xbf16>
    %cst_224 = arith.constant dense<0.000000e+00> : vector<8x8xf32>
    %738 = tpu.matmul %735, %736, %cst_224 {dimension_numbers = #tpu.dot_dimension_numbers<[1], [1], [0], [0], [0, 0, 1, 0], [], []>} : vector<8x32xbf16>, vector<8x32xbf16>, vector<8x8xf32> -> vector<8x8xf32>
    %cst_225 = arith.constant -1.000000e+09 : f32
    %739 = vector.broadcast %cst_225 : f32 to vector<8x8xf32>
    %740 = arith.select %734, %739, %738 : vector<8x8xi1>, vector<8x8xf32>
    %cst_226 = arith.constant dense<0xFF800000> : vector<8xf32>
    %741 = vector.multi_reduction <maximumf>, %740, %cst_226 [1] : vector<8x8xf32> to vector<8xf32>
    %742 = vector.shape_cast %741 : vector<8xf32> to vector<8x1xf32>
    %743 = vector.broadcast %742 : vector<8x1xf32> to vector<8x8xf32>
    %744 = arith.subf %740, %743 : vector<8x8xf32>
    %745 = math.exp %744 : vector<8x8xf32>
    %cst_227 = arith.constant dense<0.000000e+00> : vector<8xf32>
    %746 = vector.multi_reduction <add>, %745, %cst_227 [1] : vector<8x8xf32> to vector<8xf32>
    %747 = vector.shape_cast %746 : vector<8xf32> to vector<8x1xf32>
    %748 = tpu.reciprocal %747 {approx = true} : vector<8x1xf32> -> vector<8x1xf32>
    %749 = vector.broadcast %748 : vector<8x1xf32> to vector<8x8xf32>
    %750 = arith.mulf %745, %749 : vector<8x8xf32>
    %751 = arith.truncf %750 : vector<8x8xf32> to vector<8x8xbf16>
    %cst_228 = arith.constant dense<0.000000e+00> : vector<8x32xf32>
    %752 = tpu.matmul %751, %737, %cst_228 {dimension_numbers = #tpu.dot_dimension_numbers<[1], [0], [0], [1], [0, 0, 1, 1], [], []>} : vector<8x8xbf16>, vector<8x32xbf16>, vector<8x32xf32> -> vector<8x32xf32>
    %753 = arith.truncf %752 : vector<8x32xf32> to vector<8x32xbf16>
    %cst_229 = arith.constant dense<0.000000e+00> : vector<8x32xf32>
    %754 = tpu.matmul %753, %26, %cst_229 {dimension_numbers = #tpu.dot_dimension_numbers<[1], [0], [0], [1], [0, 0, 1, 1], [], []>} : vector<8x32xbf16>, vector<32x32xbf16>, vector<8x32xf32> -> vector<8x32xf32>
    %755 = arith.addf %25, %754 : vector<8x32xf32>
    %756 = vector.extract_strided_slice %723 {offsets = [0, 32], sizes = [8, 32], strides = [1, 1]} : vector<8x128xbf16> to vector<8x32xbf16>
    %757 = vector.extract_strided_slice %724 {offsets = [0, 32], sizes = [8, 32], strides = [1, 1]} : vector<8x128xbf16> to vector<8x32xbf16>
    %758 = vector.extract_strided_slice %725 {offsets = [0, 32], sizes = [8, 32], strides = [1, 1]} : vector<8x128xbf16> to vector<8x32xbf16>
    %cst_230 = arith.constant dense<0.000000e+00> : vector<8x8xf32>
    %759 = tpu.matmul %756, %757, %cst_230 {dimension_numbers = #tpu.dot_dimension_numbers<[1], [1], [0], [0], [0, 0, 1, 0], [], []>} : vector<8x32xbf16>, vector<8x32xbf16>, vector<8x8xf32> -> vector<8x8xf32>
    %cst_231 = arith.constant -1.000000e+09 : f32
    %760 = vector.broadcast %cst_231 : f32 to vector<8x8xf32>
    %761 = arith.select %734, %760, %759 : vector<8x8xi1>, vector<8x8xf32>
    %cst_232 = arith.constant dense<0xFF800000> : vector<8xf32>
    %762 = vector.multi_reduction <maximumf>, %761, %cst_232 [1] : vector<8x8xf32> to vector<8xf32>
    %763 = vector.shape_cast %762 : vector<8xf32> to vector<8x1xf32>
    %764 = vector.broadcast %763 : vector<8x1xf32> to vector<8x8xf32>
    %765 = arith.subf %761, %764 : vector<8x8xf32>
    %766 = math.exp %765 : vector<8x8xf32>
    %cst_233 = arith.constant dense<0.000000e+00> : vector<8xf32>
    %767 = vector.multi_reduction <add>, %766, %cst_233 [1] : vector<8x8xf32> to vector<8xf32>
    %768 = vector.shape_cast %767 : vector<8xf32> to vector<8x1xf32>
    %769 = tpu.reciprocal %768 {approx = true} : vector<8x1xf32> -> vector<8x1xf32>
    %770 = vector.broadcast %769 : vector<8x1xf32> to vector<8x8xf32>
    %771 = arith.mulf %766, %770 : vector<8x8xf32>
    %772 = arith.truncf %771 : vector<8x8xf32> to vector<8x8xbf16>
    %cst_234 = arith.constant dense<0.000000e+00> : vector<8x32xf32>
    %773 = tpu.matmul %772, %758, %cst_234 {dimension_numbers = #tpu.dot_dimension_numbers<[1], [0], [0], [1], [0, 0, 1, 1], [], []>} : vector<8x8xbf16>, vector<8x32xbf16>, vector<8x32xf32> -> vector<8x32xf32>
    %774 = arith.truncf %773 : vector<8x32xf32> to vector<8x32xbf16>
    %cst_235 = arith.constant dense<0.000000e+00> : vector<8x32xf32>
    %775 = tpu.matmul %774, %27, %cst_235 {dimension_numbers = #tpu.dot_dimension_numbers<[1], [0], [0], [1], [0, 0, 1, 1], [], []>} : vector<8x32xbf16>, vector<32x32xbf16>, vector<8x32xf32> -> vector<8x32xf32>
    %776 = arith.addf %755, %775 : vector<8x32xf32>
    %777 = vector.extract_strided_slice %723 {offsets = [0, 64], sizes = [8, 32], strides = [1, 1]} : vector<8x128xbf16> to vector<8x32xbf16>
    %778 = vector.extract_strided_slice %724 {offsets = [0, 64], sizes = [8, 32], strides = [1, 1]} : vector<8x128xbf16> to vector<8x32xbf16>
    %779 = vector.extract_strided_slice %725 {offsets = [0, 64], sizes = [8, 32], strides = [1, 1]} : vector<8x128xbf16> to vector<8x32xbf16>
    %cst_236 = arith.constant dense<0.000000e+00> : vector<8x8xf32>
    %780 = tpu.matmul %777, %778, %cst_236 {dimension_numbers = #tpu.dot_dimension_numbers<[1], [1], [0], [0], [0, 0, 1, 0], [], []>} : vector<8x32xbf16>, vector<8x32xbf16>, vector<8x8xf32> -> vector<8x8xf32>
    %cst_237 = arith.constant -1.000000e+09 : f32
    %781 = vector.broadcast %cst_237 : f32 to vector<8x8xf32>
    %782 = arith.select %734, %781, %780 : vector<8x8xi1>, vector<8x8xf32>
    %cst_238 = arith.constant dense<0xFF800000> : vector<8xf32>
    %783 = vector.multi_reduction <maximumf>, %782, %cst_238 [1] : vector<8x8xf32> to vector<8xf32>
    %784 = vector.shape_cast %783 : vector<8xf32> to vector<8x1xf32>
    %785 = vector.broadcast %784 : vector<8x1xf32> to vector<8x8xf32>
    %786 = arith.subf %782, %785 : vector<8x8xf32>
    %787 = math.exp %786 : vector<8x8xf32>
    %cst_239 = arith.constant dense<0.000000e+00> : vector<8xf32>
    %788 = vector.multi_reduction <add>, %787, %cst_239 [1] : vector<8x8xf32> to vector<8xf32>
    %789 = vector.shape_cast %788 : vector<8xf32> to vector<8x1xf32>
    %790 = tpu.reciprocal %789 {approx = true} : vector<8x1xf32> -> vector<8x1xf32>
    %791 = vector.broadcast %790 : vector<8x1xf32> to vector<8x8xf32>
    %792 = arith.mulf %787, %791 : vector<8x8xf32>
    %793 = arith.truncf %792 : vector<8x8xf32> to vector<8x8xbf16>
    %cst_240 = arith.constant dense<0.000000e+00> : vector<8x32xf32>
    %794 = tpu.matmul %793, %779, %cst_240 {dimension_numbers = #tpu.dot_dimension_numbers<[1], [0], [0], [1], [0, 0, 1, 1], [], []>} : vector<8x8xbf16>, vector<8x32xbf16>, vector<8x32xf32> -> vector<8x32xf32>
    %795 = arith.truncf %794 : vector<8x32xf32> to vector<8x32xbf16>
    %cst_241 = arith.constant dense<0.000000e+00> : vector<8x32xf32>
    %796 = tpu.matmul %795, %28, %cst_241 {dimension_numbers = #tpu.dot_dimension_numbers<[1], [0], [0], [1], [0, 0, 1, 1], [], []>} : vector<8x32xbf16>, vector<32x32xbf16>, vector<8x32xf32> -> vector<8x32xf32>
    %797 = arith.addf %776, %796 : vector<8x32xf32>
    %798 = vector.extract_strided_slice %723 {offsets = [0, 96], sizes = [8, 32], strides = [1, 1]} : vector<8x128xbf16> to vector<8x32xbf16>
    %799 = vector.extract_strided_slice %724 {offsets = [0, 96], sizes = [8, 32], strides = [1, 1]} : vector<8x128xbf16> to vector<8x32xbf16>
    %800 = vector.extract_strided_slice %725 {offsets = [0, 96], sizes = [8, 32], strides = [1, 1]} : vector<8x128xbf16> to vector<8x32xbf16>
    %cst_242 = arith.constant dense<0.000000e+00> : vector<8x8xf32>
    %801 = tpu.matmul %798, %799, %cst_242 {dimension_numbers = #tpu.dot_dimension_numbers<[1], [1], [0], [0], [0, 0, 1, 0], [], []>} : vector<8x32xbf16>, vector<8x32xbf16>, vector<8x8xf32> -> vector<8x8xf32>
    %cst_243 = arith.constant -1.000000e+09 : f32
    %802 = vector.broadcast %cst_243 : f32 to vector<8x8xf32>
    %803 = arith.select %734, %802, %801 : vector<8x8xi1>, vector<8x8xf32>
    %cst_244 = arith.constant dense<0xFF800000> : vector<8xf32>
    %804 = vector.multi_reduction <maximumf>, %803, %cst_244 [1] : vector<8x8xf32> to vector<8xf32>
    %805 = vector.shape_cast %804 : vector<8xf32> to vector<8x1xf32>
    %806 = vector.broadcast %805 : vector<8x1xf32> to vector<8x8xf32>
    %807 = arith.subf %803, %806 : vector<8x8xf32>
    %808 = math.exp %807 : vector<8x8xf32>
    %cst_245 = arith.constant dense<0.000000e+00> : vector<8xf32>
    %809 = vector.multi_reduction <add>, %808, %cst_245 [1] : vector<8x8xf32> to vector<8xf32>
    %810 = vector.shape_cast %809 : vector<8xf32> to vector<8x1xf32>
    %811 = tpu.reciprocal %810 {approx = true} : vector<8x1xf32> -> vector<8x1xf32>
    %812 = vector.broadcast %811 : vector<8x1xf32> to vector<8x8xf32>
    %813 = arith.mulf %808, %812 : vector<8x8xf32>
    %814 = arith.truncf %813 : vector<8x8xf32> to vector<8x8xbf16>
    %cst_246 = arith.constant dense<0.000000e+00> : vector<8x32xf32>
    %815 = tpu.matmul %814, %800, %cst_246 {dimension_numbers = #tpu.dot_dimension_numbers<[1], [0], [0], [1], [0, 0, 1, 1], [], []>} : vector<8x8xbf16>, vector<8x32xbf16>, vector<8x32xf32> -> vector<8x32xf32>
    %816 = arith.truncf %815 : vector<8x32xf32> to vector<8x32xbf16>
    %cst_247 = arith.constant dense<0.000000e+00> : vector<8x32xf32>
    %817 = tpu.matmul %816, %29, %cst_247 {dimension_numbers = #tpu.dot_dimension_numbers<[1], [0], [0], [1], [0, 0, 1, 1], [], []>} : vector<8x32xbf16>, vector<32x32xbf16>, vector<8x32xf32> -> vector<8x32xf32>
    %818 = arith.addf %797, %817 : vector<8x32xf32>
    %c0_248 = arith.constant 0 : index
    %c0_249 = arith.constant 0 : index
    %c224 = arith.constant 224 : index
    %819 = vector.load %arg10[%c0_248, %c0_249, %c224] : memref<1x8x256xf32, #tpu.memory_space<vmem>>, vector<1x8x32xf32>
    %820 = vector.shape_cast %819 : vector<1x8x32xf32> to vector<8x32xf32>
    %821 = vector.shape_cast %818 : vector<8x32xf32> to vector<1x8x32xf32>
    tpu.vector_store %arg10[%c0_248, %c0_249, %c224], %821 {strides = array<i32>} : memref<1x8x256xf32, #tpu.memory_space<vmem>>, vector<1x8x32xf32>,
    return
  }
  func.func @transform_0(%arg0: i32) -> (i32, i32, i32) {
    %c0_i32 = arith.constant 0 : i32
    %c0_i32_0 = arith.constant 0 : i32
    %c0_i32_1 = arith.constant 0 : i32
    return %arg0, %c0_i32, %c0_i32_0 : i32, i32, i32
  }
  func.func @transform_1(%arg0: i32) -> (i32, i32, i32) {
    %c0_i32 = arith.constant 0 : i32
    %c0_i32_0 = arith.constant 0 : i32
    %c0_i32_1 = arith.constant 0 : i32
    return %arg0, %c0_i32, %c0_i32_0 : i32, i32, i32
  }
  func.func @transform_2(%arg0: i32) -> (i32, i32, i32) {
    %c0_i32 = arith.constant 0 : i32
    %c0_i32_0 = arith.constant 0 : i32
    %c0_i32_1 = arith.constant 0 : i32
    return %arg0, %c0_i32, %c0_i32_0 : i32, i32, i32
  }
  func.func @transform_3(%arg0: i32) -> (i32, i32, i32) {
    %c0_i32 = arith.constant 0 : i32
    %c0_i32_0 = arith.constant 0 : i32
    %c0_i32_1 = arith.constant 0 : i32
    return %arg0, %c0_i32, %c0_i32_0 : i32, i32, i32
  }
  func.func @transform_4(%arg0: i32) -> (i32, i32) {
    %c0_i32 = arith.constant 0 : i32
    %c0_i32_0 = arith.constant 0 : i32
    %c0_i32_1 = arith.constant 0 : i32
    return %c0_i32, %c0_i32_0 : i32, i32
  }
  func.func @transform_5(%arg0: i32) -> (i32, i32) {
    %c0_i32 = arith.constant 0 : i32
    %c0_i32_0 = arith.constant 0 : i32
    %c0_i32_1 = arith.constant 0 : i32
    return %c0_i32, %c0_i32_0 : i32, i32
  }
  func.func @transform_6(%arg0: i32) -> (i32, i32) {
    %c0_i32 = arith.constant 0 : i32
    %c0_i32_0 = arith.constant 0 : i32
    %c0_i32_1 = arith.constant 0 : i32
    return %c0_i32, %c0_i32_0 : i32, i32
  }
  func.func @transform_7(%arg0: i32) -> (i32, i32) {
    %c0_i32 = arith.constant 0 : i32
    %c0_i32_0 = arith.constant 0 : i32
    %c0_i32_1 = arith.constant 0 : i32
    return %c0_i32, %c0_i32_0 : i32, i32
  }
  func.func @transform_8(%arg0: i32) -> (i32, i32) {
    %c0_i32 = arith.constant 0 : i32
    %c0_i32_0 = arith.constant 0 : i32
    %c0_i32_1 = arith.constant 0 : i32
    return %c0_i32, %c0_i32_0 : i32, i32
  }
  func.func @transform_9(%arg0: i32) -> (i32, i32, i32) {
    %c0_i32 = arith.constant 0 : i32
    %c0_i32_0 = arith.constant 0 : i32
    %c0_i32_1 = arith.constant 0 : i32
    return %arg0, %c0_i32, %c0_i32_0 : i32, i32, i32
  }
}

</mosaic_0001>

<bundles_post_ra>
// kernel: tpu_custom_call.1
= control target key start
LH: loop header
LB: loop body
LE: loop exit
PB: predicated region body
PF: predicated region fallthrough
CT: control target
= control target key end

     0   :  { %vm99_vm0 = vcmask 261120   ;;  %s8648_s0 = inlined_call_operand.vmem [shape: f32[1,64,32], index: 0, kind: input, shape index: {}]   ;;  %s8649_s1 = inlined_call_operand.vmem [shape: f32[1,64,32], index: 1, kind: input, shape index: {}]   ;;  %s8650_s2 = inlined_call_operand.vmem [shape: f32[1,64,1], index: 2, kind: input, shape index: {}]   ;;  %s8651_s3 = inlined_call_operand.vmem [shape: f32[1,1,64], index: 3, kind: input, shape index: {}]   ;;  %s8652_s4 = inlined_call_operand.vmem [shape: bf16[32,128], index: 4, kind: input, shape index: {}]   ;;  %s8653_s5 = inlined_call_operand.vmem [shape: bf16[32,128], index: 5, kind: input, shape index: {}]   ;;  %s8654_s6 = inlined_call_operand.vmem [shape: bf16[32,128], index: 6, kind: input, shape index: {}]   ;;  %s8655_s7 = inlined_call_operand.vmem [shape: bf16[128,32], index: 7, kind: input, shape index: {}]   ;;  %s8656_s8 = inlined_call_operand.vmem [shape: f32[1,32], index: 8, kind: input, shape index: {}]   ;;  %s8657_s9 = inlined_call_operand.hbm [shape: f32[1,8,256], index: 9, kind: output, shape index: {}]  }
   0x1   :  { %v6994_v0 = vld [vmem:[%s8652_s4] sm:$0xff]   ;;  %v6995_v1 = vld [vmem:[%s8652_s4 + $0x8] sm:$0xff]   ;;  %v40_v4 = vld [vmem:[%s8648_s0 + $0x30] sm:$0xff] }
   0x2   :  { %6865 = vmatprep.subr.bf16.mxu1 %v6994_v0  ;;  %v38_v2 = vld [vmem:[%s8648_s0 + $0x20] sm:$0xff]  ;;  %v39_v3 = vld [vmem:[%s8648_s0 + $0x28] sm:$0xff]  ;;  %6189 = vmatprep.subr.bf16.mxu0 %v6994_v0  ;;  %v41_v6 = vld [vmem:[%s8648_s0 + $0x38] sm:$0xff] }
   0x3   :  { %6867 = vmatpush3.bf16.msra.mxu1 %v6994_v0  ;;  %v44_v5 = vpack.c.bf16 %v39_v3, %v38_v2  ;;  %6190 = vmatpush3.bf16.msra.mxu0 %v6994_v0  ;;  %v6996_v7 = vld [vmem:[%s8653_s5] sm:$0xff]   ;;  %v47_v9 = vld [vmem:[%s8649_s1 + $0x8] sm:$0xff]  ;;  %v45_v10 = vpack.c.bf16 %v41_v6, %v40_v4  ;;  %v36_v15 = vld [vmem:[%s8648_s0 + $0x10] sm:$0xff] }
   0x4   :  { %6866 = vmatprep.subr.bf16.mxu1 %v6995_v1  ;;  %6191 = vmatprep.subr.bf16.mxu0 %v6995_v1  ;;  %v46_v8 = vld [vmem:[%s8649_s1] sm:$0xff]  ;;  %v6997_v11 = vld [vmem:[%s8653_s5 + $0x8] sm:$0xff]   ;;  %v37_v16 = vld [vmem:[%s8648_s0 + $0x18] sm:$0xff] }
   0x5   :  { %6197 = vmatprep.mubr.msk.bf16.mxu1 %vm99_vm0, %v44_v5  ;;  %v34_v12 = vld [vmem:[%s8648_s0] sm:$0xff]  ;;  %v54_v13 = vpack.c.bf16 %v47_v9, %v46_v8  ;;  %v35_v14 = vld [vmem:[%s8648_s0 + $0x8] sm:$0xff]  ;;  %v43_v18 = vpack.c.bf16 %v37_v16, %v36_v15  ;;  %v48_v19 = vld [vmem:[%s8649_s1 + $0x10] sm:$0xff] }
   0x6   :  { %v42_v17 = vpack.c.bf16 %v35_v14, %v34_v12  ;;  %v49_v20 = vld [vmem:[%s8649_s1 + $0x18] sm:$0xff] }
   0x7   :  { %6868 = vmatpush3.bf16.msra.mxu1 %v6995_v1  ;;  %6192 = vmatpush3.bf16.msra.mxu0 %v6995_v1  ;;  %v7294_v21 = vpack.c.bf16 %v49_v20, %v48_v19 }
   0x8   :  { %6201 = vmatprep.subr.bf16.mxu1 %v6996_v7  ;;  %6193 = vmatprep.mubr.msk.bf16.mxu0 %vm99_vm0, %v42_v17 }
   0xa   :  { %6198 = vmatmul.mubr.msk.bf16.vlgmr.msra.gmra.mrb[0].mxu1 %vm99_vm0, %v45_v10  ;;  %6194 = vmatmul.mubr.msk.bf16.vlgmr.msra.gmra.mrb[0].mxu0 %vm99_vm0, %v43_v18 }
   0xb   :  { %6202 = vmatpush3.bf16.msra.mxu1 %v6996_v7  ;;  %6205 = vmatprep.mubr.msk.bf16.mxu1 %vm99_vm0, %v54_v13 }
   0xc   :  { %6203 = vmatprep.subr.bf16.mxu1 %v6997_v11  ;;  %6217 = vmatprep.mubr.msk.bf16.mxu0 %vm99_vm0, %v54_v13 }
   0xd   :  { %14 = vsyncpa [#allocation3], 0  ;;  %v50_v22 = vld [vmem:[%s8649_s1 + $0x20] sm:$0xff]  ;;  %v51_v23 = vld [vmem:[%s8649_s1 + $0x28] sm:$0xff]  ;;  %v7171_v28 = vmov 0.0   ;;  %vm7172_vm1 = vmmov 0   ;;  %v387_v3 = vlaneseq }
   0xe   :  { %v7304_v24 = vpack.c.bf16 %v51_v23, %v50_v22  ;;  %v52_v25 = vld [vmem:[%s8649_s1 + $0x30] sm:$0xff]  ;;  %v53_v26 = vld [vmem:[%s8649_s1 + $0x38] sm:$0xff]  ;;  %v363_v29 = vld [vmem:[%s8650_s2] sm:$0xff]  ;;  %v7173_v30 = vmov 0   ;;  %s7174_s1 = smov 96   ;;  %vm440_vm7 = vcmask 64512  }
   0xf   :  { %6204 = vmatpush3.bf16.msra.mxu1 %v6997_v11  ;;  %v57_v27 = vpack.c.bf16 %v53_v26, %v52_v25  ;;  %6992 = vset.pattern.permute.xlu0 %v7173_v30  ;;  %vm379_vm2 = vcmp.eq.f32.partialorder %v363_v29, 0.0  ;;  %v6998_v1 = vld [vmem:[%s8654_s6] sm:$0xff]   ;;  %v6999_v2 = vld [vmem:[%s8654_s6 + $0x8] sm:$0xff]   ;;  %v388_v5 = vshrl.u32 %v387_v3, 7  ;;  %vm456_vm8 = vcmask 1043456   ;;  %s7176_s15 = smov 32  }
  0x10   :  { %6225 = vmatprep.subr.bf16.mxu1 %v7171_v28  ;;  %6993 = vset.pattern.permute.xlu1 %v7173_v30  ;;  %v381_v31 = vsel %vm379_vm2, 1, %v7173_v30  ;;  %v371_v4 = vld [vmem:[%s8651_s3] sm:$0x1]  ;;  %s7175_s3 = smov 64   ;;  %s7177_s16 = smov 8   ;;  %vm1125_vm11 = vcmask 130112  }
  0x11   :  { %383 = vperm.xlu0 %6992, %v381_v31   ;;  %6213 = vmatprep.subr.bf16.mxu0 %v6998_v1  ;;  %vm380_vm3 = vcmp.eq.f32.partialorder %v371_v4, 0.0  ;;  %v389_v6 = vsub.s32 0, %v388_v5  ;;  %v7000_v31 = vld [vmem:[%s8655_s7] sm:$0xff]   ;;  %s7178_s17 = smov 120   ;;  %s7179_s19 = smov 16   ;;  %vm1802_vm2 = vcmask 195712  }
  0x12   :  { %6206 = vmatmul.mubr.msk.bf16.vlgmr.msra.gmra.mrb[4].mxu1 %vm99_vm0, %v7294_v21  ;;  %6214 = vmatpush3.bf16.msra.mxu0 %v6998_v1  ;;  %v386_v7 = vsel %vm380_vm3, 1, %v7173_v30  ;;  %s7180_s20 = smov 112   ;;  %s7181_s22 = smov 24  }
  0x13   :  { %6209 = vmatprep.mubr.msk.bf16.mxu1 %vm99_vm0, %v7304_v24  ;;  %6215 = vmatprep.subr.bf16.mxu0 %v6999_v2  ;;  %v7367_v8 = vrot.slane %v386_v7, %v389_v6  ;;  %s7182_s23 = smov 104   ;;  %s7183_s28 = smov 40  }
  0x14   :  { %s7184_s29 = smov 88   ;;  %s7188_s25 = smov 72  }
  0x15   :  { %vm391_vm4 = vcmp.eq.s32.totalorder %v7367_v8, 1 }
  0x16   :  { %6216 = vmatpush3.bf16.msra.mxu0 %v6999_v2 }
  0x17   :  { %6237 = vmatprep.subr.bf16.mxu0 %v7171_v28 }
  0x19   :  { %6218 = vmatmul.mubr.msk.bf16.vlgmr.msra.gmra.mrb[4].mxu0 %vm99_vm0, %v7294_v21 }
  0x1a   :  { %6210 = vmatmul.mubr.msk.bf16.gmra.mrb[8].mxu1 %vm99_vm0, %v57_v27  ;;  %6221 = vmatprep.mubr.msk.bf16.mxu0 %vm99_vm0, %v7304_v24 }
  0x1b   :  { %6227 = vmatprep.mubr.msk.bf16.mxu1 %vm7172_vm1, %v7171_v28  ;;  %6238 = vmatpush3.bf16.msra.mxu0 %v7000_v31 }
  0x1c   :  { %6239 = vmatprep.subr.bf16.mxu0 %v7171_v28 }
  0x21   :  { %6222 = vmatmul.mubr.msk.bf16.gmra.mrb[8].mxu0 %vm99_vm0, %v57_v27 }
  0x22   :  { %6241 = vmatprep.mubr.msk.bf16.mxu0 %vm7172_vm1, %v7171_v28 }
  0x90   :  { %v384_v9 = vpop.permute.xlu0 %383 }
  0x91   :  { %vm385_vm5 = vcmp.eq.s32.totalorder %v384_v9, 1 }
  0x92   :  { %vm7372_vm6 = vmor %vm385_vm5, %vm391_vm4 }
  0xdd   :  { %v6199_v32 = vpop.f32.mrb[0].mxu1  ;;  %v6195_v37 = vpop.f32.mrb[0].mxu0 }
  0xde   :  { %v162_v33 = vpop.f32.mrb[1].mxu1  ;;  %v183_v34 = vmul.f32 0.17677669, %v6199_v32  ;;  %v179_v40 = vmul.f32 0.17677669, %v6195_v37  ;;  %v146_v41 = vpop.f32.mrb[1].mxu0 }
  0xdf   :  { %v181_v35 = vmul.f32 0.17677669, %v162_v33  ;;  %v6200_v36 = vpop.f32.mrb[2].mxu1  ;;  %v177_v43 = vmul.f32 0.17677669, %v146_v41  ;;  %v6196_v44 = vpop.f32.mrb[2].mxu0 }
  0xe0   :  { %v184_v38 = vmul.f32 0.17677669, %v6200_v36  ;;  %v165_v39 = vpop.f32.mrb[3].mxu1  ;;  %v180_v46 = vmul.f32 0.17677669, %v6196_v44  ;;  %v149_v47 = vpop.f32.mrb[3].mxu0 }
  0xe1   :  { %v182_v42 = vmul.f32 0.17677669, %v165_v39  ;;  %v178_v49 = vmul.f32 0.17677669, %v149_v47  ;;  %v7001_v44 = vld [vmem:[%s8655_s7 + $0x8] sm:$0xff]  }
  0xe2   :  { %v7324_v45 = vpack.c.bf16 %v184_v38, %v183_v34  ;;  %v7328_v50 = vpack.c.bf16 %v180_v46, %v179_v40  ;;  %6240 = vmatpush3.bf16.msra.mxu0 %v7001_v44 }
  0xe3   :  { %v7326_v48 = vpack.c.bf16 %v182_v42, %v181_v35  ;;  %v7330_v52 = vpack.c.bf16 %v178_v49, %v177_v43  ;;  %6251 = vmatprep.subr.bf16.mxu0 %v7171_v28 }
  0xe5   :  { %v6207_v51 = vpop.f32.mrb[4].mxu1 }
  0xe6   :  { %v247_v53 = vpop.f32.mrb[5].mxu1 }
  0xe7   :  { %v6208_v54 = vpop.f32.mrb[6].mxu1 }
  0xe8   :  { %v7332_v55 = vpack.c.bf16 %v6208_v54, %v6207_v51  ;;  %v250_v56 = vpop.f32.mrb[7].mxu1 }
  0xe9   :  { %v7334_v57 = vpack.c.bf16 %v250_v56, %v247_v53 }
  0xeb   :  { %561 = vrot.lane.b32.xlu1 %v7334_v57, %s7174_s1  ;;  %v397_v58 = vsel %vm99_vm0, %v7334_v57, 0 }
  0xec   :  { %6226 = vmatpush3.bf16.xpose.msra.mxu1 %v397_v58  ;;  %v6219_v17 = vpop.f32.mrb[4].mxu0 }
  0xed   :  { %6231 = vmatprep.subr.bf16.mxu1 %v7171_v28  ;;  %v6211_v59 = vpop.f32.mrb[8].mxu1  ;;  %v328_v23 = vpop.f32.mrb[5].mxu0 }
  0xee   :  { %v263_v60 = vpop.f32.mrb[9].mxu1  ;;  %v6220_v24 = vpop.f32.mrb[6].mxu0 }
  0xef   :  { %v6212_v61 = vpop.f32.mrb[10].mxu1  ;;  %v7380_v25 = vpack.c.bf16 %v6220_v24, %v6219_v17  ;;  %v331_v26 = vpop.f32.mrb[7].mxu0 }
  0xf0   :  { %v7345_v62 = vpack.c.bf16 %v6212_v61, %v6211_v59  ;;  %v266_v63 = vpop.f32.mrb[11].mxu1  ;;  %v7382_v27 = vpack.c.bf16 %v331_v26, %v328_v23  ;;  %v7453_v23 = vrot.slane %v7330_v52, 4 }
  0xf1   :  { %v7347_v0 = vpack.c.bf16 %v266_v63, %v263_v60 }
  0xf2   :  { %v458_v29 = vsel %vm456_vm8, %v7382_v27, 0 }
  0xf3   :  { %6228 = vmatmul.mubr.msk.bf16.vlgmr.msra.gmra.mrb[12].mxu1 %vm99_vm0, %v7330_v52 }
  0xf4   :  { %6233 = vmatprep.mubr.msk.bf16.mxu1 %vm7172_vm1, %v7171_v28  ;;  %6232 = vmatpush3.bf16.msra.mxu1 %v458_v29 }
  0xf5   :  { %6245 = vmatprep.subr.bf16.mxu1 %v7171_v28 }
 0x15d   :  { %v562_v32 = vpop.permute.xlu1 %561 }
 0x15e   :  { %v567_v38 = vsel %vm99_vm0, %v562_v32, 0 }
 0x1c6   :  { %v433_v11 = vpop.f32.mrb[12].mxu1 }
 0x1c7   :  { %v439_v12 = vsel %vm7372_vm6, -1e+09, %v433_v11  ;;  %v6229_v13 = vpop.f32.mrb[13].mxu1  ;;  %v364_v11 = vld [vmem:[%s8650_s2 + $0x8] sm:$0xff] }
 0x1c8   :  { %v441_v14 = vsel %vm440_vm7, %v439_v12, -inf  ;;  %v436_v15 = vpop.f32.mrb[14].mxu1  ;;  %vm1065_vm9 = vcmp.eq.f32.partialorder %v364_v11, 0.0 }
 0x1c9   :  { %442 = vmax.xlane.f32.xlu0 %v441_v14  ;;  %v6230_v16 = vpop.f32.mrb[15].mxu1 }
 0x1df   :  { %791 = vrot.lane.b32.xlu0 %v7382_v27, %s7175_s3 }
 0x256   :  { %v443_v18 = vpop.xlane.xlu0 %442 }
 0x257   :  { %v444_v19 = vsub.f32 %v439_v12, %v443_v18  ;;  %v1066_v12 = vsel %vm1065_vm9, 1, %v7173_v30  ;;  %vm2483_vm9 = vcmask 261312  }
 0x259   :  { %v445_v20 = vmul.f32 1.442695, %v444_v19  ;;  %v7441_v19 = vrot.slane %v7334_v57, 4 }
 0x25a   :  { %v792_v41 = vpop.permute.xlu0 %791 }
 0x25b   :  { %7008 = vpow2.f32 %v445_v20  ;;  %v797_v42 = vsel %vm456_vm8, %v792_v41, 0 }
 0x265   :  { %v7009_v21 = vpop.eup %7008 }
 0x266   :  { %v447_v22 = vsel %vm440_vm7, %v7009_v21, 0.0 }
 0x267   :  { %448 = vadd.xlane.f32.xlu1 %v447_v22  ;;  %v7450_v22 = vrot.slane %v7382_v27, 4 }
 0x278   :  { %558 = vrot.lane.b32.xlu1 %v7330_v52, %s7174_s1 }
 0x27c   :  { %730 = vrot.lane.b32.xlu1 %v7334_v57, %s7175_s3 }
 0x280   :  { %728 = vrot.lane.b32.xlu1 %v7330_v52, %s7175_s3 }
 0x2f4   :  { %v449_v33 = vpop.xlane.xlu1 %448 }
 0x2f5   :  { %7010 = vrcp.f32 %v449_v33 }
 0x2f8   :  { %v559_v37 = vpop.permute.xlu1 %558 }
 0x2fc   :  { %v731_v39 = vpop.permute.xlu1 %730 }
 0x2fd   :  { %v736_v40 = vsel %vm99_vm0, %v731_v39, 0 }
 0x2ff   :  { %v7011_v34 = vpop.eup %7010 }
 0x300   :  { %v451_v35 = vmul.f32 %v7011_v34, %v7009_v21  ;;  %v729_v43 = vpop.permute.xlu1 %728  ;;  %v1078_v21 = vsel %vm99_vm0, %v7441_v19, 0 }
 0x302   :  { %v452_v36 = vpack.c.bf16 %v451_v35, %v451_v35 }
 0x304   :  { %6234 = vmatmul.mubr.msk.bf16.vlgmr.msra.gmra.mrb[16].mxu1 %vm440_vm7, %v452_v36 }
 0x305   :  { %6246 = vmatpush3.bf16.xpose.msra.mxu1 %v567_v38  ;;  %6247 = vmatprep.mubr.msk.bf16.mxu1 %vm7172_vm1, %v7171_v28 }
 0x306   :  { %6265 = vmatprep.subr.bf16.mxu1 %v7171_v28 }
 0x30c   :  { %6248 = vmatmul.mubr.msk.bf16.vlgmr.msra.gmra.mrb[20].mxu1 %vm99_vm0, %v559_v37 }
 0x30d   :  { %6266 = vmatpush3.bf16.xpose.msra.mxu1 %v736_v40  ;;  %6267 = vmatprep.mubr.msk.bf16.mxu1 %vm7172_vm1, %v7171_v28  ;;  %v5842_v40 = vld [vmem:[%s8656_s8] ss:$0 sm:$0xff] }
 0x30e   :  { %6271 = vmatprep.subr.bf16.mxu1 %v7171_v28 }
 0x314   :  { %6268 = vmatmul.mubr.msk.bf16.vlgmr.msra.gmra.mrb[24].mxu1 %vm99_vm0, %v729_v43 }
 0x315   :  { %6272 = vmatpush3.bf16.msra.mxu1 %v797_v42  ;;  %6273 = vmatprep.mubr.msk.bf16.mxu1 %vm7172_vm1, %v7171_v28 }
 0x316   :  { %6285 = vmatprep.subr.bf16.mxu1 %v7171_v28 }
 0x3d7   :  { %v494_v46 = vpop.f32.mrb[16].mxu1 }
 0x3d8   :  { %v500_v47 = vpack.c.bf16 %v494_v46, %v494_v46  ;;  %v6235_v49 = vpop.f32.mrb[17].mxu1 }
 0x3d9   :  { %v497_v51 = vpop.f32.mrb[18].mxu1 }
 0x3da   :  { %v6236_v53 = vpop.f32.mrb[19].mxu1  ;;  %6242 = vmatmul.mubr.msk.bf16.vlgmr.msra.gmra.mrb[12].mxu0 %vm99_vm0, %v500_v47 }
 0x3db   :  { %6253 = vmatprep.mubr.msk.bf16.mxu0 %vm7172_vm1, %v7171_v28 }
 0x3df   :  { %v7421_v54 = vpop.f32.mrb[20].mxu1 }
 0x3e0   :  { %v6249_v56 = vpop.f32.mrb[21].mxu1 }
 0x3e1   :  { %v606_v58 = vpop.f32.mrb[22].mxu1 }
 0x3e2   :  { %v6250_v59 = vpop.f32.mrb[23].mxu1 }
 0x3e7   :  { %v772_v60 = vpop.f32.mrb[24].mxu1 }
 0x3e8   :  { %v778_v61 = vsel %vm7372_vm6, -1e+09, %v772_v60  ;;  %v6269_v63 = vpop.f32.mrb[25].mxu1 }
 0x3e9   :  { %v775_v1 = vpop.f32.mrb[26].mxu1  ;;  %v779_v2 = vsel %vm440_vm7, %v778_v61, -inf }
 0x3ea   :  { %780 = vmax.xlane.f32.xlu1 %v779_v2  ;;  %v6270_v3 = vpop.f32.mrb[27].mxu1 }
 0x477   :  { %v781_v4 = vpop.xlane.xlu1 %780 }
 0x478   :  { %v782_v5 = vsub.f32 %v778_v61, %v781_v4 }
 0x47a   :  { %v783_v6 = vmul.f32 1.442695, %v782_v5 }
 0x47c   :  { %7012 = vpow2.f32 %v783_v6 }
 0x486   :  { %v7013_v7 = vpop.eup %7012 }
 0x487   :  { %v785_v9 = vsel %vm440_vm7, %v7013_v7, 0.0 }
 0x488   :  { %786 = vadd.xlane.f32.xlu0 %v785_v9 }
 0x49e   :  { %898 = vrot.lane.b32.xlu0 %v7334_v57, %s7176_s15  ;;  %v1150_v57 = vsel %vm456_vm8, %v7450_v22, 0 }
 0x4a2   :  { %896 = vrot.lane.b32.xlu0 %v7330_v52, %s7176_s15 }
 0x4a6   :  { %1068 = vperm.xlu0 %6992, %v1066_v12  }
 0x515   :  { %v787_v13 = vpop.xlane.xlu0 %786 }
 0x516   :  { %7014 = vrcp.f32 %v787_v13 }
 0x519   :  { %v899_v16 = vpop.permute.xlu0 %898 }
 0x51a   :  { %v904_v18 = vsel %vm99_vm0, %v899_v16, 0 }
 0x51d   :  { %v897_v20 = vpop.permute.xlu0 %896 }
 0x520   :  { %v7015_v14 = vpop.eup %7014 }
 0x521   :  { %v789_v15 = vmul.f32 %v7015_v14, %v7013_v7 }
 0x523   :  { %v790_v17 = vpack.c.bf16 %v789_v15, %v789_v15 }
 0x525   :  { %6274 = vmatmul.mubr.msk.bf16.vlgmr.msra.gmra.mrb[28].mxu1 %vm440_vm7, %v790_v17  ;;  %v1069_v39 = vpop.permute.xlu0 %1068 }
 0x526   :  { %6286 = vmatpush3.bf16.xpose.msra.mxu1 %v904_v18  ;;  %6287 = vmatprep.mubr.msk.bf16.mxu1 %vm7172_vm1, %v7171_v28  ;;  %vm1070_vm10 = vcmp.eq.s32.totalorder %v1069_v39, 1 }
 0x527   :  { %6305 = vmatprep.subr.bf16.mxu1 %v7171_v28  ;;  %vm7469_vm12 = vmor %vm1070_vm10, %vm391_vm4 }
 0x52d   :  { %6288 = vmatmul.mubr.msk.bf16.vlgmr.msra.gmra.mrb[32].mxu1 %vm99_vm0, %v897_v20 }
 0x52e   :  { %6306 = vmatpush3.bf16.xpose.msra.mxu1 %v1078_v21  ;;  %6307 = vmatprep.mubr.msk.bf16.mxu1 %vm7172_vm1, %v7171_v28 }
 0x52f   :  { %6311 = vmatprep.subr.bf16.mxu1 %v7171_v28 }
 0x535   :  { %6308 = vmatmul.mubr.msk.bf16.vlgmr.msra.gmra.mrb[36].mxu1 %vm99_vm0, %v7453_v23 }
 0x536   :  { %6312 = vmatpush3.bf16.msra.mxu1 %v1150_v57  ;;  %6313 = vmatprep.mubr.msk.bf16.mxu1 %vm7172_vm1, %v7171_v28 }
 0x537   :  { %6325 = vmatprep.subr.bf16.mxu1 %v7171_v28 }
 0x5f8   :  { %v7462_v24 = vpop.f32.mrb[28].mxu1 }
 0x5f9   :  { %v6275_v26 = vpop.f32.mrb[29].mxu1 }
 0x5fa   :  { %v836_v29 = vpop.f32.mrb[30].mxu1 }
 0x5fb   :  { %v6276_v31 = vpop.f32.mrb[31].mxu1 }
 0x600   :  { %v7464_v32 = vpop.f32.mrb[32].mxu1 }
 0x601   :  { %v6289_v52 = vpop.f32.mrb[33].mxu1 }
 0x602   :  { %v943_v33 = vpop.f32.mrb[34].mxu1 }
 0x603   :  { %v6290_v34 = vpop.f32.mrb[35].mxu1 }
 0x608   :  { %v1114_v35 = vpop.f32.mrb[36].mxu1 }
 0x609   :  { %1121 = vrot.lane.b32.xlu1 %v1114_v35, %s7177_s16  ;;  %v6309_v36 = vpop.f32.mrb[37].mxu1 }
 0x60a   :  { %v1117_v37 = vpop.f32.mrb[38].mxu1 }
 0x60b   :  { %v6310_v38 = vpop.f32.mrb[39].mxu1 }
 0x67b   :  { %v1122_v41 = vpop.permute.xlu1 %1121 }
 0x67c   :  { %v1124_v42 = vsel %vm7469_vm12, -1e+09, %v1122_v41 }
 0x67d   :  { %v1126_v43 = vsel %vm1125_vm11, %v1124_v42, -inf }
 0x67e   :  { %1127 = vmax.xlane.f32.xlu0 %v1126_v43 }
 0x70b   :  { %v1128_v44 = vpop.xlane.xlu0 %1127 }
 0x70c   :  { %v1129_v46 = vsub.f32 %v1124_v42, %v1128_v44 }
 0x70e   :  { %v1130_v47 = vmul.f32 1.442695, %v1129_v46  ;;  %v1755_v46 = vsel %vm99_vm0, %v7332_v55, 0 }
 0x710   :  { %7016 = vpow2.f32 %v1130_v47  ;;  %v1826_v47 = vsel %vm456_vm8, %v7380_v25, 0 }
 0x71a   :  { %v7017_v49 = vpop.eup %7016 }
 0x71b   :  { %1133 = vrot.lane.b32.xlu1 %v7017_v49, %s7178_s17 }
 0x78d   :  { %v1134_v51 = vpop.permute.xlu1 %1133 }
 0x78e   :  { %v1136_v53 = vsel %vm440_vm7, %v1134_v51, 0.0 }
 0x78f   :  { %1137 = vadd.xlane.f32.xlu1 %v1136_v53 }
 0x7a0   :  { %1237 = vrot.lane.b32.xlu1 %v7453_v23, %s7174_s1 }
 0x81c   :  { %v1138_v56 = vpop.xlane.xlu1 %1137 }
 0x81d   :  { %7018 = vrcp.f32 %v1138_v56 }
 0x820   :  { %v1238_v3 = vpop.permute.xlu1 %1237 }
 0x827   :  { %v7019_v58 = vpop.eup %7018 }
 0x828   :  { %v1140_v59 = vmul.f32 %v7019_v58, %v7017_v49  ;;  %v365_v49 = vld [vmem:[%s8650_s2 + $0x10] sm:$0xff] }
 0x829   :  { %vm1744_vm13 = vcmp.eq.f32.partialorder %v365_v49, 0.0 }
 0x82a   :  { %v1141_v60 = vpack.c.bf16 %v1140_v59, %v1140_v59  ;;  %v1745_v51 = vsel %vm1744_vm13, 1, %v7173_v30 }
 0x82c   :  { %1143 = vrot.lane.b32.xlu0 %v1141_v60, %s7178_s17 }
 0x830   :  { %1239 = vrot.lane.b32.xlu0 %v7441_v19, %s7174_s1 }
 0x834   :  { %1406 = vrot.lane.b32.xlu0 %v7441_v19, %s7175_s3 }
 0x838   :  { %1404 = vrot.lane.b32.xlu0 %v7453_v23, %s7175_s3 }
 0x89e   :  { %v1144_v61 = vpop.permute.xlu0 %1143 }
 0x89f   :  { %6314 = vmatmul.mubr.msk.bf16.vlgmr.msra.gmra.mrb[40].mxu1 %vm440_vm7, %v1144_v61 }
 0x8a0   :  { %6327 = vmatprep.mubr.msk.bf16.mxu1 %vm7172_vm1, %v7171_v28 }
 0x8a2   :  { %v1240_v63 = vpop.permute.xlu0 %1239 }
 0x8a3   :  { %v1245_v1 = vsel %vm99_vm0, %v1240_v63, 0 }
 0x8a4   :  { %6326 = vmatpush3.bf16.xpose.msra.mxu1 %v1245_v1 }
 0x8a5   :  { %6345 = vmatprep.subr.bf16.mxu1 %v7171_v28 }
 0x8a6   :  { %v1407_v2 = vpop.permute.xlu0 %1406 }
 0x8a7   :  { %v1412_v4 = vsel %vm99_vm0, %v1407_v2, 0 }
 0x8aa   :  { %v1405_v5 = vpop.permute.xlu0 %1404 }
 0x8ab   :  { %6328 = vmatmul.mubr.msk.bf16.vlgmr.msra.gmra.mrb[44].mxu1 %vm99_vm0, %v1238_v3 }
 0x8ac   :  { %6346 = vmatpush3.bf16.xpose.msra.mxu1 %v1412_v4  ;;  %6347 = vmatprep.mubr.msk.bf16.mxu1 %vm7172_vm1, %v7171_v28 }
 0x8ad   :  { %6351 = vmatprep.subr.bf16.mxu1 %v7171_v28 }
 0x8b3   :  { %6348 = vmatmul.mubr.msk.bf16.vlgmr.msra.gmra.mrb[48].mxu1 %vm99_vm0, %v1405_v5 }
 0x8b4   :  { %6353 = vmatprep.mubr.msk.bf16.mxu1 %vm7172_vm1, %v7171_v28 }
 0x972   :  { %v7500_v6 = vpop.f32.mrb[40].mxu1 }
 0x973   :  { %v6315_v7 = vpop.f32.mrb[41].mxu1 }
 0x974   :  { %v1189_v9 = vpop.f32.mrb[42].mxu1 }
 0x975   :  { %v6316_v11 = vpop.f32.mrb[43].mxu1 }
 0x97e   :  { %v7502_v12 = vpop.f32.mrb[44].mxu1 }
 0x97f   :  { %v6329_v13 = vpop.f32.mrb[45].mxu1 }
 0x980   :  { %v1284_v14 = vpop.f32.mrb[46].mxu1 }
 0x981   :  { %v6330_v15 = vpop.f32.mrb[47].mxu1 }
 0x986   :  { %v1448_v16 = vpop.f32.mrb[48].mxu1 }
 0x987   :  { %1455 = vrot.lane.b32.xlu0 %v1448_v16, %s7177_s16  ;;  %v6349_v17 = vpop.f32.mrb[49].mxu1 }
 0x988   :  { %v1451_v18 = vpop.f32.mrb[50].mxu1 }
 0x989   :  { %v6350_v20 = vpop.f32.mrb[51].mxu1 }
 0x9f9   :  { %v1456_v21 = vpop.permute.xlu0 %1455 }
 0x9fa   :  { %v1458_v57 = vsel %vm7469_vm12, -1e+09, %v1456_v21 }
 0x9fb   :  { %v1459_v26 = vsel %vm1125_vm11, %v1458_v57, -inf }
 0x9fc   :  { %1460 = vmax.xlane.f32.xlu0 %v1459_v26 }
 0xa12   :  { %1478 = vrot.lane.b32.xlu0 %v7450_v22, %s7175_s3 }
 0xa16   :  { %1573 = vrot.lane.b32.xlu0 %v7441_v19, %s7176_s15 }
 0xa1a   :  { %1571 = vrot.lane.b32.xlu0 %v7453_v23, %s7176_s15 }
 0xa89   :  { %v1461_v29 = vpop.xlane.xlu0 %1460 }
 0xa8a   :  { %v1462_v31 = vsub.f32 %v1458_v57, %v1461_v29 }
 0xa8c   :  { %v1463_v52 = vmul.f32 1.442695, %v1462_v31 }
 0xa8d   :  { %v1479_v33 = vpop.permute.xlu0 %1478 }
 0xa8e   :  { %7020 = vpow2.f32 %v1463_v52  ;;  %v1484_v34 = vsel %vm456_vm8, %v1479_v33, 0 }
 0xa8f   :  { %6352 = vmatpush3.bf16.msra.mxu1 %v1484_v34 }
 0xa90   :  { %6365 = vmatprep.subr.bf16.mxu1 %v7171_v28 }
 0xa91   :  { %v1574_v41 = vpop.permute.xlu0 %1573 }
 0xa92   :  { %v1579_v43 = vsel %vm99_vm0, %v1574_v41, 0 }
 0xa95   :  { %v1572_v44 = vpop.permute.xlu0 %1571 }
 0xa98   :  { %v7021_v35 = vpop.eup %7020 }
 0xa99   :  { %1466 = vrot.lane.b32.xlu1 %v7021_v35, %s7178_s17 }
 0xb0b   :  { %v1467_v36 = vpop.permute.xlu1 %1466 }
 0xb0c   :  { %v1469_v37 = vsel %vm440_vm7, %v1467_v36, 0.0 }
 0xb0d   :  { %1470 = vadd.xlane.f32.xlu1 %v1469_v37 }
 0xb9a   :  { %v1471_v19 = vpop.xlane.xlu1 %1470 }
 0xb9b   :  { %7022 = vrcp.f32 %v1471_v19 }
 0xba5   :  { %v7023_v23 = vpop.eup %7022 }
 0xba6   :  { %v1473_v38 = vmul.f32 %v7023_v23, %v7021_v35 }
 0xba8   :  { %v1474_v39 = vpack.c.bf16 %v1473_v38, %v1473_v38 }
 0xbaa   :  { %1476 = vrot.lane.b32.xlu1 %v1474_v39, %s7178_s17 }
 0xbae   :  { %1747 = vperm.xlu1 %6993, %v1745_v51  }
 0xc1c   :  { %v1477_v42 = vpop.permute.xlu1 %1476 }
 0xc1d   :  { %6354 = vmatmul.mubr.msk.bf16.vlgmr.msra.gmra.mrb[52].mxu1 %vm440_vm7, %v1477_v42 }
 0xc1e   :  { %6366 = vmatpush3.bf16.xpose.msra.mxu1 %v1579_v43  ;;  %6367 = vmatprep.mubr.msk.bf16.mxu1 %vm7172_vm1, %v7171_v28 }
 0xc1f   :  { %6385 = vmatprep.subr.bf16.mxu1 %v7171_v28 }
 0xc25   :  { %6368 = vmatmul.mubr.msk.bf16.vlgmr.msra.gmra.mrb[56].mxu1 %vm99_vm0, %v1572_v44 }
 0xc26   :  { %6386 = vmatpush3.bf16.xpose.msra.mxu1 %v1755_v46  ;;  %6387 = vmatprep.mubr.msk.bf16.mxu1 %vm7172_vm1, %v7171_v28 }
 0xc27   :  { %6391 = vmatprep.subr.bf16.mxu1 %v7171_v28 }
 0xc2d   :  { %6388 = vmatmul.mubr.msk.bf16.vlgmr.msra.gmra.mrb[60].mxu1 %vm99_vm0, %v7328_v50  ;;  %v1748_v7 = vpop.permute.xlu1 %1747 }
 0xc2e   :  { %6392 = vmatpush3.bf16.msra.mxu1 %v1826_v47  ;;  %6393 = vmatprep.mubr.msk.bf16.mxu1 %vm7172_vm1, %v7171_v28  ;;  %vm1749_vm14 = vcmp.eq.s32.totalorder %v1748_v7, 1 }
 0xc2f   :  { %6405 = vmatprep.subr.bf16.mxu1 %v7171_v28  ;;  %vm7548_vm15 = vmor %vm1749_vm14, %vm391_vm4 }
 0xcf0   :  { %v7541_v53 = vpop.f32.mrb[52].mxu1 }
 0xcf1   :  { %v6355_v56 = vpop.f32.mrb[53].mxu1 }
 0xcf2   :  { %v1523_v58 = vpop.f32.mrb[54].mxu1 }
 0xcf3   :  { %v6356_v59 = vpop.f32.mrb[55].mxu1 }
 0xcf8   :  { %v7543_v60 = vpop.f32.mrb[56].mxu1 }
 0xcf9   :  { %v6369_v61 = vpop.f32.mrb[57].mxu1 }
 0xcfa   :  { %v1618_v63 = vpop.f32.mrb[58].mxu1 }
 0xcfb   :  { %v6370_v1 = vpop.f32.mrb[59].mxu1 }
 0xd00   :  { %v1791_v2 = vpop.f32.mrb[60].mxu1 }
 0xd01   :  { %1798 = vrot.lane.b32.xlu0 %v1791_v2, %s7179_s19  ;;  %v6389_v3 = vpop.f32.mrb[61].mxu1 }
 0xd02   :  { %v1794_v4 = vpop.f32.mrb[62].mxu1 }
 0xd03   :  { %v6390_v5 = vpop.f32.mrb[63].mxu1 }
 0xd73   :  { %v1799_v11 = vpop.permute.xlu0 %1798 }
 0xd74   :  { %v1801_v13 = vsel %vm7548_vm15, -1e+09, %v1799_v11 }
 0xd75   :  { %v1803_v14 = vsel %vm1802_vm2, %v1801_v13, -inf }
 0xd76   :  { %1804 = vmax.xlane.f32.xlu1 %v1803_v14 }
 0xe03   :  { %v1805_v15 = vpop.xlane.xlu1 %1804 }
 0xe04   :  { %v1806_v16 = vsub.f32 %v1801_v13, %v1805_v15  ;;  %v366_v15 = vld [vmem:[%s8650_s2 + $0x18] sm:$0xff] }
 0xe05   :  { %vm2423_vm3 = vcmp.eq.f32.partialorder %v366_v15, 0.0 }
 0xe06   :  { %v1807_v17 = vmul.f32 1.442695, %v1806_v16 }
 0xe08   :  { %7024 = vpow2.f32 %v1807_v17 }
 0xe12   :  { %v7025_v18 = vpop.eup %7024 }
 0xe13   :  { %1810 = vrot.lane.b32.xlu0 %v7025_v18, %s7180_s20 }
 0xe85   :  { %v1811_v20 = vpop.permute.xlu0 %1810 }
 0xe86   :  { %v1813_v21 = vsel %vm440_vm7, %v1811_v20, 0.0 }
 0xe87   :  { %1814 = vadd.xlane.f32.xlu0 %v1813_v21 }
 0xe9d   :  { %1917 = vrot.lane.b32.xlu0 %v7332_v55, %s7174_s1 }
 0xea1   :  { %2083 = vrot.lane.b32.xlu0 %v7328_v50, %s7175_s3 }
 0xf14   :  { %v1815_v57 = vpop.xlane.xlu0 %1814 }
 0xf15   :  { %7026 = vrcp.f32 %v1815_v57 }
 0xf18   :  { %v1918_v52 = vpop.permute.xlu0 %1917 }
 0xf19   :  { %v1923_v34 = vsel %vm99_vm0, %v1918_v52, 0  ;;  %v7617_v52 = vrot.slane %v7380_v25, 4 }
 0xf1c   :  { %v2084_v19 = vpop.permute.xlu0 %2083 }
 0xf1f   :  { %v7027_v26 = vpop.eup %7026 }
 0xf20   :  { %v1817_v29 = vmul.f32 %v7027_v26, %v7025_v18  ;;  %v2424_v18 = vsel %vm2423_vm3, 1, %v7173_v30  ;;  %v7608_v26 = vrot.slane %v7332_v55, 4  ;;  %vm8658_vm3 = vcmask 326912  }
 0xf22   :  { %v1818_v31 = vpack.c.bf16 %v1817_v29, %v1817_v29 }
 0xf24   :  { %1820 = vrot.lane.b32.xlu1 %v1818_v31, %s7180_s20  ;;  %v2436_v31 = vsel %vm99_vm0, %v7608_v26, 0 }
 0xf28   :  { %1914 = vrot.lane.b32.xlu1 %v7328_v50, %s7174_s1 }
 0xf2c   :  { %2085 = vrot.lane.b32.xlu1 %v7332_v55, %s7175_s3 }
 0xf96   :  { %v1821_v33 = vpop.permute.xlu1 %1820 }
 0xf97   :  { %6394 = vmatmul.mubr.msk.bf16.vlgmr.msra.gmra.mrb[64].mxu1 %vm440_vm7, %v1821_v33  ;;  %v7620_v33 = vrot.slane %v7328_v50, 4 }
 0xf98   :  { %6406 = vmatpush3.bf16.xpose.msra.mxu1 %v1923_v34  ;;  %6407 = vmatprep.mubr.msk.bf16.mxu1 %vm7172_vm1, %v7171_v28 }
 0xf99   :  { %6425 = vmatprep.subr.bf16.mxu1 %v7171_v28 }
 0xf9a   :  { %v1915_v35 = vpop.permute.xlu1 %1914 }
 0xf9e   :  { %v2086_v36 = vpop.permute.xlu1 %2085 }
 0xf9f   :  { %v2091_v37 = vsel %vm99_vm0, %v2086_v36, 0  ;;  %6408 = vmatmul.mubr.msk.bf16.vlgmr.msra.gmra.mrb[68].mxu1 %vm99_vm0, %v1915_v35 }
 0xfa0   :  { %6426 = vmatpush3.bf16.xpose.msra.mxu1 %v2091_v37  ;;  %6427 = vmatprep.mubr.msk.bf16.mxu1 %vm7172_vm1, %v7171_v28 }
 0xfa1   :  { %6431 = vmatprep.subr.bf16.mxu1 %v7171_v28 }
 0xfa7   :  { %6428 = vmatmul.mubr.msk.bf16.vlgmr.msra.gmra.mrb[72].mxu1 %vm99_vm0, %v2084_v19 }
 0xfa8   :  { %6433 = vmatprep.mubr.msk.bf16.mxu1 %vm7172_vm1, %v7171_v28 }
0x106a   :  { %v7579_v23 = vpop.f32.mrb[64].mxu1 }
0x106b   :  { %v6395_v38 = vpop.f32.mrb[65].mxu1 }
0x106c   :  { %v1865_v39 = vpop.f32.mrb[66].mxu1 }
0x106d   :  { %v6396_v41 = vpop.f32.mrb[67].mxu1 }
0x1072   :  { %v7581_v42 = vpop.f32.mrb[68].mxu1 }
0x1073   :  { %v6409_v43 = vpop.f32.mrb[69].mxu1 }
0x1074   :  { %v1962_v44 = vpop.f32.mrb[70].mxu1 }
0x1075   :  { %v6410_v46 = vpop.f32.mrb[71].mxu1 }
0x107a   :  { %v2127_v47 = vpop.f32.mrb[72].mxu1 }
0x107b   :  { %2134 = vrot.lane.b32.xlu1 %v2127_v47, %s7179_s19  ;;  %v6429_v49 = vpop.f32.mrb[73].mxu1 }
0x107c   :  { %v2130_v51 = vpop.f32.mrb[74].mxu1 }
0x107d   :  { %v6430_v56 = vpop.f32.mrb[75].mxu1 }
0x10ed   :  { %v2135_v58 = vpop.permute.xlu1 %2134 }
0x10ee   :  { %v2137_v59 = vsel %vm7548_vm15, -1e+09, %v2135_v58 }
0x10ef   :  { %v2138_v61 = vsel %vm1802_vm2, %v2137_v59, -inf }
0x10f0   :  { %2139 = vmax.xlane.f32.xlu0 %v2138_v61 }
0x1106   :  { %2157 = vrot.lane.b32.xlu0 %v7380_v25, %s7175_s3 }
0x110a   :  { %2252 = vrot.lane.b32.xlu0 %v7332_v55, %s7176_s15  ;;  %v2508_v55 = vsel %vm456_vm8, %v7617_v52, 0 }
0x110e   :  { %2250 = vrot.lane.b32.xlu0 %v7328_v50, %s7176_s15 }
0x117d   :  { %v2140_v63 = vpop.xlane.xlu0 %2139 }
0x117e   :  { %v2141_v1 = vsub.f32 %v2137_v59, %v2140_v63 }
0x1180   :  { %v2142_v2 = vmul.f32 1.442695, %v2141_v1 }
0x1181   :  { %v2158_v3 = vpop.permute.xlu0 %2157 }
0x1182   :  { %7028 = vpow2.f32 %v2142_v2  ;;  %v2163_v4 = vsel %vm456_vm8, %v2158_v3, 0 }
0x1183   :  { %6432 = vmatpush3.bf16.msra.mxu1 %v2163_v4 }
0x1184   :  { %6445 = vmatprep.subr.bf16.mxu1 %v7171_v28 }
0x1185   :  { %v2253_v20 = vpop.permute.xlu0 %2252 }
0x1186   :  { %v2258_v57 = vsel %vm99_vm0, %v2253_v20, 0 }
0x1189   :  { %v2251_v29 = vpop.permute.xlu0 %2250 }
0x118c   :  { %v7029_v5 = vpop.eup %7028 }
0x118d   :  { %2145 = vrot.lane.b32.xlu1 %v7029_v5, %s7180_s20 }
0x11ff   :  { %v2146_v7 = vpop.permute.xlu1 %2145 }
0x1200   :  { %v2148_v11 = vsel %vm440_vm7, %v2146_v7, 0.0 }
0x1201   :  { %2149 = vadd.xlane.f32.xlu1 %v2148_v11 }
0x128e   :  { %v2150_v13 = vpop.xlane.xlu1 %2149 }
0x128f   :  { %7030 = vrcp.f32 %v2150_v13 }
0x1299   :  { %v7031_v14 = vpop.eup %7030 }
0x129a   :  { %v2152_v16 = vmul.f32 %v7031_v14, %v7029_v5 }
0x129c   :  { %v2153_v17 = vpack.c.bf16 %v2152_v16, %v2152_v16 }
0x129e   :  { %2155 = vrot.lane.b32.xlu1 %v2153_v17, %s7180_s20 }
0x12a2   :  { %2426 = vperm.xlu1 %6993, %v2424_v18  }
0x1310   :  { %v2156_v21 = vpop.permute.xlu1 %2155 }
0x1311   :  { %6434 = vmatmul.mubr.msk.bf16.vlgmr.msra.gmra.mrb[76].mxu1 %vm440_vm7, %v2156_v21 }
0x1312   :  { %6446 = vmatpush3.bf16.xpose.msra.mxu1 %v2258_v57  ;;  %6447 = vmatprep.mubr.msk.bf16.mxu1 %vm7172_vm1, %v7171_v28 }
0x1313   :  { %6465 = vmatprep.subr.bf16.mxu1 %v7171_v28 }
0x1319   :  { %6448 = vmatmul.mubr.msk.bf16.vlgmr.msra.gmra.mrb[80].mxu1 %vm99_vm0, %v2251_v29 }
0x131a   :  { %6466 = vmatpush3.bf16.xpose.msra.mxu1 %v2436_v31  ;;  %6467 = vmatprep.mubr.msk.bf16.mxu1 %vm7172_vm1, %v7171_v28 }
0x131b   :  { %6471 = vmatprep.subr.bf16.mxu1 %v7171_v28 }
0x1321   :  { %6468 = vmatmul.mubr.msk.bf16.vlgmr.msra.gmra.mrb[84].mxu1 %vm99_vm0, %v7620_v33  ;;  %v2427_v47 = vpop.permute.xlu1 %2426 }
0x1322   :  { %6472 = vmatpush3.bf16.msra.mxu1 %v2508_v55  ;;  %6473 = vmatprep.mubr.msk.bf16.mxu1 %vm7172_vm1, %v7171_v28  ;;  %vm2428_vm5 = vcmp.eq.s32.totalorder %v2427_v47, 1 }
0x1323   :  { %6485 = vmatprep.subr.bf16.mxu1 %v7171_v28  ;;  %vm7636_vm10 = vmor %vm2428_vm5, %vm391_vm4 }
0x13e4   :  { %v7629_v34 = vpop.f32.mrb[76].mxu1 }
0x13e5   :  { %v6435_v35 = vpop.f32.mrb[77].mxu1 }
0x13e6   :  { %v2202_v36 = vpop.f32.mrb[78].mxu1 }
0x13e7   :  { %v6436_v37 = vpop.f32.mrb[79].mxu1 }
0x13ec   :  { %v7631_v19 = vpop.f32.mrb[80].mxu1 }
0x13ed   :  { %v6449_v50 = vpop.f32.mrb[81].mxu1 }
0x13ee   :  { %v2297_v38 = vpop.f32.mrb[82].mxu1 }
0x13ef   :  { %v6450_v39 = vpop.f32.mrb[83].mxu1 }
0x13f4   :  { %v2472_v41 = vpop.f32.mrb[84].mxu1 }
0x13f5   :  { %2479 = vrot.lane.b32.xlu0 %v2472_v41, %s7181_s22  ;;  %v6469_v43 = vpop.f32.mrb[85].mxu1 }
0x13f6   :  { %v2475_v44 = vpop.f32.mrb[86].mxu1 }
0x13f7   :  { %v6470_v46 = vpop.f32.mrb[87].mxu1 }
0x1467   :  { %v2480_v51 = vpop.permute.xlu0 %2479 }
0x1468   :  { %v2482_v56 = vsel %vm7636_vm10, -1e+09, %v2480_v51 }
0x1469   :  { %v2484_v58 = vsel %vm2483_vm9, %v2482_v56, -inf }
0x146a   :  { %2485 = vmax.xlane.f32.xlu1 %v2484_v58 }
0x14f7   :  { %v2486_v59 = vpop.xlane.xlu1 %2485 }
0x14f8   :  { %v2487_v61 = vsub.f32 %v2482_v56, %v2486_v59 }
0x14fa   :  { %v2488_v63 = vmul.f32 1.442695, %v2487_v61 }
0x14fc   :  { %7032 = vpow2.f32 %v2488_v63 }
0x1506   :  { %v7033_v1 = vpop.eup %7032 }
0x1507   :  { %2491 = vrot.lane.b32.xlu0 %v7033_v1, %s7182_s23 }
0x1579   :  { %v2492_v2 = vpop.permute.xlu0 %2491 }
0x157a   :  { %v2494_v3 = vsel %vm440_vm7, %v2492_v2, 0.0  ;;  %v367_v2 = vld [vmem:[%s8650_s2 + $0x20] sm:$0xff] }
0x157b   :  { %2495 = vadd.xlane.f32.xlu0 %v2494_v3  ;;  %vm3102_vm13 = vcmp.eq.f32.partialorder %v367_v2, 0.0 }
0x1591   :  { %2597 = vrot.lane.b32.xlu0 %v7608_v26, %s7174_s1 }
0x1595   :  { %2762 = vrot.lane.b32.xlu0 %v7620_v33, %s7175_s3 }
0x1608   :  { %v2496_v4 = vpop.xlane.xlu0 %2495 }
0x1609   :  { %7034 = vrcp.f32 %v2496_v4 }
0x160c   :  { %v2598_v13 = vpop.permute.xlu0 %2597 }
0x160d   :  { %v2603_v15 = vsel %vm99_vm0, %v2598_v13, 0 }
0x1610   :  { %v2763_v20 = vpop.permute.xlu0 %2762 }
0x1613   :  { %v7035_v5 = vpop.eup %7034 }
0x1614   :  { %v2498_v7 = vmul.f32 %v7035_v5, %v7033_v1  ;;  %v3103_v5 = vsel %vm3102_vm13, 1, %v7173_v30 }
0x1616   :  { %v2499_v11 = vpack.c.bf16 %v2498_v7, %v2498_v7 }
0x1618   :  { %2501 = vrot.lane.b32.xlu1 %v2499_v11, %s7182_s23 }
0x161c   :  { %2595 = vrot.lane.b32.xlu1 %v7620_v33, %s7174_s1 }
0x1620   :  { %2764 = vrot.lane.b32.xlu1 %v7608_v26, %s7175_s3 }
0x168a   :  { %v2502_v14 = vpop.permute.xlu1 %2501 }
0x168b   :  { %6474 = vmatmul.mubr.msk.bf16.vlgmr.msra.gmra.mrb[88].mxu1 %vm440_vm7, %v2502_v14 }
0x168c   :  { %6486 = vmatpush3.bf16.xpose.msra.mxu1 %v2603_v15  ;;  %6487 = vmatprep.mubr.msk.bf16.mxu1 %vm7172_vm1, %v7171_v28  ;;  %v3113_v15 = vsel %vm99_vm0, %v7347_v0, 0 }
0x168d   :  { %6505 = vmatprep.subr.bf16.mxu1 %v7171_v28 }
0x168e   :  { %v2596_v16 = vpop.permute.xlu1 %2595 }
0x1692   :  { %v2765_v17 = vpop.permute.xlu1 %2764 }
0x1693   :  { %v2770_v18 = vsel %vm99_vm0, %v2765_v17, 0  ;;  %6488 = vmatmul.mubr.msk.bf16.vlgmr.msra.gmra.mrb[92].mxu1 %vm99_vm0, %v2596_v16 }
0x1694   :  { %6506 = vmatpush3.bf16.xpose.msra.mxu1 %v2770_v18  ;;  %6507 = vmatprep.mubr.msk.bf16.mxu1 %vm7172_vm1, %v7171_v28 }
0x1695   :  { %6511 = vmatprep.subr.bf16.mxu1 %v7171_v28 }
0x169b   :  { %6508 = vmatmul.mubr.msk.bf16.vlgmr.msra.gmra.mrb[96].mxu1 %vm99_vm0, %v2763_v20 }
0x169c   :  { %6513 = vmatprep.mubr.msk.bf16.mxu1 %vm7172_vm1, %v7171_v28 }
0x175e   :  { %v7667_v21 = vpop.f32.mrb[88].mxu1 }
0x175f   :  { %v6475_v57 = vpop.f32.mrb[89].mxu1 }
0x1760   :  { %v2547_v29 = vpop.f32.mrb[90].mxu1 }
0x1761   :  { %v6476_v31 = vpop.f32.mrb[91].mxu1 }
0x1766   :  { %v7669_v55 = vpop.f32.mrb[92].mxu1 }
0x1767   :  { %v6489_v35 = vpop.f32.mrb[93].mxu1 }
0x1768   :  { %v2642_v36 = vpop.f32.mrb[94].mxu1 }
0x1769   :  { %v6490_v37 = vpop.f32.mrb[95].mxu1 }
0x176e   :  { %v2806_v50 = vpop.f32.mrb[96].mxu1 }
0x176f   :  { %2813 = vrot.lane.b32.xlu1 %v2806_v50, %s7181_s22  ;;  %v6509_v38 = vpop.f32.mrb[97].mxu1 }
0x1770   :  { %v2809_v39 = vpop.f32.mrb[98].mxu1 }
0x1771   :  { %v6510_v41 = vpop.f32.mrb[99].mxu1 }
0x17e1   :  { %v2814_v43 = vpop.permute.xlu1 %2813 }
0x17e2   :  { %v2816_v44 = vsel %vm7636_vm10, -1e+09, %v2814_v43 }
0x17e3   :  { %v2817_v46 = vsel %vm2483_vm9, %v2816_v44, -inf }
0x17e4   :  { %2818 = vmax.xlane.f32.xlu0 %v2817_v46 }
0x17fa   :  { %2836 = vrot.lane.b32.xlu0 %v7617_v52, %s7175_s3 }
0x17fe   :  { %2931 = vrot.lane.b32.xlu0 %v7608_v26, %s7176_s15 }
0x1802   :  { %2929 = vrot.lane.b32.xlu0 %v7620_v33, %s7176_s15 }
0x1871   :  { %v2819_v47 = vpop.xlane.xlu0 %2818 }
0x1872   :  { %v2820_v51 = vsub.f32 %v2816_v44, %v2819_v47 }
0x1874   :  { %v2821_v56 = vmul.f32 1.442695, %v2820_v51 }
0x1875   :  { %v2837_v58 = vpop.permute.xlu0 %2836 }
0x1876   :  { %7036 = vpow2.f32 %v2821_v56  ;;  %v2842_v59 = vsel %vm456_vm8, %v2837_v58, 0 }
0x1877   :  { %6512 = vmatpush3.bf16.msra.mxu1 %v2842_v59 }
0x1878   :  { %6525 = vmatprep.subr.bf16.mxu1 %v7171_v28 }
0x1879   :  { %v2932_v7 = vpop.permute.xlu0 %2931 }
0x187a   :  { %v2937_v13 = vsel %vm99_vm0, %v2932_v7, 0 }
0x187d   :  { %v2930_v14 = vpop.permute.xlu0 %2929 }
0x1880   :  { %v7037_v61 = vpop.eup %7036 }
0x1881   :  { %2824 = vrot.lane.b32.xlu1 %v7037_v61, %s7182_s23 }
0x18f3   :  { %v2825_v63 = vpop.permute.xlu1 %2824 }
0x18f4   :  { %v2827_v1 = vsel %vm440_vm7, %v2825_v63, 0.0  ;;  %v6223_v63 = vpop.f32.mrb[8].mxu0 }
0x18f5   :  { %2828 = vadd.xlane.f32.xlu1 %v2827_v1  ;;  %v344_v1 = vpop.f32.mrb[9].mxu0 }
0x1982   :  { %v2829_v26 = vpop.xlane.xlu1 %2828 }
0x1983   :  { %7038 = vrcp.f32 %v2829_v26  ;;  %v6224_v26 = vpop.f32.mrb[10].mxu0 }
0x1984   :  { %v347_v2 = vpop.f32.mrb[11].mxu0 }
0x198d   :  { %v7039_v33 = vpop.eup %7038 }
0x198e   :  { %v2831_v3 = vmul.f32 %v7039_v33, %v7037_v61  ;;  %v7725_v33 = vpack.c.bf16 %v6224_v26, %v6223_v63 }
0x1990   :  { %v2832_v4 = vpack.c.bf16 %v2831_v3, %v2831_v3  ;;  %v7727_v3 = vpack.c.bf16 %v347_v2, %v344_v1 }
0x1992   :  { %2834 = vrot.lane.b32.xlu1 %v2832_v4, %s7182_s23  ;;  %v3184_v4 = vsel %vm456_vm8, %v7727_v3, 0 }
0x1996   :  { %3105 = vperm.xlu1 %6993, %v3103_v5  }
0x1a04   :  { %v2835_v11 = vpop.permute.xlu1 %2834 }
0x1a05   :  { %6514 = vmatmul.mubr.msk.bf16.vlgmr.msra.gmra.mrb[100].mxu1 %vm440_vm7, %v2835_v11 }
0x1a06   :  { %6526 = vmatpush3.bf16.xpose.msra.mxu1 %v2937_v13  ;;  %6527 = vmatprep.mubr.msk.bf16.mxu1 %vm7172_vm1, %v7171_v28 }
0x1a07   :  { %6545 = vmatprep.subr.bf16.mxu1 %v7171_v28 }
0x1a0d   :  { %6528 = vmatmul.mubr.msk.bf16.vlgmr.msra.gmra.mrb[104].mxu1 %vm99_vm0, %v2930_v14 }
0x1a0e   :  { %6546 = vmatpush3.bf16.xpose.msra.mxu1 %v3113_v15  ;;  %6547 = vmatprep.mubr.msk.bf16.mxu1 %vm7172_vm1, %v7171_v28 }
0x1a0f   :  { %6551 = vmatprep.subr.bf16.mxu1 %v7171_v28 }
0x1a15   :  { %6548 = vmatmul.mubr.msk.bf16.vlgmr.msra.gmra.mrb[108].mxu1 %vm99_vm0, %v7326_v48  ;;  %v3106_v39 = vpop.permute.xlu1 %3105 }
0x1a16   :  { %6553 = vmatprep.mubr.msk.bf16.mxu1 %vm7172_vm1, %v7171_v28  ;;  %vm3107_vm14 = vcmp.eq.s32.totalorder %v3106_v39, 1  ;;  %6552 = vmatpush3.bf16.msra.mxu1 %v3184_v4 }
0x1a17   :  { %vm7712_vm5 = vmor %vm3107_vm14, %vm391_vm4  ;;  %6565 = vmatprep.subr.bf16.mxu1 %v7171_v28 }
0x1ad8   :  { %v7705_v16 = vpop.f32.mrb[100].mxu1 }
0x1ad9   :  { %v6515_v17 = vpop.f32.mrb[101].mxu1 }
0x1ada   :  { %v2881_v18 = vpop.f32.mrb[102].mxu1 }
0x1adb   :  { %v6516_v20 = vpop.f32.mrb[103].mxu1 }
0x1ae0   :  { %v7707_v57 = vpop.f32.mrb[104].mxu1 }
0x1ae1   :  { %v6529_v29 = vpop.f32.mrb[105].mxu1 }
0x1ae2   :  { %v2976_v31 = vpop.f32.mrb[106].mxu1 }
0x1ae3   :  { %v6530_v35 = vpop.f32.mrb[107].mxu1 }
0x1ae8   :  { %v3149_v36 = vpop.f32.mrb[108].mxu1 }
0x1ae9   :  { %3156 = vrot.lane.b32.xlu0 %v3149_v36, %s7176_s15  ;;  %v6549_v37 = vpop.f32.mrb[109].mxu1 }
0x1aea   :  { %v3152_v50 = vpop.f32.mrb[110].mxu1 }
0x1aeb   :  { %v6550_v38 = vpop.f32.mrb[111].mxu1 }
0x1b5b   :  { %v3157_v43 = vpop.permute.xlu0 %3156 }
0x1b5c   :  { %v3159_v44 = vsel %vm7712_vm5, -1e+09, %v3157_v43 }
0x1b5d   :  { %v3161_v46 = vsel %vm8658_vm3, %v3159_v44, -inf }
0x1b5e   :  { %3162 = vmax.xlane.f32.xlu1 %v3161_v46 }
0x1beb   :  { %v3163_v47 = vpop.xlane.xlu1 %3162 }
0x1bec   :  { %v3164_v51 = vsub.f32 %v3159_v44, %v3163_v47 }
0x1bee   :  { %v3165_v56 = vmul.f32 1.442695, %v3164_v51 }
0x1bf0   :  { %7040 = vpow2.f32 %v3165_v56 }
0x1bfa   :  { %v7041_v58 = vpop.eup %7040 }
0x1bfb   :  { %3168 = vrot.lane.b32.xlu0 %v7041_v58, %s7174_s1 }
0x1c6d   :  { %v3169_v59 = vpop.permute.xlu0 %3168 }
0x1c6e   :  { %v3171_v61 = vsel %vm440_vm7, %v3169_v59, 0.0 }
0x1c6f   :  { %3172 = vadd.xlane.f32.xlu0 %v3171_v61 }
0x1c85   :  { %3275 = vrot.lane.b32.xlu0 %v7347_v0, %s7174_s1 }
0x1c89   :  { %3441 = vrot.lane.b32.xlu0 %v7326_v48, %s7175_s3 }
0x1cfc   :  { %v3173_v5 = vpop.xlane.xlu0 %3172 }
0x1cfd   :  { %7042 = vrcp.f32 %v3173_v5 }
0x1d00   :  { %v3276_v14 = vpop.permute.xlu0 %3275 }
0x1d01   :  { %v3281_v17 = vsel %vm99_vm0, %v3276_v14, 0 }
0x1d04   :  { %v3442_v31 = vpop.permute.xlu0 %3441 }
0x1d07   :  { %v7043_v7 = vpop.eup %7042 }
0x1d08   :  { %v3175_v11 = vmul.f32 %v7043_v7, %v7041_v58 }
0x1d0a   :  { %v3176_v13 = vpack.c.bf16 %v3175_v11, %v3175_v11 }
0x1d0c   :  { %3178 = vrot.lane.b32.xlu1 %v3176_v13, %s7174_s1 }
0x1d10   :  { %3272 = vrot.lane.b32.xlu1 %v7326_v48, %s7174_s1 }
0x1d14   :  { %3443 = vrot.lane.b32.xlu1 %v7347_v0, %s7175_s3 }
0x1d7e   :  { %v3179_v15 = vpop.permute.xlu1 %3178 }
0x1d7f   :  { %6554 = vmatmul.mubr.msk.bf16.vlgmr.msra.gmra.mrb[112].mxu1 %vm440_vm7, %v3179_v15  ;;  %v368_v15 = vld [vmem:[%s8650_s2 + $0x28] sm:$0xff] }
0x1d80   :  { %6566 = vmatpush3.bf16.xpose.msra.mxu1 %v3281_v17  ;;  %6567 = vmatprep.mubr.msk.bf16.mxu1 %vm7172_vm1, %v7171_v28  ;;  %vm3776_vm13 = vcmp.eq.f32.partialorder %v368_v15, 0.0 }
0x1d81   :  { %6585 = vmatprep.subr.bf16.mxu1 %v7171_v28 }
0x1d82   :  { %v3273_v18 = vpop.permute.xlu1 %3272 }
0x1d86   :  { %v3444_v20 = vpop.permute.xlu1 %3443 }
0x1d87   :  { %v3449_v29 = vsel %vm99_vm0, %v3444_v20, 0  ;;  %6568 = vmatmul.mubr.msk.bf16.vlgmr.msra.gmra.mrb[116].mxu1 %vm99_vm0, %v3273_v18  ;;  %v3777_v20 = vsel %vm3776_vm13, 1, %v7173_v30  ;;  %vm3836_vm13 = vcmask 392512  }
0x1d88   :  { %6586 = vmatpush3.bf16.xpose.msra.mxu1 %v3449_v29  ;;  %6587 = vmatprep.mubr.msk.bf16.mxu1 %vm7172_vm1, %v7171_v28 }
0x1d89   :  { %6591 = vmatprep.subr.bf16.mxu1 %v7171_v28 }
0x1d8f   :  { %6588 = vmatmul.mubr.msk.bf16.vlgmr.msra.gmra.mrb[120].mxu1 %vm99_vm0, %v3442_v31 }
0x1d90   :  { %6593 = vmatprep.mubr.msk.bf16.mxu1 %vm7172_vm1, %v7171_v28 }
0x1e52   :  { %v7750_v35 = vpop.f32.mrb[112].mxu1 }
0x1e53   :  { %v6555_v36 = vpop.f32.mrb[113].mxu1 }
0x1e54   :  { %v3223_v37 = vpop.f32.mrb[114].mxu1 }
0x1e55   :  { %v6556_v50 = vpop.f32.mrb[115].mxu1  ;;  %v7779_v37 = vrot.slane %v7347_v0, 4 }
0x1e5a   :  { %v7752_v38 = vpop.f32.mrb[116].mxu1 }
0x1e5b   :  { %v6569_v39 = vpop.f32.mrb[117].mxu1 }
0x1e5c   :  { %v3320_v43 = vpop.f32.mrb[118].mxu1  ;;  %v3789_v39 = vsel %vm99_vm0, %v7779_v37, 0 }
0x1e5d   :  { %v6570_v44 = vpop.f32.mrb[119].mxu1  ;;  %v7788_v43 = vrot.slane %v7727_v3, 4 }
0x1e5e   :  { %v7791_v44 = vrot.slane %v7326_v48, 4 }
0x1e62   :  { %v3485_v46 = vpop.f32.mrb[120].mxu1 }
0x1e63   :  { %3492 = vrot.lane.b32.xlu1 %v3485_v46, %s7176_s15  ;;  %v6589_v47 = vpop.f32.mrb[121].mxu1 }
0x1e64   :  { %v3488_v51 = vpop.f32.mrb[122].mxu1 }
0x1e65   :  { %v6590_v56 = vpop.f32.mrb[123].mxu1 }
0x1ed5   :  { %v3493_v58 = vpop.permute.xlu1 %3492 }
0x1ed6   :  { %v3495_v59 = vsel %vm7712_vm5, -1e+09, %v3493_v58 }
0x1ed7   :  { %v3496_v61 = vsel %vm8658_vm3, %v3495_v59, -inf }
0x1ed8   :  { %3497 = vmax.xlane.f32.xlu0 %v3496_v61 }
0x1eee   :  { %3515 = vrot.lane.b32.xlu0 %v7727_v3, %s7175_s3 }
0x1ef2   :  { %3610 = vrot.lane.b32.xlu0 %v7347_v0, %s7176_s15  ;;  %v3861_v0 = vsel %vm456_vm8, %v7788_v43, 0 }
0x1ef6   :  { %3608 = vrot.lane.b32.xlu0 %v7326_v48, %s7176_s15 }
0x1f65   :  { %v3498_v63 = vpop.xlane.xlu0 %3497 }
0x1f66   :  { %v3499_v1 = vsub.f32 %v3495_v59, %v3498_v63 }
0x1f68   :  { %v3500_v26 = vmul.f32 1.442695, %v3499_v1 }
0x1f69   :  { %v3516_v2 = vpop.permute.xlu0 %3515 }
0x1f6a   :  { %7044 = vpow2.f32 %v3500_v26  ;;  %v3521_v4 = vsel %vm456_vm8, %v3516_v2, 0 }
0x1f6b   :  { %6592 = vmatpush3.bf16.msra.mxu1 %v3521_v4 }
0x1f6c   :  { %6605 = vmatprep.subr.bf16.mxu1 %v7171_v28 }
0x1f6d   :  { %v3611_v29 = vpop.permute.xlu0 %3610 }
0x1f6e   :  { %v3616_v36 = vsel %vm99_vm0, %v3611_v29, 0 }
0x1f71   :  { %v3609_v50 = vpop.permute.xlu0 %3608 }
0x1f74   :  { %v7045_v5 = vpop.eup %7044 }
0x1f75   :  { %3503 = vrot.lane.b32.xlu1 %v7045_v5, %s7174_s1 }
0x1fe7   :  { %v3504_v7 = vpop.permute.xlu1 %3503 }
0x1fe8   :  { %v3506_v11 = vsel %vm440_vm7, %v3504_v7, 0.0 }
0x1fe9   :  { %3507 = vadd.xlane.f32.xlu1 %v3506_v11 }
0x2076   :  { %v3508_v13 = vpop.xlane.xlu1 %3507 }
0x2077   :  { %7046 = vrcp.f32 %v3508_v13 }
0x2081   :  { %v7047_v14 = vpop.eup %7046 }
0x2082   :  { %v3510_v17 = vmul.f32 %v7047_v14, %v7045_v5 }
0x2084   :  { %v3511_v18 = vpack.c.bf16 %v3510_v17, %v3510_v17 }
0x2086   :  { %3513 = vrot.lane.b32.xlu1 %v3511_v18, %s7174_s1 }
0x208a   :  { %3779 = vperm.xlu1 %6993, %v3777_v20   ;;  %v609_v20 = vsel %vm7372_vm6, -1e+09, %v7421_v54 }
0x208b   :  { %v610_v29 = vsel %vm440_vm7, %v609_v20, -inf }
0x20f8   :  { %v3514_v31 = vpop.permute.xlu1 %3513 }
0x20f9   :  { %6594 = vmatmul.mubr.msk.bf16.vlgmr.msra.gmra.mrb[124].mxu1 %vm440_vm7, %v3514_v31 }
0x20fa   :  { %6606 = vmatpush3.bf16.xpose.msra.mxu1 %v3616_v36  ;;  %6607 = vmatprep.mubr.msk.bf16.mxu1 %vm7172_vm1, %v7171_v28 }
0x20fb   :  { %6625 = vmatprep.subr.bf16.mxu1 %v7171_v28 }
0x2101   :  { %6608 = vmatmul.mubr.msk.bf16.vlgmr.msra.gmra.mrb[128].mxu1 %vm99_vm0, %v3609_v50 }
0x2102   :  { %6626 = vmatpush3.bf16.xpose.msra.mxu1 %v3789_v39  ;;  %6627 = vmatprep.mubr.msk.bf16.mxu1 %vm7172_vm1, %v7171_v28 }
0x2103   :  { %6631 = vmatprep.subr.bf16.mxu1 %v7171_v28 }
0x2109   :  { %6628 = vmatmul.mubr.msk.bf16.vlgmr.msra.gmra.mrb[132].mxu1 %vm99_vm0, %v7791_v44  ;;  %v3780_v4 = vpop.permute.xlu1 %3779 }
0x210a   :  { %6632 = vmatpush3.bf16.msra.mxu1 %v3861_v0  ;;  %6633 = vmatprep.mubr.msk.bf16.mxu1 %vm7172_vm1, %v7171_v28  ;;  %vm3781_vm14 = vcmp.eq.s32.totalorder %v3780_v4, 1 }
0x210b   :  { %6645 = vmatprep.subr.bf16.mxu1 %v7171_v28  ;;  %vm7807_vm3 = vmor %vm3781_vm14, %vm391_vm4 }
0x21cc   :  { %v7800_v46 = vpop.f32.mrb[124].mxu1 }
0x21cd   :  { %v6595_v47 = vpop.f32.mrb[125].mxu1 }
0x21ce   :  { %v3560_v51 = vpop.f32.mrb[126].mxu1 }
0x21cf   :  { %v6596_v56 = vpop.f32.mrb[127].mxu1 }
0x21d4   :  { %v7802_v58 = vpop.f32.mrb[128].mxu1 }
0x21d5   :  { %v6609_v48 = vpop.f32.mrb[129].mxu1 }
0x21d6   :  { %v3655_v59 = vpop.f32.mrb[130].mxu1 }
0x21d7   :  { %v6610_v61 = vpop.f32.mrb[131].mxu1 }
0x21dc   :  { %v3825_v63 = vpop.f32.mrb[132].mxu1 }
0x21dd   :  { %3832 = vrot.lane.b32.xlu0 %v3825_v63, %s7183_s28  ;;  %v6629_v1 = vpop.f32.mrb[133].mxu1 }
0x21de   :  { %v3828_v26 = vpop.f32.mrb[134].mxu1 }
0x21df   :  { %v6630_v2 = vpop.f32.mrb[135].mxu1 }
0x224f   :  { %v3833_v7 = vpop.permute.xlu0 %3832 }
0x2250   :  { %v3835_v11 = vsel %vm7807_vm3, -1e+09, %v3833_v7  ;;  %v7845_v7 = vld [vmem:[%s8655_s7 + $0x10] sm:$0xff]  }
0x2251   :  { %v3837_v13 = vsel %vm3836_vm13, %v3835_v11, -inf }
0x2252   :  { %3838 = vmax.xlane.f32.xlu1 %v3837_v13 }
0x22df   :  { %v3839_v14 = vpop.xlane.xlu1 %3838 }
0x22e0   :  { %v3840_v15 = vsub.f32 %v3835_v11, %v3839_v14 }
0x22e2   :  { %v3841_v17 = vmul.f32 1.442695, %v3840_v15 }
0x22e4   :  { %7048 = vpow2.f32 %v3841_v17 }
0x22ee   :  { %v7049_v18 = vpop.eup %7048 }
0x22ef   :  { %3844 = vrot.lane.b32.xlu0 %v7049_v18, %s7184_s29 }
0x230e   :  { %611 = vmax.xlane.f32.xlu0 %v610_v29 }
0x2361   :  { %v3845_v31 = vpop.permute.xlu0 %3844 }
0x2362   :  { %v3847_v36 = vsel %vm440_vm7, %v3845_v31, 0.0 }
0x2363   :  { %3848 = vadd.xlane.f32.xlu1 %v3847_v36 }
0x2374   :  { %623 = vrot.lane.b32.xlu1 %v7382_v27, %s7174_s1 }
0x2378   :  { %3950 = vrot.lane.b32.xlu1 %v7779_v37, %s7174_s1 }
0x237c   :  { %3948 = vrot.lane.b32.xlu1 %v7791_v44, %s7174_s1 }
0x2380   :  { %4115 = vrot.lane.b32.xlu1 %v7791_v44, %s7175_s3 }
0x2384   :  { %1288 = vrot.lane.b32.xlu1 %v7502_v12, %s7177_s16  ;;  %v946_v12 = vsel %vm7372_vm6, -1e+09, %v7464_v32 }
0x2385   :  { %v947_v1 = vsel %vm440_vm7, %v946_v12, -inf }
0x239b   :  { %v612_v54 = vpop.xlane.xlu0 %611 }
0x239c   :  { %v613_v50 = vsub.f32 %v609_v20, %v612_v54 }
0x239e   :  { %v614_v39 = vmul.f32 1.442695, %v613_v50 }
0x23a0   :  { %7050 = vpow2.f32 %v614_v39 }
0x23aa   :  { %v7051_v0 = vpop.eup %7050 }
0x23ab   :  { %v616_v47 = vsel %vm440_vm7, %v7051_v0, 0.0 }
0x23ac   :  { %617 = vadd.xlane.f32.xlu0 %v616_v47 }
0x23f0   :  { %v3849_v51 = vpop.xlane.xlu1 %3848 }
0x23f1   :  { %7052 = vrcp.f32 %v3849_v51  ;;  %v7879_v51 = vld [vmem:[%s8655_s7 + $0x20] sm:$0xff]  }
0x23f4   :  { %v624_v56 = vpop.permute.xlu1 %623 }
0x23f5   :  { %v629_v48 = vsel %vm456_vm8, %v624_v56, 0 }
0x23f6   :  { %6252 = vmatpush3.bf16.msra.mxu0 %v629_v48 }
0x23f7   :  { %6257 = vmatprep.subr.bf16.mxu0 %v7171_v28 }
0x23f8   :  { %v3951_v10 = vpop.permute.xlu1 %3950 }
0x23f9   :  { %v3956_v32 = vsel %vm99_vm0, %v3951_v10, 0 }
0x23fb   :  { %v7053_v59 = vpop.eup %7052 }
0x23fc   :  { %v3851_v61 = vmul.f32 %v7053_v59, %v7049_v18  ;;  %v3949_v14 = vpop.permute.xlu1 %3948  ;;  %v7868_v18 = vld [vmem:[%s8655_s7 + $0x18] sm:$0xff]  }
0x23fe   :  { %v3852_v63 = vpack.c.bf16 %v3851_v61, %v3851_v61 }
0x2400   :  { %3854 = vrot.lane.b32.xlu0 %v3852_v63, %s7184_s29  ;;  %v4116_v17 = vpop.permute.xlu1 %4115  ;;  %v7886_v63 = vld [vmem:[%s8655_s7 + $0x28] sm:$0xff]  }
0x2404   :  { %4117 = vrot.lane.b32.xlu0 %v7779_v37, %s7175_s3  ;;  %v1289_v36 = vpop.permute.xlu1 %1288 }
0x2405   :  { %v1291_v39 = vsel %vm7469_vm12, -1e+09, %v1289_v36 }
0x2423   :  { %948 = vmax.xlane.f32.xlu0 %v947_v1  ;;  %v839_v1 = vpack.c.bf16 %v7462_v24, %v7462_v24 }
0x2439   :  { %959 = vrot.lane.b32.xlu0 %v7382_v27, %s7176_s15  ;;  %v618_v26 = vpop.xlane.xlu0 %617 }
0x243a   :  { %7054 = vrcp.f32 %v618_v26 }
0x2444   :  { %v7055_v2 = vpop.eup %7054 }
0x2445   :  { %v620_v4 = vmul.f32 %v7055_v2, %v7051_v0  ;;  %v1292_v0 = vsel %vm1125_vm11, %v1291_v39, -inf }
0x2447   :  { %v621_v11 = vpack.c.bf16 %v620_v4, %v620_v4 }
0x2449   :  { %6254 = vmatmul.mubr.msk.bf16.vlgmr.msra.gmra.mrb[16].mxu0 %vm440_vm7, %v621_v11 }
0x244a   :  { %6258 = vmatpush3.bf16.msra.mxu0 %v7845_v7  ;;  %6261 = vmatprep.mubr.msk.bf16.mxu0 %vm7172_vm1, %v7171_v28 }
0x244b   :  { %6259 = vmatprep.subr.bf16.mxu0 %v7171_v28 }
0x244e   :  { %6260 = vmatpush3.bf16.msra.mxu0 %v7868_v18 }
0x244f   :  { %6277 = vmatprep.subr.bf16.mxu0 %v7171_v28 }
0x2472   :  { %v3855_v27 = vpop.permute.xlu0 %3854 }
0x2473   :  { %6634 = vmatmul.mubr.msk.bf16.vlgmr.msra.gmra.mrb[136].mxu1 %vm440_vm7, %v3855_v27 }
0x2474   :  { %6646 = vmatpush3.bf16.xpose.msra.mxu1 %v3956_v32  ;;  %6647 = vmatprep.mubr.msk.bf16.mxu1 %vm7172_vm1, %v7171_v28 }
0x2475   :  { %6665 = vmatprep.subr.bf16.mxu1 %v7171_v28 }
0x2476   :  { %v4118_v13 = vpop.permute.xlu0 %4117 }
0x2477   :  { %v4123_v15 = vsel %vm99_vm0, %v4118_v13, 0 }
0x247b   :  { %6648 = vmatmul.mubr.msk.bf16.vlgmr.msra.gmra.mrb[140].mxu1 %vm99_vm0, %v3949_v14 }
0x247c   :  { %6666 = vmatpush3.bf16.xpose.msra.mxu1 %v4123_v15  ;;  %6667 = vmatprep.mubr.msk.bf16.mxu1 %vm7172_vm1, %v7171_v28 }
0x247d   :  { %6671 = vmatprep.subr.bf16.mxu1 %v7171_v28 }
0x2483   :  { %6668 = vmatmul.mubr.msk.bf16.vlgmr.msra.gmra.mrb[144].mxu1 %vm99_vm0, %v4116_v17 }
0x2484   :  { %6673 = vmatprep.mubr.msk.bf16.mxu1 %vm7172_vm1, %v7171_v28 }
0x24b0   :  { %v949_v20 = vpop.xlane.xlu0 %948 }
0x24b1   :  { %v950_v29 = vsub.f32 %v946_v12, %v949_v20 }
0x24b3   :  { %v951_v31 = vmul.f32 1.442695, %v950_v29 }
0x24b4   :  { %v960_v12 = vpop.permute.xlu0 %959 }
0x24b5   :  { %7056 = vpow2.f32 %v951_v31  ;;  %v965_v26 = vsel %vm456_vm8, %v960_v12, 0 }
0x24bf   :  { %v7057_v54 = vpop.eup %7056 }
0x24c0   :  { %v953_v50 = vsel %vm440_vm7, %v7057_v54, 0.0 }
0x24c1   :  { %954 = vadd.xlane.f32.xlu1 %v953_v50 }
0x24c5   :  { %1293 = vmax.xlane.f32.xlu1 %v1292_v0 }
0x251c   :  { %v665_v47 = vpop.f32.mrb[16].mxu0 }
0x251d   :  { %v671_v56 = vpack.c.bf16 %v665_v47, %v665_v47  ;;  %v6255_v48 = vpop.f32.mrb[17].mxu0 }
0x251e   :  { %v668_v59 = vpop.f32.mrb[18].mxu0 }
0x251f   :  { %v6256_v61 = vpop.f32.mrb[19].mxu0  ;;  %6262 = vmatmul.mubr.msk.bf16.vlgmr.msra.gmra.mrb[12].mxu0 %vm99_vm0, %v671_v56 }
0x2520   :  { %6278 = vmatpush3.bf16.msra.mxu0 %v7879_v51  ;;  %6281 = vmatprep.mubr.msk.bf16.mxu0 %vm7172_vm1, %v7171_v28 }
0x2521   :  { %6279 = vmatprep.subr.bf16.mxu0 %v7171_v28 }
0x2524   :  { %6280 = vmatpush3.bf16.msra.mxu0 %v7886_v63 }
0x2525   :  { %6291 = vmatprep.subr.bf16.mxu0 %v7171_v28 }
0x252b   :  { %6282 = vmatmul.mubr.msk.bf16.vlgmr.msra.gmra.mrb[12].mxu0 %vm99_vm0, %v839_v1 }
0x252c   :  { %6292 = vmatpush3.bf16.msra.mxu0 %v965_v26  ;;  %6293 = vmatprep.mubr.msk.bf16.mxu0 %vm7172_vm1, %v7171_v28 }
0x252d   :  { %6297 = vmatprep.subr.bf16.mxu0 %v7171_v28 }
0x2546   :  { %v7900_v2 = vpop.f32.mrb[136].mxu1 }
0x2547   :  { %v6635_v4 = vpop.f32.mrb[137].mxu1 }
0x2548   :  { %v3900_v11 = vpop.f32.mrb[138].mxu1 }
0x2549   :  { %v6636_v10 = vpop.f32.mrb[139].mxu1 }
0x254e   :  { %v955_v27 = vpop.xlane.xlu1 %954  ;;  %v7902_v32 = vpop.f32.mrb[140].mxu1 }
0x254f   :  { %7058 = vrcp.f32 %v955_v27  ;;  %v6649_v24 = vpop.f32.mrb[141].mxu1 }
0x2550   :  { %v3995_v13 = vpop.f32.mrb[142].mxu1 }
0x2551   :  { %v6650_v14 = vpop.f32.mrb[143].mxu1  ;;  %v7935_v13 = vld [vmem:[%s8655_s7] sm:$0xff]  }
0x2552   :  { %v1294_v15 = vpop.xlane.xlu1 %1293  ;;  %v1192_v14 = vpack.c.bf16 %v7500_v6, %v7500_v6 }
0x2553   :  { %v1295_v17 = vsub.f32 %v1291_v39, %v1294_v15  ;;  %v7912_v39 = vld [vmem:[%s8655_s7 + $0x30] sm:$0xff]  }
0x2555   :  { %v1296_v20 = vmul.f32 1.442695, %v1295_v17 }
0x2556   :  { %v4159_v29 = vpop.f32.mrb[144].mxu1 }
0x2557   :  { %7060 = vpow2.f32 %v1296_v20  ;;  %4166 = vrot.lane.b32.xlu1 %v4159_v29, %s7183_s28  ;;  %v6669_v31 = vpop.f32.mrb[145].mxu1 }
0x2558   :  { %v4162_v36 = vpop.f32.mrb[146].mxu1 }
0x2559   :  { %v7059_v50 = vpop.eup %7058  ;;  %v6670_v0 = vpop.f32.mrb[147].mxu1 }
0x255a   :  { %v957_v47 = vmul.f32 %v7059_v50, %v7057_v54  ;;  %v7919_v54 = vld [vmem:[%s8655_s7 + $0x38] sm:$0xff]  }
0x255c   :  { %v958_v56 = vpack.c.bf16 %v957_v47, %v957_v47 }
0x255e   :  { %6294 = vmatmul.mubr.msk.bf16.vlgmr.msra.gmra.mrb[20].mxu0 %vm440_vm7, %v958_v56 }
0x255f   :  { %6301 = vmatprep.mubr.msk.bf16.mxu0 %vm7172_vm1, %v7171_v28  ;;  %6298 = vmatpush3.bf16.msra.mxu0 %v7912_v39 }
0x2560   :  { %6299 = vmatprep.subr.bf16.mxu0 %v7171_v28 }
0x2561   :  { %v7061_v48 = vpop.eup %7060 }
0x2562   :  { %1299 = vrot.lane.b32.xlu0 %v7061_v48, %s7178_s17 }
0x2563   :  { %6300 = vmatpush3.bf16.msra.mxu0 %v7919_v54 }
0x2564   :  { %6317 = vmatprep.subr.bf16.mxu0 %v7171_v28 }
0x25c9   :  { %v4167_v59 = vpop.permute.xlu1 %4166 }
0x25ca   :  { %v4169_v61 = vsel %vm7807_vm3, -1e+09, %v4167_v59 }
0x25cb   :  { %v4170_v12 = vsel %vm3836_vm13, %v4169_v61, -inf }
0x25cc   :  { %4171 = vmax.xlane.f32.xlu0 %v4170_v12 }
0x25d4   :  { %v1300_v1 = vpop.permute.xlu0 %1299 }
0x25d5   :  { %v1302_v26 = vsel %vm440_vm7, %v1300_v1, 0.0 }
0x25d6   :  { %1303 = vadd.xlane.f32.xlu1 %v1302_v26 }
0x25e2   :  { %1622 = vrot.lane.b32.xlu0 %v7543_v60, %s7177_s16  ;;  %v7944_v60 = vld [vmem:[%s8655_s7 + $0x8] sm:$0xff]  }
0x25e6   :  { %1311 = vrot.lane.b32.xlu0 %v7450_v22, %s7174_s1 }
0x2631   :  { %v1001_v4 = vpop.f32.mrb[20].mxu0 }
0x2632   :  { %v1007_v11 = vpack.c.bf16 %v1001_v4, %v1001_v4  ;;  %v6295_v10 = vpop.f32.mrb[21].mxu0 }
0x2633   :  { %v1004_v27 = vpop.f32.mrb[22].mxu0 }
0x2634   :  { %v6296_v24 = vpop.f32.mrb[23].mxu0  ;;  %6302 = vmatmul.mubr.msk.bf16.vlgmr.msra.gmra.mrb[12].mxu0 %vm99_vm0, %v1007_v11 }
0x2635   :  { %6318 = vmatpush3.bf16.msra.mxu0 %v7935_v13  ;;  %6321 = vmatprep.mubr.msk.bf16.mxu0 %vm7172_vm1, %v7171_v28 }
0x2636   :  { %6319 = vmatprep.subr.bf16.mxu0 %v7171_v28 }
0x2639   :  { %6320 = vmatpush3.bf16.msra.mxu0 %v7944_v60 }
0x263a   :  { %6331 = vmatprep.subr.bf16.mxu0 %v7171_v28 }
0x263c   :  { %6322 = vmatmul.mubr.msk.bf16.vlgmr.msra.gmra.mrb[24].mxu0 %vm99_vm0, %v1192_v14 }
0x263d   :  { %6333 = vmatprep.mubr.msk.bf16.mxu0 %vm7172_vm1, %v7171_v28 }
0x2659   :  { %v4172_v15 = vpop.xlane.xlu0 %4171 }
0x265a   :  { %v4173_v17 = vsub.f32 %v4169_v61, %v4172_v15 }
0x265c   :  { %v4174_v20 = vmul.f32 1.442695, %v4173_v17 }
0x265d   :  { %v1623_v29 = vpop.permute.xlu0 %1622 }
0x265e   :  { %7062 = vpow2.f32 %v4174_v20  ;;  %v1625_v59 = vsel %vm7469_vm12, -1e+09, %v1623_v29  ;;  %vm4512_vm12 = vcmask 458112  }
0x265f   :  { %v1626_v61 = vsel %vm1125_vm11, %v1625_v59, -inf }
0x2661   :  { %v1312_v31 = vpop.permute.xlu0 %1311 }
0x2662   :  { %v1317_v36 = vsel %vm456_vm8, %v1312_v31, 0 }
0x2663   :  { %6332 = vmatpush3.bf16.msra.mxu0 %v1317_v36  ;;  %v1304_v50 = vpop.xlane.xlu1 %1303 }
0x2664   :  { %7064 = vrcp.f32 %v1304_v50  ;;  %6337 = vmatprep.subr.bf16.mxu0 %v7171_v28 }
0x2668   :  { %v7063_v6 = vpop.eup %7062 }
0x2669   :  { %4177 = vrot.lane.b32.xlu1 %v7063_v6, %s7184_s29 }
0x266e   :  { %v7065_v0 = vpop.eup %7064 }
0x266f   :  { %v1306_v47 = vmul.f32 %v7065_v0, %v7061_v48 }
0x2671   :  { %v1307_v56 = vpack.c.bf16 %v1306_v47, %v1306_v47 }
0x2673   :  { %1309 = vrot.lane.b32.xlu0 %v1307_v56, %s7178_s17 }
0x268d   :  { %1627 = vmax.xlane.f32.xlu1 %v1626_v61 }
0x269e   :  { %4189 = vrot.lane.b32.xlu1 %v7788_v43, %s7175_s3 }
0x26db   :  { %v4178_v12 = vpop.permute.xlu1 %4177 }
0x26dc   :  { %v4180_v1 = vsel %vm440_vm7, %v4178_v12, 0.0 }
0x26dd   :  { %4181 = vadd.xlane.f32.xlu0 %v4180_v1 }
0x26e5   :  { %v1310_v26 = vpop.permute.xlu0 %1309 }
0x26e6   :  { %6334 = vmatmul.mubr.msk.bf16.vlgmr.msra.gmra.mrb[28].mxu0 %vm440_vm7, %v1310_v26 }
0x26e7   :  { %6338 = vmatpush3.bf16.msra.mxu0 %v7845_v7  ;;  %6341 = vmatprep.mubr.msk.bf16.mxu0 %vm7172_vm1, %v7171_v28 }
0x26e8   :  { %6339 = vmatprep.subr.bf16.mxu0 %v7171_v28 }
0x26eb   :  { %6340 = vmatpush3.bf16.msra.mxu0 %v7868_v18 }
0x26ec   :  { %6357 = vmatprep.subr.bf16.mxu0 %v7171_v28 }
0x2707   :  { %v1057_v48 = vpop.f32.mrb[12].mxu0 }
0x2708   :  { %v6869_v4 = vadd.f32 %v5842_v40, %v1057_v48  ;;  %v6303_v11 = vpop.f32.mrb[13].mxu0  ;;  %v4465_v48 = vsel %vm99_vm0, %v7345_v62, 0 }
0x2709   :  { %v1060_v10 = vpop.f32.mrb[14].mxu0 }
0x270a   :  { %1064 = vst.msk [vmem:[#allocation2] sm:$0xff] %vm99_vm0, %v6869_v4  ;;  %v6304_v27 = vpop.f32.mrb[15].mxu0 }
0x270b   :  { %v4536_v27 = vsel %vm456_vm8, %v7725_v33, 0 }
0x271a   :  { %v1628_v24 = vpop.xlane.xlu1 %1627 }
0x271b   :  { %v1629_v14 = vsub.f32 %v1625_v59, %v1628_v24 }
0x271d   :  { %v1630_v15 = vmul.f32 1.442695, %v1629_v14 }
0x271e   :  { %v4190_v17 = vpop.permute.xlu1 %4189 }
0x271f   :  { %7066 = vpow2.f32 %v1630_v15  ;;  %v4195_v20 = vsel %vm456_vm8, %v4190_v17, 0 }
0x2720   :  { %6672 = vmatpush3.bf16.msra.mxu1 %v4195_v20 }
0x2721   :  { %6685 = vmatprep.subr.bf16.mxu1 %v7171_v28 }
0x2729   :  { %v7067_v29 = vpop.eup %7066 }
0x272a   :  { %1633 = vrot.lane.b32.xlu0 %v7067_v29, %s7178_s17 }
0x272e   :  { %4284 = vrot.lane.b32.xlu0 %v7779_v37, %s7176_s15 }
0x276a   :  { %v4182_v31 = vpop.xlane.xlu0 %4181 }
0x276b   :  { %7068 = vrcp.f32 %v4182_v31 }
0x2775   :  { %v7069_v36 = vpop.eup %7068 }
0x2776   :  { %v4184_v50 = vmul.f32 %v7069_v36, %v7063_v6 }
0x2778   :  { %v4185_v0 = vpack.c.bf16 %v4184_v50, %v4184_v50 }
0x277a   :  { %4187 = vrot.lane.b32.xlu1 %v4185_v0, %s7184_s29  ;;  %v369_v0 = vld [vmem:[%s8650_s2 + $0x30] sm:$0xff] }
0x277b   :  { %vm4454_vm6 = vcmp.eq.f32.partialorder %v369_v0, 0.0  ;;  %v1868_v0 = vpack.c.bf16 %v7579_v23, %v7579_v23 }
0x277e   :  { %4282 = vrot.lane.b32.xlu1 %v7791_v44, %s7176_s15 }
0x2782   :  { %1966 = vrot.lane.b32.xlu1 %v7581_v42, %s7179_s19 }
0x2786   :  { %1645 = vrot.lane.b32.xlu1 %v7450_v22, %s7176_s15  ;;  %v1526_v22 = vpack.c.bf16 %v7541_v53, %v7541_v53 }
0x279c   :  { %v1634_v47 = vpop.permute.xlu0 %1633 }
0x279d   :  { %v1636_v56 = vsel %vm440_vm7, %v1634_v47, 0.0 }
0x279e   :  { %1637 = vadd.xlane.f32.xlu0 %v1636_v56 }
0x27a0   :  { %v4285_v42 = vpop.permute.xlu0 %4284 }
0x27a1   :  { %v4290_v1 = vsel %vm99_vm0, %v4285_v42, 0 }
0x27b9   :  { %v1353_v37 = vpop.f32.mrb[28].mxu0 }
0x27ba   :  { %v1359_v59 = vpack.c.bf16 %v1353_v37, %v1353_v37  ;;  %v6335_v61 = vpop.f32.mrb[29].mxu0 }
0x27bb   :  { %v1356_v6 = vpop.f32.mrb[30].mxu0 }
0x27bc   :  { %v6336_v12 = vpop.f32.mrb[31].mxu0  ;;  %6342 = vmatmul.mubr.msk.bf16.vlgmr.msra.gmra.mrb[24].mxu0 %vm99_vm0, %v1359_v59 }
0x27bd   :  { %6358 = vmatpush3.bf16.msra.mxu0 %v7879_v51  ;;  %6361 = vmatprep.mubr.msk.bf16.mxu0 %vm7172_vm1, %v7171_v28 }
0x27be   :  { %6359 = vmatprep.subr.bf16.mxu0 %v7171_v28 }
0x27c1   :  { %6360 = vmatpush3.bf16.msra.mxu0 %v7886_v63 }
0x27c2   :  { %6371 = vmatprep.subr.bf16.mxu0 %v7171_v28 }
0x27c8   :  { %6362 = vmatmul.mubr.msk.bf16.vlgmr.msra.gmra.mrb[24].mxu0 %vm99_vm0, %v1526_v22 }
0x27c9   :  { %6373 = vmatprep.mubr.msk.bf16.mxu0 %vm7172_vm1, %v7171_v28 }
0x27ec   :  { %v4188_v44 = vpop.permute.xlu1 %4187 }
0x27ed   :  { %6674 = vmatmul.mubr.msk.bf16.vlgmr.msra.gmra.mrb[148].mxu1 %vm440_vm7, %v4188_v44 }
0x27ee   :  { %6686 = vmatpush3.bf16.xpose.msra.mxu1 %v4290_v1  ;;  %6687 = vmatprep.mubr.msk.bf16.mxu1 %vm7172_vm1, %v7171_v28 }
0x27ef   :  { %6705 = vmatprep.subr.bf16.mxu1 %v7171_v28 }
0x27f0   :  { %v4283_v26 = vpop.permute.xlu1 %4282 }
0x27f4   :  { %v1967_v40 = vpop.permute.xlu1 %1966 }
0x27f5   :  { %v1969_v53 = vsel %vm7548_vm15, -1e+09, %v1967_v40  ;;  %6688 = vmatmul.mubr.msk.bf16.vlgmr.msra.gmra.mrb[152].mxu1 %vm99_vm0, %v4283_v26 }
0x27f6   :  { %6706 = vmatpush3.bf16.xpose.msra.mxu1 %v4465_v48  ;;  %v1970_v4 = vsel %vm1802_vm2, %v1969_v53, -inf  ;;  %6707 = vmatprep.mubr.msk.bf16.mxu1 %vm7172_vm1, %v7171_v28 }
0x27f7   :  { %1971 = vmax.xlane.f32.xlu1 %v1970_v4  ;;  %6711 = vmatprep.subr.bf16.mxu1 %v7171_v28 }
0x27f8   :  { %v1646_v11 = vpop.permute.xlu1 %1645 }
0x27f9   :  { %v1651_v10 = vsel %vm456_vm8, %v1646_v11, 0 }
0x27fa   :  { %6372 = vmatpush3.bf16.msra.mxu0 %v1651_v10 }
0x27fb   :  { %6377 = vmatprep.subr.bf16.mxu0 %v7171_v28 }
0x27fd   :  { %6708 = vmatmul.mubr.msk.bf16.vlgmr.msra.gmra.mrb[156].mxu1 %vm99_vm0, %v7324_v45 }
0x27fe   :  { %6712 = vmatpush3.bf16.msra.mxu1 %v4536_v27  ;;  %6713 = vmatprep.mubr.msk.bf16.mxu1 %vm7172_vm1, %v7171_v28 }
0x27ff   :  { %6725 = vmatprep.subr.bf16.mxu1 %v7171_v28 }
0x282b   :  { %v1638_v24 = vpop.xlane.xlu0 %1637 }
0x282c   :  { %7070 = vrcp.f32 %v1638_v24 }
0x2836   :  { %v7071_v14 = vpop.eup %7070 }
0x2837   :  { %v1640_v15 = vmul.f32 %v7071_v14, %v7067_v29  ;;  %v4455_v29 = vsel %vm4454_vm6, 1, %v7173_v30  ;;  %vm5192_vm6 = vcmask 523712  }
0x2839   :  { %v1641_v17 = vpack.c.bf16 %v1640_v15, %v1640_v15 }
0x283b   :  { %1643 = vrot.lane.b32.xlu0 %v1641_v17, %s7178_s17  ;;  %s7185_s17 = smov 48  }
0x2884   :  { %v1972_v20 = vpop.xlane.xlu1 %1971 }
0x2885   :  { %v1973_v31 = vsub.f32 %v1969_v53, %v1972_v20 }
0x2887   :  { %v1974_v36 = vmul.f32 1.442695, %v1973_v31 }
0x2889   :  { %7072 = vpow2.f32 %v1974_v36 }
0x2893   :  { %v7073_v50 = vpop.eup %7072 }
0x2894   :  { %1977 = vrot.lane.b32.xlu1 %v7073_v50, %s7180_s20 }
0x2898   :  { %2301 = vrot.lane.b32.xlu1 %v7631_v19, %s7179_s19  ;;  %s7186_s19 = smov 80  }
0x289c   :  { %4457 = vperm.xlu1 %6993, %v4455_v29  }
0x28ad   :  { %v1644_v47 = vpop.permute.xlu0 %1643 }
0x28ae   :  { %6374 = vmatmul.mubr.msk.bf16.vlgmr.msra.gmra.mrb[32].mxu0 %vm440_vm7, %v1644_v47 }
0x28af   :  { %6378 = vmatpush3.bf16.msra.mxu0 %v7912_v39  ;;  %6381 = vmatprep.mubr.msk.bf16.mxu0 %vm7172_vm1, %v7171_v28 }
0x28b0   :  { %6379 = vmatprep.subr.bf16.mxu0 %v7171_v28 }
0x28b3   :  { %6380 = vmatpush3.bf16.msra.mxu0 %v7919_v54 }
0x28b4   :  { %6397 = vmatprep.subr.bf16.mxu0 %v7171_v28 }
0x28c0   :  { %v8037_v56 = vpop.f32.mrb[148].mxu1 }
0x28c1   :  { %v6675_v19 = vpop.f32.mrb[149].mxu1 }
0x28c2   :  { %v4234_v37 = vpop.f32.mrb[150].mxu1 }
0x28c3   :  { %v6676_v59 = vpop.f32.mrb[151].mxu1 }
0x28c8   :  { %v8039_v61 = vpop.f32.mrb[152].mxu1 }
0x28c9   :  { %v6689_v6 = vpop.f32.mrb[153].mxu1 }
0x28ca   :  { %v4329_v12 = vpop.f32.mrb[154].mxu1 }
0x28cb   :  { %v6690_v22 = vpop.f32.mrb[155].mxu1 }
0x28d0   :  { %v4501_v42 = vpop.f32.mrb[156].mxu1 }
0x28d1   :  { %4508 = vrot.lane.b32.xlu1 %v4501_v42, %s7185_s17  ;;  %v6709_v44 = vpop.f32.mrb[157].mxu1 }
0x28d2   :  { %v4504_v1 = vpop.f32.mrb[158].mxu1 }
0x28d3   :  { %v6710_v26 = vpop.f32.mrb[159].mxu1 }
0x28d5   :  { %1990 = vrot.lane.b32.xlu1 %v7380_v25, %s7174_s1 }
0x2906   :  { %v1978_v40 = vpop.permute.xlu1 %1977 }
0x2907   :  { %v1980_v53 = vsel %vm440_vm7, %v1978_v40, 0.0 }
0x2908   :  { %1981 = vadd.xlane.f32.xlu0 %v1980_v53 }
0x290a   :  { %v2302_v48 = vpop.permute.xlu1 %2301 }
0x290b   :  { %v2304_v23 = vsel %vm7548_vm15, -1e+09, %v2302_v48  ;;  %vm8673_vm15 = vcmask 326912  }
0x290c   :  { %v2305_v6 = vsel %vm1802_vm2, %v2304_v23, -inf  ;;  %vm8674_vm2 = vmmov %vm8673_vm15 }
0x291b   :  { %v4458_v4 = vpop.permute.xlu1 %4457 }
0x291c   :  { %vm4459_vm11 = vcmp.eq.s32.totalorder %v4458_v4, 1 }
0x291d   :  { %vm8047_vm14 = vmor %vm4459_vm11, %vm391_vm4 }
0x2943   :  { %v4509_v10 = vpop.permute.xlu1 %4508 }
0x2944   :  { %v4511_v27 = vsel %vm8047_vm14, -1e+09, %v4509_v10 }
0x2945   :  { %v4513_v24 = vsel %vm4512_vm12, %v4511_v27, -inf }
0x2946   :  { %4514 = vmax.xlane.f32.xlu0 %v4513_v24 }
0x2947   :  { %v1991_v36 = vpop.permute.xlu1 %1990 }
0x2948   :  { %v1996_v29 = vsel %vm456_vm8, %v1991_v36, 0 }
0x2981   :  { %v1687_v14 = vpop.f32.mrb[32].mxu0 }
0x2982   :  { %v1693_v15 = vpack.c.bf16 %v1687_v14, %v1687_v14  ;;  %v6375_v17 = vpop.f32.mrb[33].mxu0 }
0x2983   :  { %v1690_v20 = vpop.f32.mrb[34].mxu0 }
0x2984   :  { %v6376_v31 = vpop.f32.mrb[35].mxu0  ;;  %6382 = vmatmul.mubr.msk.bf16.vlgmr.msra.gmra.mrb[24].mxu0 %vm99_vm0, %v1693_v15 }
0x2985   :  { %6398 = vmatpush3.bf16.msra.mxu0 %v7935_v13  ;;  %6401 = vmatprep.mubr.msk.bf16.mxu0 %vm7172_vm1, %v7171_v28 }
0x2986   :  { %6399 = vmatprep.subr.bf16.mxu0 %v7171_v28 }
0x2989   :  { %6400 = vmatpush3.bf16.msra.mxu0 %v7944_v60 }
0x298a   :  { %6411 = vmatprep.subr.bf16.mxu0 %v7171_v28 }
0x298c   :  { %6402 = vmatmul.mubr.msk.bf16.vlgmr.msra.gmra.mrb[36].mxu0 %vm99_vm0, %v1868_v0 }
0x298d   :  { %6412 = vmatpush3.bf16.msra.mxu0 %v1996_v29  ;;  %6413 = vmatprep.mubr.msk.bf16.mxu0 %vm7172_vm1, %v7171_v28  ;;  %v2205_v29 = vpack.c.bf16 %v7629_v34, %v7629_v34 }
0x298e   :  { %6417 = vmatprep.subr.bf16.mxu0 %v7171_v28 }
0x2995   :  { %v1982_v47 = vpop.xlane.xlu0 %1981 }
0x2996   :  { %7074 = vrcp.f32 %v1982_v47 }
0x29a0   :  { %v7075_v19 = vpop.eup %7074 }
0x29a1   :  { %v1984_v37 = vmul.f32 %v7075_v19, %v7073_v50 }
0x29a3   :  { %v1985_v59 = vpack.c.bf16 %v1984_v37, %v1984_v37 }
0x29a5   :  { %1987 = vrot.lane.b32.xlu1 %v1985_v59, %s7180_s20 }
0x29c9   :  { %2306 = vmax.xlane.f32.xlu1 %v2305_v6 }
0x29d3   :  { %v4515_v50 = vpop.xlane.xlu0 %4514 }
0x29d4   :  { %v4516_v22 = vsub.f32 %v4511_v27, %v4515_v50 }
0x29d6   :  { %v4517_v48 = vmul.f32 1.442695, %v4516_v22 }
0x2a17   :  { %v1988_v12 = vpop.permute.xlu1 %1987 }
0x2a18   :  { %6414 = vmatmul.mubr.msk.bf16.vlgmr.msra.gmra.mrb[40].mxu0 %vm440_vm7, %v1988_v12 }
0x2a19   :  { %6418 = vmatpush3.bf16.msra.mxu0 %v7845_v7  ;;  %6421 = vmatprep.mubr.msk.bf16.mxu0 %vm7172_vm1, %v7171_v28 }
0x2a1a   :  { %6419 = vmatprep.subr.bf16.mxu0 %v7171_v28 }
0x2a1d   :  { %6420 = vmatpush3.bf16.msra.mxu0 %v7868_v18 }
0x2a1e   :  { %6437 = vmatprep.subr.bf16.mxu0 %v7171_v28 }
0x2a56   :  { %v2307_v9 = vpop.xlane.xlu1 %2306 }
0x2a57   :  { %v2308_v42 = vsub.f32 %v2304_v23, %v2307_v9  ;;  %v8079_v44 = vpop.f32.mrb[24].mxu0 }
0x2a58   :  { %v6383_v1 = vpop.f32.mrb[25].mxu0 }
0x2a59   :  { %v2309_v26 = vmul.f32 1.442695, %v2308_v42  ;;  %v1734_v40 = vpop.f32.mrb[26].mxu0 }
0x2a5a   :  { %v6384_v53 = vpop.f32.mrb[27].mxu0 }
0x2a5b   :  { %7076 = vpow2.f32 %v2309_v26 }
0x2a5c   :  { %7078 = vpow2.f32 %v4517_v48 }
0x2a65   :  { %v7077_v4 = vpop.eup %7076 }
0x2a66   :  { %2312 = vrot.lane.b32.xlu0 %v7077_v4, %s7180_s20  ;;  %v7079_v10 = vpop.eup %7078 }
0x2a6a   :  { %4520 = vrot.lane.b32.xlu0 %v7079_v10, %s7186_s19 }
0x2ad8   :  { %v2313_v24 = vpop.permute.xlu0 %2312 }
0x2ad9   :  { %v2315_v27 = vsel %vm440_vm7, %v2313_v24, 0.0 }
0x2ada   :  { %2316 = vadd.xlane.f32.xlu0 %v2315_v27 }
0x2adc   :  { %v4521_v14 = vpop.permute.xlu0 %4520 }
0x2add   :  { %v4523_v15 = vsel %vm440_vm7, %v4521_v14, 0.0 }
0x2ade   :  { %4524 = vadd.xlane.f32.xlu1 %v4523_v15 }
0x2aeb   :  { %v2032_v17 = vpop.f32.mrb[40].mxu0 }
0x2aec   :  { %v2038_v20 = vpack.c.bf16 %v2032_v17, %v2032_v17  ;;  %v6415_v31 = vpop.f32.mrb[41].mxu0 }
0x2aed   :  { %v2035_v36 = vpop.f32.mrb[42].mxu0 }
0x2aee   :  { %v6416_v0 = vpop.f32.mrb[43].mxu0  ;;  %6422 = vmatmul.mubr.msk.bf16.vlgmr.msra.gmra.mrb[36].mxu0 %vm99_vm0, %v2038_v20 }
0x2aef   :  { %2646 = vrot.lane.b32.xlu1 %v7669_v55, %s7181_s22  ;;  %6438 = vmatpush3.bf16.msra.mxu0 %v7879_v51 }
0x2af0   :  { %6439 = vmatprep.subr.bf16.mxu0 %v7171_v28  ;;  %6441 = vmatprep.mubr.msk.bf16.mxu0 %vm7172_vm1, %v7171_v28 }
0x2af3   :  { %2324 = vrot.lane.b32.xlu1 %v7380_v25, %s7176_s15  ;;  %6440 = vmatpush3.bf16.msra.mxu0 %v7886_v63 }
0x2af4   :  { %6451 = vmatprep.subr.bf16.mxu0 %v7171_v28 }
0x2afa   :  { %6442 = vmatmul.mubr.msk.bf16.vlgmr.msra.gmra.mrb[36].mxu0 %vm99_vm0, %v2205_v29 }
0x2afb   :  { %6453 = vmatprep.mubr.msk.bf16.mxu0 %vm7172_vm1, %v7171_v28 }
0x2b67   :  { %v2317_v55 = vpop.xlane.xlu0 %2316 }
0x2b68   :  { %7080 = vrcp.f32 %v2317_v55 }
0x2b6b   :  { %v4525_v47 = vpop.xlane.xlu1 %4524 }
0x2b6c   :  { %7082 = vrcp.f32 %v4525_v47 }
0x2b6f   :  { %v2647_v19 = vpop.permute.xlu1 %2646 }
0x2b70   :  { %v2649_v25 = vsel %vm7636_vm10, -1e+09, %v2647_v19 }
0x2b71   :  { %v2650_v37 = vsel %vm2483_vm9, %v2649_v25, -inf }
0x2b72   :  { %v7081_v59 = vpop.eup %7080  ;;  %2651 = vmax.xlane.f32.xlu1 %v2650_v37 }
0x2b73   :  { %v2325_v23 = vpop.permute.xlu1 %2324  ;;  %v2319_v6 = vmul.f32 %v7081_v59, %v7077_v4 }
0x2b74   :  { %v2330_v34 = vsel %vm456_vm8, %v2325_v23, 0 }
0x2b75   :  { %6452 = vmatpush3.bf16.msra.mxu0 %v2330_v34  ;;  %v2320_v12 = vpack.c.bf16 %v2319_v6, %v2319_v6 }
0x2b76   :  { %v7083_v50 = vpop.eup %7082  ;;  %6457 = vmatprep.subr.bf16.mxu0 %v7171_v28 }
0x2b77   :  { %2322 = vrot.lane.b32.xlu0 %v2320_v12, %s7180_s20  ;;  %v4527_v9 = vmul.f32 %v7083_v50, %v7079_v10 }
0x2b79   :  { %v4528_v22 = vpack.c.bf16 %v4527_v9, %v4527_v9 }
0x2b7b   :  { %4627 = vrot.lane.b32.xlu0 %v7345_v62, %s7174_s1 }
0x2b7f   :  { %4530 = vrot.lane.b32.xlu0 %v4528_v22, %s7186_s19 }
0x2b83   :  { %4793 = vrot.lane.b32.xlu1 %v7324_v45, %s7175_s3  ;;  %4624 = vrot.lane.b32.xlu0 %v7324_v45, %s7174_s1 }
0x2b87   :  { %2980 = vrot.lane.b32.xlu1 %v7707_v57, %s7181_s22  ;;  %4795 = vrot.lane.b32.xlu0 %v7345_v62, %s7175_s3 }
0x2b8b   :  { %2669 = vrot.lane.b32.xlu1 %v7617_v52, %s7174_s1 }
0x2be9   :  { %v2323_v42 = vpop.permute.xlu0 %2322 }
0x2bea   :  { %6454 = vmatmul.mubr.msk.bf16.vlgmr.msra.gmra.mrb[44].mxu0 %vm440_vm7, %v2323_v42 }
0x2beb   :  { %6458 = vmatpush3.bf16.msra.mxu0 %v7912_v39  ;;  %6461 = vmatprep.mubr.msk.bf16.mxu0 %vm7172_vm1, %v7171_v28 }
0x2bec   :  { %6459 = vmatprep.subr.bf16.mxu0 %v7171_v28 }
0x2bed   :  { %v4628_v1 = vpop.permute.xlu0 %4627 }
0x2bee   :  { %v4633_v26 = vsel %vm99_vm0, %v4628_v1, 0 }
0x2bef   :  { %6460 = vmatpush3.bf16.msra.mxu0 %v7919_v54 }
0x2bf0   :  { %6477 = vmatprep.subr.bf16.mxu0 %v7171_v28 }
0x2bf1   :  { %v4531_v57 = vpop.permute.xlu0 %4530 }
0x2bf2   :  { %6714 = vmatmul.mubr.msk.bf16.vlgmr.msra.gmra.mrb[160].mxu1 %vm440_vm7, %v4531_v57 }
0x2bf3   :  { %6726 = vmatpush3.bf16.xpose.msra.mxu1 %v4633_v26  ;;  %6727 = vmatprep.mubr.msk.bf16.mxu1 %vm7172_vm1, %v7171_v28 }
0x2bf4   :  { %6745 = vmatprep.subr.bf16.mxu1 %v7171_v28 }
0x2bf5   :  { %v4625_v40 = vpop.permute.xlu0 %4624 }
0x2bf9   :  { %v4796_v53 = vpop.permute.xlu0 %4795 }
0x2bfa   :  { %v4801_v48 = vsel %vm99_vm0, %v4796_v53, 0  ;;  %6728 = vmatmul.mubr.msk.bf16.vlgmr.msra.gmra.mrb[164].mxu1 %vm99_vm0, %v4625_v40 }
0x2bfb   :  { %6746 = vmatpush3.bf16.xpose.msra.mxu1 %v4801_v48  ;;  %6747 = vmatprep.mubr.msk.bf16.mxu1 %vm7172_vm1, %v7171_v28 }
0x2bfc   :  { %6751 = vmatprep.subr.bf16.mxu1 %v7171_v28 }
0x2bff   :  { %v2652_v4 = vpop.xlane.xlu1 %2651 }
0x2c00   :  { %v2653_v10 = vsub.f32 %v2649_v25, %v2652_v4  ;;  %v2550_v25 = vpack.c.bf16 %v7667_v21, %v7667_v21 }
0x2c02   :  { %v2654_v24 = vmul.f32 1.442695, %v2653_v10 }
0x2c03   :  { %v4794_v27 = vpop.permute.xlu1 %4793 }
0x2c04   :  { %7084 = vpow2.f32 %v2654_v24  ;;  %6748 = vmatmul.mubr.msk.bf16.vlgmr.msra.gmra.mrb[168].mxu1 %vm99_vm0, %v4794_v27 }
0x2c05   :  { %6753 = vmatprep.mubr.msk.bf16.mxu1 %vm7172_vm1, %v7171_v28 }
0x2c07   :  { %v2981_v0 = vpop.permute.xlu1 %2980 }
0x2c08   :  { %v2983_v48 = vsel %vm7636_vm10, -1e+09, %v2981_v0 }
0x2c09   :  { %v2984_v4 = vsel %vm2483_vm9, %v2983_v48, -inf }
0x2c0b   :  { %v2670_v47 = vpop.permute.xlu1 %2669 }
0x2c0c   :  { %v2675_v23 = vsel %vm456_vm8, %v2670_v47, 0 }
0x2c0e   :  { %v7085_v14 = vpop.eup %7084 }
0x2c0f   :  { %2657 = vrot.lane.b32.xlu0 %v7085_v14, %s7182_s23 }
0x2c81   :  { %v2658_v15 = vpop.permute.xlu0 %2657 }
0x2c82   :  { %v2660_v17 = vsel %vm440_vm7, %v2658_v15, 0.0 }
0x2c83   :  { %2661 = vadd.xlane.f32.xlu0 %v2660_v17 }
0x2cbd   :  { %v2366_v20 = vpop.f32.mrb[44].mxu0 }
0x2cbe   :  { %v2372_v31 = vpack.c.bf16 %v2366_v20, %v2366_v20  ;;  %v6455_v36 = vpop.f32.mrb[45].mxu0 }
0x2cbf   :  { %v2369_v29 = vpop.f32.mrb[46].mxu0 }
0x2cc0   :  { %v6456_v55 = vpop.f32.mrb[47].mxu0  ;;  %6462 = vmatmul.mubr.msk.bf16.vlgmr.msra.gmra.mrb[36].mxu0 %vm99_vm0, %v2372_v31 }
0x2cc1   :  { %6478 = vmatpush3.bf16.msra.mxu0 %v7935_v13  ;;  %6481 = vmatprep.mubr.msk.bf16.mxu0 %vm7172_vm1, %v7171_v28 }
0x2cc2   :  { %6479 = vmatprep.subr.bf16.mxu0 %v7171_v28 }
0x2cc5   :  { %6480 = vmatpush3.bf16.msra.mxu0 %v7944_v60  ;;  %v8148_v19 = vpop.f32.mrb[160].mxu1 }
0x2cc6   :  { %v6715_v37 = vpop.f32.mrb[161].mxu1  ;;  %6491 = vmatprep.subr.bf16.mxu0 %v7171_v28 }
0x2cc7   :  { %v4575_v59 = vpop.f32.mrb[162].mxu1 }
0x2cc8   :  { %6482 = vmatmul.mubr.msk.bf16.vlgmr.msra.gmra.mrb[48].mxu0 %vm99_vm0, %v2550_v25  ;;  %v6716_v6 = vpop.f32.mrb[163].mxu1 }
0x2cc9   :  { %6492 = vmatpush3.bf16.msra.mxu0 %v2675_v23  ;;  %6493 = vmatprep.mubr.msk.bf16.mxu0 %vm7172_vm1, %v7171_v28 }
0x2cca   :  { %6497 = vmatprep.subr.bf16.mxu0 %v7171_v28 }
0x2ccd   :  { %v8158_v34 = vpop.f32.mrb[164].mxu1 }
0x2cce   :  { %v6729_v12 = vpop.f32.mrb[165].mxu1 }
0x2ccf   :  { %v4672_v50 = vpop.f32.mrb[166].mxu1 }
0x2cd0   :  { %v6730_v21 = vpop.f32.mrb[167].mxu1 }
0x2cd7   :  { %v4837_v9 = vpop.f32.mrb[168].mxu1 }
0x2cd8   :  { %4844 = vrot.lane.b32.xlu0 %v4837_v9, %s7185_s17  ;;  %v6749_v22 = vpop.f32.mrb[169].mxu1 }
0x2cd9   :  { %v4840_v42 = vpop.f32.mrb[170].mxu1 }
0x2cda   :  { %v6750_v1 = vpop.f32.mrb[171].mxu1 }
0x2d10   :  { %v2662_v57 = vpop.xlane.xlu0 %2661 }
0x2d11   :  { %7086 = vrcp.f32 %v2662_v57 }
0x2d1b   :  { %v7087_v26 = vpop.eup %7086 }
0x2d1c   :  { %v2664_v40 = vmul.f32 %v7087_v26, %v7085_v14 }
0x2d1e   :  { %v2665_v53 = vpack.c.bf16 %v2664_v40, %v2664_v40 }
0x2d20   :  { %2667 = vrot.lane.b32.xlu1 %v2665_v53, %s7182_s23 }
0x2d44   :  { %2985 = vmax.xlane.f32.xlu1 %v2984_v4 }
0x2d4a   :  { %v4845_v36 = vpop.permute.xlu0 %4844 }
0x2d92   :  { %v2668_v10 = vpop.permute.xlu1 %2667 }
0x2d93   :  { %v8165_v24 = vpop.f32.mrb[36].mxu0  ;;  %6494 = vmatmul.mubr.msk.bf16.vlgmr.msra.gmra.mrb[52].mxu0 %vm440_vm7, %v2668_v10 }
0x2d94   :  { %v6463_v27 = vpop.f32.mrb[37].mxu0  ;;  %6498 = vmatpush3.bf16.msra.mxu0 %v7845_v7  ;;  %6501 = vmatprep.mubr.msk.bf16.mxu0 %vm7172_vm1, %v7171_v28  ;;  %v4847_v7 = vsel %vm8047_vm14, -1e+09, %v4845_v36 }
0x2d95   :  { %v2413_v14 = vpop.f32.mrb[38].mxu0  ;;  %6499 = vmatprep.subr.bf16.mxu0 %v7171_v28  ;;  %v4848_v0 = vsel %vm4512_vm12, %v4847_v7, -inf }
0x2d96   :  { %v6464_v15 = vpop.f32.mrb[39].mxu0 }
0x2d98   :  { %6500 = vmatpush3.bf16.msra.mxu0 %v7868_v18 }
0x2d99   :  { %6517 = vmatprep.subr.bf16.mxu0 %v7171_v28 }
0x2dd1   :  { %v2986_v49 = vpop.xlane.xlu1 %2985 }
0x2dd2   :  { %v2987_v17 = vsub.f32 %v2983_v48, %v2986_v49 }
0x2dd4   :  { %v2988_v20 = vmul.f32 1.442695, %v2987_v17 }
0x2dd6   :  { %7088 = vpow2.f32 %v2988_v20 }
0x2de0   :  { %v7089_v31 = vpop.eup %7088 }
0x2de1   :  { %2991 = vrot.lane.b32.xlu0 %v7089_v31, %s7182_s23 }
0x2e00   :  { %4849 = vmax.xlane.f32.xlu0 %v4848_v0 }
0x2e53   :  { %v2992_v29 = vpop.permute.xlu0 %2991 }
0x2e54   :  { %v2994_v55 = vsel %vm440_vm7, %v2992_v29, 0.0 }
0x2e55   :  { %2995 = vadd.xlane.f32.xlu1 %v2994_v55  ;;  %v8243_v55 = vrot.slane %v7725_v33, 4 }
0x2e66   :  { %v2711_v18 = vpop.f32.mrb[52].mxu0  ;;  %3324 = vrot.lane.b32.xlu1 %v7752_v38, %s7176_s15  ;;  %v2884_v38 = vpack.c.bf16 %v7705_v16, %v7705_v16 }
0x2e67   :  { %v2717_v47 = vpack.c.bf16 %v2711_v18, %v2711_v18  ;;  %v6495_v25 = vpop.f32.mrb[53].mxu0  ;;  %v8246_v18 = vrot.slane %v7324_v45, 4 }
0x2e68   :  { %v2714_v37 = vpop.f32.mrb[54].mxu0 }
0x2e69   :  { %v6496_v59 = vpop.f32.mrb[55].mxu0  ;;  %6502 = vmatmul.mubr.msk.bf16.vlgmr.msra.gmra.mrb[48].mxu0 %vm99_vm0, %v2717_v47 }
0x2e6a   :  { %3003 = vrot.lane.b32.xlu1 %v7617_v52, %s7176_s15  ;;  %6518 = vmatpush3.bf16.msra.mxu0 %v7879_v51 }
0x2e6b   :  { %6519 = vmatprep.subr.bf16.mxu0 %v7171_v28  ;;  %6521 = vmatprep.mubr.msk.bf16.mxu0 %vm7172_vm1, %v7171_v28 }
0x2e6e   :  { %6520 = vmatpush3.bf16.msra.mxu0 %v7886_v63 }
0x2e6f   :  { %6531 = vmatprep.subr.bf16.mxu0 %v7171_v28 }
0x2e75   :  { %6522 = vmatmul.mubr.msk.bf16.vlgmr.msra.gmra.mrb[48].mxu0 %vm99_vm0, %v2884_v38 }
0x2e76   :  { %6533 = vmatprep.mubr.msk.bf16.mxu0 %vm7172_vm1, %v7171_v28 }
0x2e8d   :  { %v4850_v52 = vpop.xlane.xlu0 %4849 }
0x2e8e   :  { %v4851_v23 = vsub.f32 %v4847_v7, %v4850_v52 }
0x2e90   :  { %v4852_v51 = vmul.f32 1.442695, %v4851_v23  ;;  %v3226_v23 = vpack.c.bf16 %v7750_v35, %v7750_v35 }
0x2e92   :  { %7090 = vpow2.f32 %v4852_v51 }
0x2e9c   :  { %v7091_v6 = vpop.eup %7090 }
0x2e9d   :  { %4855 = vrot.lane.b32.xlu1 %v7091_v6, %s7186_s19 }
0x2ee2   :  { %v2996_v12 = vpop.xlane.xlu1 %2995 }
0x2ee3   :  { %7092 = vrcp.f32 %v2996_v12 }
0x2ee6   :  { %v3325_v63 = vpop.permute.xlu1 %3324 }
0x2ee7   :  { %v3327_v50 = vsel %vm7712_vm5, -1e+09, %v3325_v63 }
0x2ee8   :  { %v3328_v16 = vsel %vm8673_vm15, %v3327_v50, -inf }
0x2ee9   :  { %3329 = vmax.xlane.f32.xlu1 %v3328_v16 }
0x2eea   :  { %v3004_v21 = vpop.permute.xlu1 %3003 }
0x2eeb   :  { %v3009_v9 = vsel %vm456_vm8, %v3004_v21, 0 }
0x2eec   :  { %6532 = vmatpush3.bf16.msra.mxu0 %v3009_v9 }
0x2eed   :  { %v7093_v22 = vpop.eup %7092  ;;  %6537 = vmatprep.subr.bf16.mxu0 %v7171_v28 }
0x2eee   :  { %v2998_v42 = vmul.f32 %v7093_v22, %v7089_v31 }
0x2ef0   :  { %v2999_v1 = vpack.c.bf16 %v2998_v42, %v2998_v42 }
0x2ef2   :  { %3001 = vrot.lane.b32.xlu0 %v2999_v1, %s7182_s23  ;;  %s7187_s23 = smov 56  }
0x2f0f   :  { %v4856_v57 = vpop.permute.xlu1 %4855 }
0x2f10   :  { %v4858_v26 = vsel %vm440_vm7, %v4856_v57, 0.0 }
0x2f11   :  { %4859 = vadd.xlane.f32.xlu0 %v4858_v26 }
0x2f64   :  { %v3002_v40 = vpop.permute.xlu0 %3001 }
0x2f65   :  { %6534 = vmatmul.mubr.msk.bf16.vlgmr.msra.gmra.mrb[56].mxu0 %vm440_vm7, %v3002_v40 }
0x2f66   :  { %6538 = vmatpush3.bf16.msra.mxu0 %v7912_v39  ;;  %6541 = vmatprep.mubr.msk.bf16.mxu0 %vm7172_vm1, %v7171_v28 }
0x2f67   :  { %6539 = vmatprep.subr.bf16.mxu0 %v7171_v28 }
0x2f6a   :  { %6540 = vmatpush3.bf16.msra.mxu0 %v7919_v54 }
0x2f6b   :  { %6557 = vmatprep.subr.bf16.mxu0 %v7171_v28 }
0x2f76   :  { %v3330_v53 = vpop.xlane.xlu1 %3329 }
0x2f77   :  { %v3331_v48 = vsub.f32 %v3327_v50, %v3330_v53  ;;  %v370_v50 = vld [vmem:[%s8650_s2 + $0x38] sm:$0xff] }
0x2f78   :  { %vm5132_vm9 = vcmp.eq.f32.partialorder %v370_v50, 0.0 }
0x2f79   :  { %v3332_v4 = vmul.f32 1.442695, %v3331_v48  ;;  %v5133_v16 = vsel %vm5132_vm9, 1, %v7173_v30  ;;  %v8291_v30 = vld [vmem:[%s8655_s7 + $0x10] sm:$0xff]  }
0x2f7b   :  { %7094 = vpow2.f32 %v3332_v4 }
0x2f85   :  { %v8210_v10 = vpop.eup %7094 }
0x2f86   :  { %3335 = vrot.lane.b32.xlu1 %v8210_v10, %s7174_s1 }
0x2f8a   :  { %4867 = vrot.lane.b32.xlu1 %v7725_v33, %s7175_s3 }
0x2f8e   :  { %4962 = vrot.lane.b32.xlu1 %v7345_v62, %s7176_s15 }
0x2f92   :  { %4960 = vrot.lane.b32.xlu1 %v7324_v45, %s7176_s15 }
0x2f9e   :  { %v4860_v39 = vpop.xlane.xlu0 %4859 }
0x2f9f   :  { %7096 = vrcp.f32 %v4860_v39 }
0x2fa9   :  { %v7097_v54 = vpop.eup %7096 }
0x2faa   :  { %v4862_v27 = vmul.f32 %v7097_v54, %v7091_v6 }
0x2fac   :  { %v4863_v14 = vpack.c.bf16 %v4862_v27, %v4862_v27 }
0x2fae   :  { %4865 = vrot.lane.b32.xlu0 %v4863_v14, %s7186_s19 }
0x2fb2   :  { %3659 = vrot.lane.b32.xlu0 %v7802_v58, %s7176_s15  ;;  %v8234_v58 = vrot.slane %v7345_v62, 4  ;;  %v5217_v62 = vsel %vm456_vm8, %v8243_v55, 0 }
0x2fb4   :  { %v5145_v29 = vsel %vm99_vm0, %v8234_v58, 0 }
0x2fb6   :  { %3348 = vrot.lane.b32.xlu0 %v7727_v3, %s7174_s1 }
0x2ff8   :  { %v3336_v15 = vpop.permute.xlu1 %3335 }
0x2ff9   :  { %v3338_v49 = vsel %vm440_vm7, %v3336_v15, 0.0 }
0x2ffa   :  { %3339 = vadd.xlane.f32.xlu1 %v3338_v49 }
0x2ffc   :  { %v4868_v17 = vpop.permute.xlu1 %4867 }
0x2ffd   :  { %v4873_v20 = vsel %vm456_vm8, %v4868_v17, 0 }
0x2ffe   :  { %6752 = vmatpush3.bf16.msra.mxu1 %v4873_v20 }
0x2fff   :  { %6765 = vmatprep.subr.bf16.mxu1 %v7171_v28 }
0x3000   :  { %v4963_v31 = vpop.permute.xlu1 %4962 }
0x3001   :  { %v4968_v7 = vsel %vm99_vm0, %v4963_v31, 0 }
0x3004   :  { %v4961_v0 = vpop.permute.xlu1 %4960 }
0x3020   :  { %v4866_v36 = vpop.permute.xlu0 %4865 }
0x3021   :  { %6754 = vmatmul.mubr.msk.bf16.vlgmr.msra.gmra.mrb[172].mxu1 %vm440_vm7, %v4866_v36 }
0x3022   :  { %6766 = vmatpush3.bf16.xpose.msra.mxu1 %v4968_v7  ;;  %6767 = vmatprep.mubr.msk.bf16.mxu1 %vm7172_vm1, %v7171_v28 }
0x3023   :  { %6785 = vmatprep.subr.bf16.mxu1 %v7171_v28 }
0x3024   :  { %v3660_v59 = vpop.permute.xlu0 %3659 }
0x3025   :  { %v3662_v35 = vsel %vm7712_vm5, -1e+09, %v3660_v59 }
0x3026   :  { %v3663_v63 = vsel %vm8674_vm2, %v3662_v35, -inf }
0x3028   :  { %v3349_v45 = vpop.permute.xlu0 %3348 }
0x3029   :  { %6768 = vmatmul.mubr.msk.bf16.vlgmr.msra.gmra.mrb[176].mxu1 %vm99_vm0, %v4961_v0  ;;  %v3354_v51 = vsel %vm456_vm8, %v3349_v45, 0 }
0x302a   :  { %6786 = vmatpush3.bf16.xpose.msra.mxu1 %v5145_v29  ;;  %6787 = vmatprep.mubr.msk.bf16.mxu1 %vm7172_vm1, %v7171_v28 }
0x302b   :  { %6791 = vmatprep.subr.bf16.mxu1 %v7171_v28 }
0x3031   :  { %6788 = vmatmul.mubr.msk.bf16.vlgmr.msra.gmra.mrb[180].mxu1 %vm99_vm0, %v8246_v18 }
0x3032   :  { %6792 = vmatpush3.bf16.msra.mxu1 %v5217_v62  ;;  %6793 = vmatprep.mubr.msk.bf16.mxu1 %vm7172_vm1, %v7171_v28 }
0x3033   :  { %6805 = vmatprep.subr.bf16.mxu1 %v7171_v28 }
0x3038   :  { %v3045_v47 = vpop.f32.mrb[56].mxu0 }
0x3039   :  { %v3051_v25 = vpack.c.bf16 %v3045_v47, %v3045_v47  ;;  %v6535_v37 = vpop.f32.mrb[57].mxu0 }
0x303a   :  { %v3048_v38 = vpop.f32.mrb[58].mxu0 }
0x303b   :  { %v6536_v52 = vpop.f32.mrb[59].mxu0  ;;  %6542 = vmatmul.mubr.msk.bf16.vlgmr.msra.gmra.mrb[48].mxu0 %vm99_vm0, %v3051_v25 }
0x303c   :  { %6558 = vmatpush3.bf16.msra.mxu0 %v7935_v13  ;;  %6561 = vmatprep.mubr.msk.bf16.mxu0 %vm7172_vm1, %v7171_v28 }
0x303d   :  { %6559 = vmatprep.subr.bf16.mxu0 %v7171_v28 }
0x3040   :  { %6560 = vmatpush3.bf16.msra.mxu0 %v7944_v60 }
0x3041   :  { %6571 = vmatprep.subr.bf16.mxu0 %v7171_v28 }
0x3043   :  { %6562 = vmatmul.mubr.msk.bf16.vlgmr.msra.gmra.mrb[60].mxu0 %vm99_vm0, %v3226_v23 }
0x3044   :  { %6572 = vmatpush3.bf16.msra.mxu0 %v3354_v51  ;;  %6573 = vmatprep.mubr.msk.bf16.mxu0 %vm7172_vm1, %v7171_v28 }
0x3045   :  { %6577 = vmatprep.subr.bf16.mxu0 %v7171_v28 }
0x3087   :  { %v3340_v13 = vpop.xlane.xlu1 %3339 }
0x3088   :  { %7098 = vrcp.f32 %v3340_v13  ;;  %v8315_v13 = vld [vmem:[%s8655_s7 + $0x20] sm:$0xff]  }
0x3092   :  { %v7099_v6 = vpop.eup %7098 }
0x3093   :  { %v3342_v60 = vmul.f32 %v7099_v6, %v8210_v10  ;;  %v8324_v6 = vld [vmem:[%s8655_s7 + $0x28] sm:$0xff]  }
0x3095   :  { %v3343_v12 = vpack.c.bf16 %v3342_v60, %v3342_v60 }
0x3097   :  { %3345 = vrot.lane.b32.xlu0 %v3343_v12, %s7174_s1  ;;  %v3563_v12 = vpack.c.bf16 %v7800_v46, %v7800_v46 }
0x30b6   :  { %3664 = vmax.xlane.f32.xlu0 %v3663_v63 }
0x30cc   :  { %3999 = vrot.lane.b32.xlu0 %v7902_v32, %s7183_s28 }
0x30d0   :  { %5135 = vperm.xlu0 %6992, %v5133_v16  }
0x30f4   :  { %v8280_v21 = vpop.f32.mrb[172].mxu1 }
0x30f5   :  { %v6755_v9 = vpop.f32.mrb[173].mxu1 }
0x30f6   :  { %v4912_v22 = vpop.f32.mrb[174].mxu1 }
0x30f7   :  { %v6756_v41 = vpop.f32.mrb[175].mxu1 }
0x30fc   :  { %v8282_v42 = vpop.f32.mrb[176].mxu1 }
0x30fd   :  { %v6769_v1 = vpop.f32.mrb[177].mxu1 }
0x30fe   :  { %v5007_v57 = vpop.f32.mrb[178].mxu1 }
0x30ff   :  { %v6770_v26 = vpop.f32.mrb[179].mxu1 }
0x3100   :  { %v8355_v26 = vld [vmem:[%s8655_s7 + $0x30] sm:$0xff]  }
0x3104   :  { %v5181_v40 = vpop.f32.mrb[180].mxu1 }
0x3105   :  { %5188 = vrot.lane.b32.xlu0 %v5181_v40, %s7187_s23  ;;  %v6789_v53 = vpop.f32.mrb[181].mxu1 }
0x3106   :  { %v5184_v48 = vpop.f32.mrb[182].mxu1 }
0x3107   :  { %v6790_v32 = vpop.f32.mrb[183].mxu1 }
0x3109   :  { %v3346_v4 = vpop.permute.xlu0 %3345  ;;  %3682 = vrot.lane.b32.xlu0 %v7727_v3, %s7176_s15  ;;  %v8302_v3 = vld [vmem:[%s8655_s7 + $0x18] sm:$0xff]  }
0x310a   :  { %6574 = vmatmul.mubr.msk.bf16.vlgmr.msra.gmra.mrb[64].mxu0 %vm440_vm7, %v3346_v4 }
0x310b   :  { %6578 = vmatpush3.bf16.msra.mxu0 %v8291_v30  ;;  %6581 = vmatprep.mubr.msk.bf16.mxu0 %vm7172_vm1, %v7171_v28 }
0x310c   :  { %6579 = vmatprep.subr.bf16.mxu0 %v7171_v28 }
0x310e   :  { %v8297_v10 = vpop.f32.mrb[48].mxu0 }
0x310f   :  { %v6543_v39 = vpop.f32.mrb[49].mxu0  ;;  %6580 = vmatpush3.bf16.msra.mxu0 %v8302_v3 }
0x3110   :  { %v3092_v54 = vpop.f32.mrb[50].mxu0  ;;  %6597 = vmatprep.subr.bf16.mxu0 %v7171_v28 }
0x3111   :  { %v6544_v27 = vpop.f32.mrb[51].mxu0 }
0x3143   :  { %v3665_v14 = vpop.xlane.xlu0 %3664 }
0x3144   :  { %v3666_v15 = vsub.f32 %v3662_v35, %v3665_v14 }
0x3146   :  { %v3667_v49 = vmul.f32 1.442695, %v3666_v15 }
0x3147   :  { %v4000_v17 = vpop.permute.xlu0 %3999 }
0x3148   :  { %7100 = vpow2.f32 %v3667_v49  ;;  %v4002_v20 = vsel %vm7807_vm3, -1e+09, %v4000_v17 }
0x3149   :  { %v4003_v31 = vsel %vm3836_vm13, %v4002_v20, -inf }
0x314a   :  { %4004 = vmax.xlane.f32.xlu0 %v4003_v31 }
0x314f   :  { %v5136_v29 = vpop.permute.xlu0 %5135 }
0x3150   :  { %vm5137_vm10 = vcmp.eq.s32.totalorder %v5136_v29, 1  ;;  %v8384_v29 = vld [vmem:[%s8655_s7] sm:$0xff]  }
0x3151   :  { %vm8339_vm5 = vmor %vm5137_vm10, %vm391_vm4  ;;  %vm1742_vm4 = vcmask 523520  }
0x3152   :  { %v7101_v36 = vpop.eup %7100 }
0x3153   :  { %3670 = vrot.lane.b32.xlu1 %v7101_v36, %s7174_s1 }
0x3177   :  { %v5189_v62 = vpop.permute.xlu0 %5188 }
0x3178   :  { %v5191_v22 = vsel %vm8339_vm5, -1e+09, %v5189_v62  ;;  %v3903_v62 = vpack.c.bf16 %v7900_v2, %v7900_v2 }
0x3179   :  { %v5193_v41 = vsel %vm5192_vm6, %v5191_v22, -inf }
0x317b   :  { %v3683_v47 = vpop.permute.xlu0 %3682 }
0x317c   :  { %v3688_v35 = vsel %vm456_vm8, %v3683_v47, 0 }
0x31c5   :  { %v3671_v7 = vpop.permute.xlu1 %3670 }
0x31c6   :  { %v3673_v0 = vsel %vm440_vm7, %v3671_v7, 0.0 }
0x31c7   :  { %3674 = vadd.xlane.f32.xlu1 %v3673_v0 }
0x31d7   :  { %v4005_v25 = vpop.xlane.xlu0 %4004 }
0x31d8   :  { %v4006_v37 = vsub.f32 %v4002_v20, %v4005_v25 }
0x31da   :  { %v4007_v59 = vmul.f32 1.442695, %v4006_v37 }
0x31dc   :  { %7102 = vpow2.f32 %v4007_v59 }
0x31dd   :  { %v3390_v38 = vpop.f32.mrb[64].mxu0 }
0x31de   :  { %v3396_v52 = vpack.c.bf16 %v3390_v38, %v3390_v38  ;;  %v6575_v45 = vpop.f32.mrb[65].mxu0 }
0x31df   :  { %v3393_v23 = vpop.f32.mrb[66].mxu0 }
0x31e0   :  { %v6576_v51 = vpop.f32.mrb[67].mxu0  ;;  %6582 = vmatmul.mubr.msk.bf16.vlgmr.msra.gmra.mrb[60].mxu0 %vm99_vm0, %v3396_v52 }
0x31e1   :  { %6598 = vmatpush3.bf16.msra.mxu0 %v8315_v13  ;;  %6601 = vmatprep.mubr.msk.bf16.mxu0 %vm7172_vm1, %v7171_v28 }
0x31e2   :  { %6599 = vmatprep.subr.bf16.mxu0 %v7171_v28 }
0x31e5   :  { %6600 = vmatpush3.bf16.msra.mxu0 %v8324_v6 }
0x31e6   :  { %v7103_v60 = vpop.eup %7102  ;;  %6611 = vmatprep.subr.bf16.mxu0 %v7171_v28 }
0x31e7   :  { %4010 = vrot.lane.b32.xlu0 %v7103_v60, %s7184_s29 }
0x31ec   :  { %6602 = vmatmul.mubr.msk.bf16.vlgmr.msra.gmra.mrb[60].mxu0 %vm99_vm0, %v3563_v12 }
0x31ed   :  { %6612 = vmatpush3.bf16.msra.mxu0 %v3688_v35  ;;  %6613 = vmatprep.mubr.msk.bf16.mxu0 %vm7172_vm1, %v7171_v28 }
0x31ee   :  { %6617 = vmatprep.subr.bf16.mxu0 %v7171_v28 }
0x3254   :  { %v3675_v63 = vpop.xlane.xlu1 %3674 }
0x3255   :  { %7104 = vrcp.f32 %v3675_v63 }
0x3259   :  { %v4011_v1 = vpop.permute.xlu0 %4010 }
0x325a   :  { %v4013_v57 = vsel %vm440_vm7, %v4011_v1, 0.0  ;;  %v8427_v1 = vld [vmem:[%s8656_s8] ss:$0 sm:$0xff]  ;;  %s7189_s8 = smov [#allocation2]  }
0x325f   :  { %v7105_v50 = vpop.eup %7104 }
0x3260   :  { %v3677_v16 = vmul.f32 %v7105_v50, %v7101_v36 }
0x3262   :  { %v3678_v9 = vpack.c.bf16 %v3677_v16, %v3677_v16 }
0x3264   :  { %3680 = vrot.lane.b32.xlu1 %v3678_v9, %s7174_s1 }
0x3288   :  { %5194 = vmax.xlane.f32.xlu1 %v5193_v41 }
0x328c   :  { %4014 = vadd.xlane.f32.xlu1 %v4013_v57 }
0x329d   :  { %4333 = vrot.lane.b32.xlu1 %v8039_v61, %s7183_s28  ;;  %v8364_v61 = vld [vmem:[%s8655_s7 + $0x38] sm:$0xff]  }
0x32a1   :  { %4022 = vrot.lane.b32.xlu1 %v7788_v43, %s7174_s1 }
0x32d6   :  { %v3681_v8 = vpop.permute.xlu1 %3680 }
0x32d7   :  { %6614 = vmatmul.mubr.msk.bf16.vlgmr.msra.gmra.mrb[68].mxu0 %vm440_vm7, %v3681_v8 }
0x32d8   :  { %6618 = vmatpush3.bf16.msra.mxu0 %v8355_v26  ;;  %6621 = vmatprep.mubr.msk.bf16.mxu0 %vm7172_vm1, %v7171_v28 }
0x32d9   :  { %6619 = vmatprep.subr.bf16.mxu0 %v7171_v28 }
0x32dc   :  { %6620 = vmatpush3.bf16.msra.mxu0 %v8364_v61 }
0x32dd   :  { %6637 = vmatprep.subr.bf16.mxu0 %v7171_v28 }
0x3315   :  { %v5195_v40 = vpop.xlane.xlu1 %5194 }
0x3316   :  { %v5196_v53 = vsub.f32 %v5191_v22, %v5195_v40 }
0x3318   :  { %v5197_v48 = vmul.f32 1.442695, %v5196_v53 }
0x3319   :  { %v4015_v32 = vpop.xlane.xlu1 %4014 }
0x331a   :  { %7106 = vpow2.f32 %v5197_v48 }
0x331b   :  { %7108 = vrcp.f32 %v4015_v32 }
0x331d   :  { %v4334_v14 = vpop.permute.xlu1 %4333 }
0x331e   :  { %v4336_v15 = vsel %vm7807_vm3, -1e+09, %v4334_v14  ;;  %v4237_v14 = vpack.c.bf16 %v8037_v56, %v8037_v56  ;;  %vm3100_vm3 = vcmask 1048320  }
0x331f   :  { %v4337_v49 = vsel %vm3836_vm13, %v4336_v15, -inf }
0x3324   :  { %v7107_v4 = vpop.eup %7106 }
0x3325   :  { %v7109_v39 = vpop.eup %7108  ;;  %5200 = vrot.lane.b32.xlu0 %v7107_v4, %s7188_s25 }
0x3326   :  { %v4017_v54 = vmul.f32 %v7109_v39, %v7103_v60 }
0x3328   :  { %v4018_v27 = vpack.c.bf16 %v4017_v54, %v4017_v54 }
0x332a   :  { %4020 = vrot.lane.b32.xlu1 %v4018_v27, %s7184_s29 }
0x334e   :  { %4338 = vmax.xlane.f32.xlu1 %v4337_v49 }
0x335f   :  { %5471 = vrot.lane.b32.xlu1 %v8246_v18, %s7175_s3 }
0x3363   :  { %4676 = vrot.lane.b32.xlu1 %v8158_v34, %s7185_s17  ;;  %v8395_v34 = vld [vmem:[%s8655_s7 + $0x8] sm:$0xff]  }
0x3367   :  { %4356 = vrot.lane.b32.xlu1 %v7788_v43, %s7176_s15  ;;  %v4023_v43 = vpop.permute.xlu1 %4022 }
0x3368   :  { %v4028_v47 = vsel %vm456_vm8, %v4023_v43, 0 }
0x3397   :  { %v5201_v17 = vpop.permute.xlu0 %5200 }
0x3398   :  { %v5203_v20 = vsel %vm440_vm7, %v5201_v17, 0.0 }
0x3399   :  { %5204 = vadd.xlane.f32.xlu0 %v5203_v20 }
0x339c   :  { %v4021_v25 = vpop.permute.xlu1 %4020 }
0x33aa   :  { %v3724_v31 = vpop.f32.mrb[68].mxu0 }
0x33ab   :  { %v3730_v36 = vpack.c.bf16 %v3724_v31, %v3724_v31  ;;  %v6615_v5 = vpop.f32.mrb[69].mxu0 }
0x33ac   :  { %v3727_v7 = vpop.f32.mrb[70].mxu0 }
0x33ad   :  { %v6616_v0 = vpop.f32.mrb[71].mxu0  ;;  %6622 = vmatmul.mubr.msk.bf16.vlgmr.msra.gmra.mrb[60].mxu0 %vm99_vm0, %v3730_v36 }
0x33ae   :  { %6638 = vmatpush3.bf16.msra.mxu0 %v8384_v29  ;;  %6641 = vmatprep.mubr.msk.bf16.mxu0 %vm7172_vm1, %v7171_v28 }
0x33af   :  { %5306 = vrot.lane.b32.xlu0 %v8234_v58, %s7174_s1  ;;  %6639 = vmatprep.subr.bf16.mxu0 %v7171_v28 }
0x33b2   :  { %6640 = vmatpush3.bf16.msra.mxu0 %v8395_v34 }
0x33b3   :  { %6651 = vmatprep.subr.bf16.mxu0 %v7171_v28 }
0x33b5   :  { %6642 = vmatmul.mubr.msk.bf16.vlgmr.msra.gmra.mrb[72].mxu0 %vm99_vm0, %v3903_v62 }
0x33b6   :  { %6652 = vmatpush3.bf16.msra.mxu0 %v4028_v47  ;;  %6653 = vmatprep.mubr.msk.bf16.mxu0 %vm7172_vm1, %v7171_v28 }
0x33b7   :  { %6657 = vmatprep.subr.bf16.mxu0 %v7171_v28 }
0x33bd   :  { %6654 = vmatmul.mubr.msk.bf16.vlgmr.msra.gmra.mrb[76].mxu0 %vm440_vm7, %v4021_v25 }
0x33be   :  { %6658 = vmatpush3.bf16.msra.mxu0 %v8291_v30  ;;  %6661 = vmatprep.mubr.msk.bf16.mxu0 %vm7172_vm1, %v7171_v28 }
0x33bf   :  { %6659 = vmatprep.subr.bf16.mxu0 %v7171_v28 }
0x33c2   :  { %6660 = vmatpush3.bf16.msra.mxu0 %v8302_v3 }
0x33c3   :  { %6677 = vmatprep.subr.bf16.mxu0 %v7171_v28 }
0x33db   :  { %v4339_v2 = vpop.xlane.xlu1 %4338 }
0x33dc   :  { %v4340_v23 = vsub.f32 %v4336_v15, %v4339_v2 }
0x33de   :  { %v4341_v12 = vmul.f32 1.442695, %v4340_v23 }
0x33df   :  { %v8413_v37 = vpop.permute.xlu1 %5471 }
0x33e3   :  { %v4677_v59 = vpop.permute.xlu1 %4676 }
0x33e4   :  { %v4679_v38 = vsel %vm8047_vm14, -1e+09, %v4677_v59 }
0x33e5   :  { %v4680_v52 = vsel %vm4512_vm12, %v4679_v38, -inf }
0x33e6   :  { %4681 = vmax.xlane.f32.xlu1 %v4680_v52 }
0x33e7   :  { %v4357_v50 = vpop.permute.xlu1 %4356 }
0x33e8   :  { %v4362_v15 = vsel %vm456_vm8, %v4357_v50, 0 }
0x3426   :  { %v5205_v45 = vpop.xlane.xlu0 %5204 }
0x3427   :  { %7110 = vrcp.f32 %v5205_v45 }
0x3428   :  { %7112 = vpow2.f32 %v4341_v12 }
0x342a   :  { %v5307_v49 = vpop.permute.xlu0 %5306 }
0x342b   :  { %v5312_v20 = vsel %vm99_vm0, %v5307_v49, 0 }
0x3431   :  { %v7111_v51 = vpop.eup %7110 }
0x3432   :  { %v5207_v60 = vmul.f32 %v7111_v51, %v7107_v4  ;;  %v7113_v63 = vpop.eup %7112 }
0x3434   :  { %v5208_v35 = vpack.c.bf16 %v5207_v60, %v5207_v60 }
0x3436   :  { %5210 = vrot.lane.b32.xlu0 %v5208_v35, %s7188_s25 }
0x343a   :  { %5304 = vrot.lane.b32.xlu0 %v8246_v18, %s7174_s1 }
0x343e   :  { %5473 = vrot.lane.b32.xlu0 %v8234_v58, %s7175_s3 }
0x3442   :  { %4344 = vrot.lane.b32.xlu0 %v7113_v63, %s7184_s29 }
0x3473   :  { %v4682_v16 = vpop.xlane.xlu1 %4681 }
0x3474   :  { %v4683_v9 = vsub.f32 %v4679_v38, %v4682_v16 }
0x3476   :  { %v4684_v22 = vmul.f32 1.442695, %v4683_v9 }
0x3478   :  { %7114 = vpow2.f32 %v4684_v22 }
0x3480   :  { %v3768_v41 = vpop.f32.mrb[60].mxu0 }
0x3481   :  { %v6873_v57 = vadd.f32 %v8427_v1, %v3768_v41  ;;  %v6623_v8 = vpop.f32.mrb[61].mxu0 }
0x3482   :  { %v8430_v40 = vpop.eup %7114  ;;  %v3771_v53 = vpop.f32.mrb[62].mxu0 }
0x3483   :  { %3775 = vst.msk [vmem:[#allocation2 + $0x8] sm:$0xff] %vm99_vm0, %v6873_v57  ;;  %4687 = vrot.lane.b32.xlu1 %v8430_v40, %s7186_s19  ;;  %v6624_v48 = vpop.f32.mrb[63].mxu0 }
0x3490   :  { %v4064_v32 = vpop.f32.mrb[76].mxu0 }
0x3491   :  { %v4070_v4 = vpack.c.bf16 %v4064_v32, %v4064_v32  ;;  %v6655_v39 = vpop.f32.mrb[77].mxu0 }
0x3492   :  { %v4067_v54 = vpop.f32.mrb[78].mxu0 }
0x3493   :  { %v6656_v27 = vpop.f32.mrb[79].mxu0  ;;  %6662 = vmatmul.mubr.msk.bf16.vlgmr.msra.gmra.mrb[72].mxu0 %vm99_vm0, %v4070_v4 }
0x3494   :  { %6678 = vmatpush3.bf16.msra.mxu0 %v8315_v13  ;;  %6681 = vmatprep.mubr.msk.bf16.mxu0 %vm7172_vm1, %v7171_v28 }
0x3495   :  { %6679 = vmatprep.subr.bf16.mxu0 %v7171_v28 }
0x3498   :  { %6680 = vmatpush3.bf16.msra.mxu0 %v8324_v6 }
0x3499   :  { %6691 = vmatprep.subr.bf16.mxu0 %v7171_v28 }
0x349f   :  { %6682 = vmatmul.mubr.msk.bf16.vlgmr.msra.gmra.mrb[72].mxu0 %vm99_vm0, %v4237_v14 }
0x34a0   :  { %6692 = vmatpush3.bf16.msra.mxu0 %v4362_v15  ;;  %6693 = vmatprep.mubr.msk.bf16.mxu0 %vm7172_vm1, %v7171_v28 }
0x34a1   :  { %6697 = vmatprep.subr.bf16.mxu0 %v7171_v28 }
0x34a8   :  { %v5211_v17 = vpop.permute.xlu0 %5210 }
0x34a9   :  { %6794 = vmatmul.mubr.msk.bf16.vlgmr.msra.gmra.mrb[184].mxu1 %vm440_vm7, %v5211_v17 }
0x34aa   :  { %6806 = vmatpush3.bf16.xpose.msra.mxu1 %v5312_v20  ;;  %6807 = vmatprep.mubr.msk.bf16.mxu1 %vm7172_vm1, %v7171_v28 }
0x34ab   :  { %6825 = vmatprep.subr.bf16.mxu1 %v7171_v28 }
0x34ac   :  { %v5305_v56 = vpop.permute.xlu0 %5304 }
0x34b0   :  { %v5474_v31 = vpop.permute.xlu0 %5473 }
0x34b1   :  { %v5479_v36 = vsel %vm99_vm0, %v5474_v31, 0  ;;  %6808 = vmatmul.mubr.msk.bf16.vlgmr.msra.gmra.mrb[188].mxu1 %vm99_vm0, %v5305_v56  ;;  %v4578_v56 = vpack.c.bf16 %v8148_v19, %v8148_v19 }
0x34b2   :  { %6826 = vmatpush3.bf16.xpose.msra.mxu1 %v5479_v36  ;;  %6827 = vmatprep.mubr.msk.bf16.mxu1 %vm7172_vm1, %v7171_v28 }
0x34b3   :  { %6831 = vmatprep.subr.bf16.mxu1 %v7171_v28 }
0x34b4   :  { %v4345_v5 = vpop.permute.xlu0 %4344 }
0x34b5   :  { %v4347_v7 = vsel %vm440_vm7, %v4345_v5, 0.0 }
0x34b6   :  { %4348 = vadd.xlane.f32.xlu0 %v4347_v7 }
0x34b9   :  { %6828 = vmatmul.mubr.msk.bf16.vlgmr.msra.gmra.mrb[192].mxu1 %vm99_vm0, %v8413_v37 }
0x34ba   :  { %6833 = vmatprep.mubr.msk.bf16.mxu1 %vm7172_vm1, %v7171_v28 }
0x34f5   :  { %v4688_v0 = vpop.permute.xlu1 %4687 }
0x34f6   :  { %v4690_v43 = vsel %vm440_vm7, %v4688_v0, 0.0 }
0x34f7   :  { %4691 = vadd.xlane.f32.xlu1 %v4690_v43 }
0x3543   :  { %v4349_v62 = vpop.xlane.xlu0 %4348 }
0x3544   :  { %7116 = vrcp.f32 %v4349_v62 }
0x354e   :  { %v7117_v47 = vpop.eup %7116 }
0x354f   :  { %v4351_v25 = vmul.f32 %v7117_v47, %v7113_v63 }
0x3551   :  { %v4352_v2 = vpack.c.bf16 %v4351_v25, %v4351_v25 }
0x3553   :  { %4354 = vrot.lane.b32.xlu0 %v4352_v2, %s7184_s29 }
0x357c   :  { %v8466_v59 = vpop.f32.mrb[184].mxu1 }
0x357d   :  { %v6795_v38 = vpop.f32.mrb[185].mxu1 }
0x357e   :  { %v5256_v52 = vpop.f32.mrb[186].mxu1 }
0x357f   :  { %v6796_v45 = vpop.f32.mrb[187].mxu1 }
0x3584   :  { %v8468_v37 = vpop.f32.mrb[188].mxu1  ;;  %v4692_v57 = vpop.xlane.xlu1 %4691 }
0x3585   :  { %v6809_v23 = vpop.f32.mrb[189].mxu1  ;;  %7118 = vrcp.f32 %v4692_v57 }
0x3586   :  { %v5351_v51 = vpop.f32.mrb[190].mxu1 }
0x3587   :  { %v6810_v60 = vpop.f32.mrb[191].mxu1 }
0x358c   :  { %v5515_v12 = vpop.f32.mrb[192].mxu1 }
0x358d   :  { %5522 = vrot.lane.b32.xlu0 %v5515_v12, %s7187_s23  ;;  %v6829_v35 = vpop.f32.mrb[193].mxu1 }
0x358e   :  { %v5518_v50 = vpop.f32.mrb[194].mxu1 }
0x358f   :  { %v6830_v16 = vpop.f32.mrb[195].mxu1  ;;  %v7119_v8 = vpop.eup %7118 }
0x3590   :  { %v4694_v53 = vmul.f32 %v7119_v8, %v8430_v40 }
0x3592   :  { %v4695_v48 = vpack.c.bf16 %v4694_v53, %v4694_v53 }
0x35c5   :  { %v4355_v63 = vpop.permute.xlu0 %4354 }
0x35c6   :  { %6694 = vmatmul.mubr.msk.bf16.vlgmr.msra.gmra.mrb[80].mxu0 %vm440_vm7, %v4355_v63 }
0x35c7   :  { %6698 = vmatpush3.bf16.msra.mxu0 %v8355_v26  ;;  %6701 = vmatprep.mubr.msk.bf16.mxu0 %vm7172_vm1, %v7171_v28 }
0x35c8   :  { %6699 = vmatprep.subr.bf16.mxu0 %v7171_v28 }
0x35cb   :  { %6700 = vmatpush3.bf16.msra.mxu0 %v8364_v61 }
0x35cc   :  { %6717 = vmatprep.subr.bf16.mxu0 %v7171_v28 }
0x35ff   :  { %v5523_v9 = vpop.permute.xlu0 %5522 }
0x3600   :  { %v5525_v22 = vsel %vm8339_vm5, -1e+09, %v5523_v9 }
0x3601   :  { %v5526_v41 = vsel %vm5192_vm6, %v5525_v22, -inf }
0x3602   :  { %5527 = vmax.xlane.f32.xlu0 %v5526_v41 }
0x3618   :  { %5011 = vrot.lane.b32.xlu0 %v8282_v42, %s7185_s17 }
0x361c   :  { %4700 = vrot.lane.b32.xlu0 %v7725_v33, %s7174_s1 }
0x3620   :  { %4697 = vrot.lane.b32.xlu0 %v4695_v48, %s7186_s19 }
0x368f   :  { %v5528_v32 = vpop.xlane.xlu0 %5527 }
0x3690   :  { %v5529_v4 = vsub.f32 %v5525_v22, %v5528_v32 }
0x3692   :  { %v5530_v39 = vmul.f32 1.442695, %v5529_v4 }
0x3693   :  { %v5012_v54 = vpop.permute.xlu0 %5011 }
0x3694   :  { %7120 = vpow2.f32 %v5530_v39  ;;  %v5014_v27 = vsel %vm8047_vm14, -1e+09, %v5012_v54 }
0x3695   :  { %v5015_v14 = vsel %vm4512_vm12, %v5014_v27, -inf }
0x3696   :  { %5016 = vmax.xlane.f32.xlu0 %v5015_v14 }
0x3697   :  { %v4701_v11 = vpop.permute.xlu0 %4700 }
0x3698   :  { %v4706_v31 = vsel %vm456_vm8, %v4701_v11, 0 }
0x3699   :  { %v4398_v42 = vpop.f32.mrb[80].mxu0 }
0x369a   :  { %v4404_v15 = vpack.c.bf16 %v4398_v42, %v4398_v42  ;;  %v6695_v40 = vpop.f32.mrb[81].mxu0 }
0x369b   :  { %v4401_v49 = vpop.f32.mrb[82].mxu0  ;;  %v4698_v36 = vpop.permute.xlu0 %4697 }
0x369c   :  { %v6696_v17 = vpop.f32.mrb[83].mxu0  ;;  %6702 = vmatmul.mubr.msk.bf16.vlgmr.msra.gmra.mrb[72].mxu0 %vm99_vm0, %v4404_v15 }
0x369d   :  { %6718 = vmatpush3.bf16.msra.mxu0 %v8384_v29  ;;  %6721 = vmatprep.mubr.msk.bf16.mxu0 %vm7172_vm1, %v7171_v28 }
0x369e   :  { %v7121_v20 = vpop.eup %7120  ;;  %6719 = vmatprep.subr.bf16.mxu0 %v7171_v28 }
0x369f   :  { %5533 = vrot.lane.b32.xlu1 %v7121_v20, %s7188_s25 }
0x36a1   :  { %6720 = vmatpush3.bf16.msra.mxu0 %v8395_v34 }
0x36a2   :  { %6731 = vmatprep.subr.bf16.mxu0 %v7171_v28 }
0x36a4   :  { %6722 = vmatmul.mubr.msk.bf16.vlgmr.msra.gmra.mrb[84].mxu0 %vm99_vm0, %v4578_v56 }
0x36a5   :  { %6732 = vmatpush3.bf16.msra.mxu0 %v4706_v31  ;;  %6733 = vmatprep.mubr.msk.bf16.mxu0 %vm7172_vm1, %v7171_v28 }
0x36a6   :  { %6737 = vmatprep.subr.bf16.mxu0 %v7171_v28 }
0x36ac   :  { %6734 = vmatmul.mubr.msk.bf16.vlgmr.msra.gmra.mrb[88].mxu0 %vm440_vm7, %v4698_v36 }
0x36ad   :  { %6738 = vmatpush3.bf16.msra.mxu0 %v8291_v30  ;;  %6741 = vmatprep.mubr.msk.bf16.mxu0 %vm7172_vm1, %v7171_v28 }
0x36ae   :  { %6739 = vmatprep.subr.bf16.mxu0 %v7171_v28 }
0x36b1   :  { %6740 = vmatpush3.bf16.msra.mxu0 %v8302_v3 }
0x36b2   :  { %6757 = vmatprep.subr.bf16.mxu0 %v7171_v28 }
0x3711   :  { %v5534_v19 = vpop.permute.xlu1 %5533 }
0x3712   :  { %v5536_v5 = vsel %vm440_vm7, %v5534_v19, 0.0 }
0x3713   :  { %5537 = vadd.xlane.f32.xlu1 %v5536_v5 }
0x3723   :  { %v5017_v7 = vpop.xlane.xlu0 %5016 }
0x3724   :  { %v5018_v0 = vsub.f32 %v5014_v27, %v5017_v7  ;;  %5545 = vrot.lane.b32.xlu1 %v8243_v55, %s7175_s3 }
0x3726   :  { %v5019_v43 = vmul.f32 1.442695, %v5018_v0 }
0x3728   :  { %7122 = vpow2.f32 %v5019_v43  ;;  %5638 = vrot.lane.b32.xlu1 %v8246_v18, %s7176_s15 }
0x372c   :  { %5355 = vrot.lane.b32.xlu1 %v8468_v37, %s7187_s23 }
0x3730   :  { %5034 = vrot.lane.b32.xlu1 %v7725_v33, %s7176_s15  ;;  %v4915_v33 = vpack.c.bf16 %v8280_v21, %v8280_v21 }
0x3732   :  { %v7123_v62 = vpop.eup %7122 }
0x3733   :  { %5022 = vrot.lane.b32.xlu0 %v7123_v62, %s7186_s19 }
0x3737   :  { %5640 = vrot.lane.b32.xlu0 %v8234_v58, %s7176_s15 }
0x376f   :  { %v8524_v47 = vpop.f32.mrb[72].mxu0 }
0x3770   :  { %v6703_v25 = vpop.f32.mrb[73].mxu0 }
0x3771   :  { %v4445_v2 = vpop.f32.mrb[74].mxu0 }
0x3772   :  { %v6704_v38 = vpop.f32.mrb[75].mxu0 }
0x377f   :  { %v4742_v52 = vpop.f32.mrb[88].mxu0 }
0x3780   :  { %v4748_v45 = vpack.c.bf16 %v4742_v52, %v4742_v52  ;;  %v6735_v18 = vpop.f32.mrb[89].mxu0 }
0x3781   :  { %v4745_v23 = vpop.f32.mrb[90].mxu0 }
0x3782   :  { %v6736_v51 = vpop.f32.mrb[91].mxu0  ;;  %6742 = vmatmul.mubr.msk.bf16.vlgmr.msra.gmra.mrb[84].mxu0 %vm99_vm0, %v4748_v45 }
0x3783   :  { %6758 = vmatpush3.bf16.msra.mxu0 %v8315_v13  ;;  %6761 = vmatprep.mubr.msk.bf16.mxu0 %vm7172_vm1, %v7171_v28 }
0x3784   :  { %6759 = vmatprep.subr.bf16.mxu0 %v7171_v28 }
0x3787   :  { %6760 = vmatpush3.bf16.msra.mxu0 %v8324_v6 }
0x3788   :  { %6771 = vmatprep.subr.bf16.mxu0 %v7171_v28 }
0x378e   :  { %6762 = vmatmul.mubr.msk.bf16.vlgmr.msra.gmra.mrb[84].mxu0 %vm99_vm0, %v4915_v33 }
0x378f   :  { %6773 = vmatprep.mubr.msk.bf16.mxu0 %vm7172_vm1, %v7171_v28 }
0x37a0   :  { %v5538_v58 = vpop.xlane.xlu1 %5537 }
0x37a1   :  { %7124 = vrcp.f32 %v5538_v58 }
0x37a4   :  { %v5546_v37 = vpop.permute.xlu1 %5545 }
0x37a5   :  { %v5551_v60 = vsel %vm456_vm8, %v5546_v37, 0  ;;  %v5023_v57 = vpop.permute.xlu0 %5022 }
0x37a6   :  { %6832 = vmatpush3.bf16.msra.mxu1 %v5551_v60  ;;  %v5025_v8 = vsel %vm440_vm7, %v5023_v57, 0.0  ;;  %v6872_v57 = vadd.f32 %v8427_v1, %v8297_v10 }
0x37a7   :  { %6845 = vmatprep.subr.bf16.mxu1 %v7171_v28 }
0x37a8   :  { %v5639_v12 = vpop.permute.xlu1 %5638 }
0x37a9   :  { %v5641_v53 = vpop.permute.xlu0 %5640 }
0x37aa   :  { %v5646_v32 = vsel %vm99_vm0, %v5641_v53, 0 }
0x37ab   :  { %v7125_v35 = vpop.eup %7124 }
0x37ac   :  { %v5356_v50 = vpop.permute.xlu1 %5355  ;;  %v5540_v16 = vmul.f32 %v7125_v35, %v7121_v20 }
0x37ad   :  { %v5358_v21 = vsel %vm8339_vm5, -1e+09, %v5356_v50 }
0x37ae   :  { %v5359_v63 = vsel %vm5192_vm6, %v5358_v21, -inf  ;;  %v5541_v9 = vpack.c.bf16 %v5540_v16, %v5540_v16 }
0x37af   :  { %5360 = vmax.xlane.f32.xlu1 %v5359_v63 }
0x37b0   :  { %v5035_v22 = vpop.permute.xlu1 %5034  ;;  %5543 = vrot.lane.b32.xlu0 %v5541_v9, %s7188_s25 }
0x37b1   :  { %v5040_v41 = vsel %vm456_vm8, %v5035_v22, 0 }
0x37b2   :  { %6772 = vmatpush3.bf16.msra.mxu0 %v5040_v41 }
0x37b3   :  { %6777 = vmatprep.subr.bf16.mxu0 %v7171_v28 }
0x37cf   :  { %5026 = vadd.xlane.f32.xlu0 %v5025_v8 }
0x3822   :  { %v5544_v48 = vpop.permute.xlu0 %5543 }
0x3823   :  { %6834 = vmatmul.mubr.msk.bf16.vlgmr.msra.gmra.mrb[196].mxu1 %vm440_vm7, %v5544_v48 }
0x3824   :  { %6846 = vmatpush3.bf16.xpose.msra.mxu1 %v5646_v32  ;;  %6847 = vmatprep.mubr.msk.bf16.mxu1 %vm7172_vm1, %v7171_v28 }
0x382b   :  { %6848 = vmatmul.mubr.msk.bf16.vlgmr.msra.gmra.mrb[200].mxu1 %vm99_vm0, %v5639_v12 }
0x383c   :  { %v5361_v4 = vpop.xlane.xlu1 %5360 }
0x383d   :  { %v5362_v39 = vsub.f32 %v5358_v21, %v5361_v4 }
0x383f   :  { %v5363_v54 = vmul.f32 1.442695, %v5362_v39  ;;  %v6870_v39 = vadd.f32 %v8427_v1, %v8079_v44 }
0x3841   :  { %7126 = vpow2.f32 %v5363_v54  ;;  %v6871_v54 = vadd.f32 %v8427_v1, %v8165_v24 }
0x384b   :  { %v7127_v27 = vpop.eup %7126 }
0x384c   :  { %5366 = vrot.lane.b32.xlu1 %v7127_v27, %s7188_s25 }
0x385c   :  { %v5027_v14 = vpop.xlane.xlu0 %5026 }
0x385d   :  { %7128 = vrcp.f32 %v5027_v14 }
0x3867   :  { %v7129_v42 = vpop.eup %7128 }
0x3868   :  { %v5029_v15 = vmul.f32 %v7129_v42, %v7123_v62 }
0x386a   :  { %v5030_v40 = vpack.c.bf16 %v5029_v15, %v5029_v15 }
0x386c   :  { %5032 = vrot.lane.b32.xlu0 %v5030_v40, %s7186_s19 }
0x38be   :  { %v5367_v49 = vpop.permute.xlu1 %5366 }
0x38bf   :  { %v5369_v17 = vsel %vm440_vm7, %v5367_v49, 0.0 }
0x38c0   :  { %5370 = vadd.xlane.f32.xlu0 %v5369_v17 }
0x38de   :  { %v5033_v20 = vpop.permute.xlu0 %5032 }
0x38df   :  { %6774 = vmatmul.mubr.msk.bf16.vlgmr.msra.gmra.mrb[92].mxu0 %vm440_vm7, %v5033_v20 }
0x38e0   :  { %6778 = vmatpush3.bf16.msra.mxu0 %v8355_v26  ;;  %6781 = vmatprep.mubr.msk.bf16.mxu0 %vm7172_vm1, %v7171_v28 }
0x38e1   :  { %6779 = vmatprep.subr.bf16.mxu0 %v7171_v28 }
0x38e4   :  { %6780 = vmatpush3.bf16.msra.mxu0 %v8364_v61 }
0x38e5   :  { %6797 = vmatprep.subr.bf16.mxu0 %v7171_v28 }
0x38f6   :  { %v8562_v11 = vpop.f32.mrb[196].mxu1 }
0x38f7   :  { %v6835_v56 = vpop.f32.mrb[197].mxu1  ;;  %v5593_v10 = vpack.c.bf16 %v8562_v11, %v8562_v11 }
0x38f8   :  { %v5590_v31 = vpop.f32.mrb[198].mxu1 }
0x38f9   :  { %v6836_v36 = vpop.f32.mrb[199].mxu1 }
0x38fe   :  { %v5682_v19 = vpop.f32.mrb[200].mxu1 }
0x38ff   :  { %5689 = vrot.lane.b32.xlu1 %v5682_v19, %s7187_s23  ;;  %v6849_v5 = vpop.f32.mrb[201].mxu1 }
0x3900   :  { %v5685_v7 = vpop.f32.mrb[202].mxu1 }
0x3901   :  { %v6850_v0 = vpop.f32.mrb[203].mxu1 }
0x3903   :  { %5378 = vrot.lane.b32.xlu1 %v8243_v55, %s7174_s1 }
0x394d   :  { %v5371_v43 = vpop.xlane.xlu0 %5370 }
0x394e   :  { %7130 = vrcp.f32 %v5371_v43 }
0x3958   :  { %v7131_v62 = vpop.eup %7130 }
0x3959   :  { %v5373_v25 = vmul.f32 %v7131_v62, %v7127_v27  ;;  %v6874_v27 = vadd.f32 %v8427_v1, %v8524_v47 }
0x395b   :  { %v5374_v2 = vpack.c.bf16 %v5373_v25, %v5373_v25 }
0x395d   :  { %5376 = vrot.lane.b32.xlu1 %v5374_v2, %s7188_s25 }
0x3971   :  { %v5690_v38 = vpop.permute.xlu1 %5689 }
0x3972   :  { %v5692_v52 = vsel %vm8339_vm5, -1e+09, %v5690_v38 }
0x3973   :  { %v5693_v45 = vsel %vm5192_vm6, %v5692_v52, -inf }
0x3975   :  { %v5379_v46 = vpop.permute.xlu1 %5378 }
0x3976   :  { %v5384_v37 = vsel %vm456_vm8, %v5379_v46, 0 }
0x3981   :  { %5694 = vmax.xlane.f32.xlu1 %v5693_v45 }
0x3992   :  { %5712 = vrot.lane.b32.xlu1 %v8243_v55, %s7176_s15  ;;  %v5259_v55 = vpack.c.bf16 %v8466_v59, %v8466_v59 }
0x39b2   :  { %v5076_v18 = vpop.f32.mrb[92].mxu0 }
0x39b3   :  { %v5082_v23 = vpack.c.bf16 %v5076_v18, %v5076_v18  ;;  %v6775_v51 = vpop.f32.mrb[93].mxu0 }
0x39b4   :  { %v5079_v33 = vpop.f32.mrb[94].mxu0 }
0x39b5   :  { %v6776_v58 = vpop.f32.mrb[95].mxu0  ;;  %6782 = vmatmul.mubr.msk.bf16.vlgmr.msra.gmra.mrb[84].mxu0 %vm99_vm0, %v5082_v23 }
0x39b6   :  { %6798 = vmatpush3.bf16.msra.mxu0 %v8384_v29  ;;  %6801 = vmatprep.mubr.msk.bf16.mxu0 %vm7172_vm1, %v7171_v28 }
0x39b7   :  { %6799 = vmatprep.subr.bf16.mxu0 %v7171_v28 }
0x39ba   :  { %6800 = vmatpush3.bf16.msra.mxu0 %v8395_v34 }
0x39bb   :  { %6811 = vmatprep.subr.bf16.mxu0 %v7171_v28 }
0x39bd   :  { %6802 = vmatmul.mubr.msk.bf16.vlgmr.msra.gmra.mrb[96].mxu0 %vm99_vm0, %v5259_v55 }
0x39be   :  { %6812 = vmatpush3.bf16.msra.mxu0 %v5384_v37  ;;  %6813 = vmatprep.mubr.msk.bf16.mxu0 %vm7172_vm1, %v7171_v28 }
0x39bf   :  { %6817 = vmatprep.subr.bf16.mxu0 %v7171_v28 }
0x39cf   :  { %v5377_v29 = vpop.permute.xlu1 %5376 }
0x39d0   :  { %6814 = vmatmul.mubr.msk.bf16.vlgmr.msra.gmra.mrb[100].mxu0 %vm440_vm7, %v5377_v29 }
0x39d1   :  { %6818 = vmatpush3.bf16.msra.mxu0 %v8291_v30  ;;  %6821 = vmatprep.mubr.msk.bf16.mxu0 %vm7172_vm1, %v7171_v28 }
0x39d2   :  { %6819 = vmatprep.subr.bf16.mxu0 %v7171_v28 }
0x39d5   :  { %6820 = vmatpush3.bf16.msra.mxu0 %v8302_v3 }
0x39d6   :  { %6837 = vmatprep.subr.bf16.mxu0 %v7171_v28 }
0x3a0e   :  { %v5695_v34 = vpop.xlane.xlu1 %5694 }
0x3a0f   :  { %v5696_v59 = vsub.f32 %v5692_v52, %v5695_v34 }
0x3a11   :  { %v5697_v60 = vmul.f32 1.442695, %v5696_v59 }
0x3a12   :  { %v5713_v53 = vpop.permute.xlu1 %5712 }
0x3a13   :  { %7132 = vpow2.f32 %v5697_v60  ;;  %v5718_v48 = vsel %vm456_vm8, %v5713_v53, 0  ;;  %vm2421_vm8 = vcmask 785920  }
0x3a1d   :  { %v7133_v12 = vpop.eup %7132 }
0x3a1e   :  { %5700 = vrot.lane.b32.xlu0 %v7133_v12, %s7188_s25 }
0x3a88   :  { %v5120_v35 = vpop.f32.mrb[84].mxu0 }
0x3a89   :  { %v6783_v50 = vpop.f32.mrb[85].mxu0  ;;  %v6875_v14 = vadd.f32 %v8427_v1, %v5120_v35 }
0x3a8a   :  { %v5123_v16 = vpop.f32.mrb[86].mxu0 }
0x3a8b   :  { %v6784_v30 = vpop.f32.mrb[87].mxu0 }
0x3a90   :  { %v5701_v21 = vpop.permute.xlu0 %5700 }
0x3a91   :  { %v5703_v63 = vsel %vm440_vm7, %v5701_v21, 0.0 }
0x3a92   :  { %5704 = vadd.xlane.f32.xlu0 %v5703_v63 }
0x3aa3   :  { %v5420_v9 = vpop.f32.mrb[100].mxu0 }
0x3aa4   :  { %v5426_v22 = vpack.c.bf16 %v5420_v9, %v5420_v9  ;;  %v6815_v3 = vpop.f32.mrb[101].mxu0 }
0x3aa5   :  { %v5423_v41 = vpop.f32.mrb[102].mxu0 }
0x3aa6   :  { %v6816_v8 = vpop.f32.mrb[103].mxu0  ;;  %6822 = vmatmul.mubr.msk.bf16.vlgmr.msra.gmra.mrb[96].mxu0 %vm99_vm0, %v5426_v22 }
0x3aa7   :  { %6838 = vmatpush3.bf16.msra.mxu0 %v8315_v13  ;;  %6841 = vmatprep.mubr.msk.bf16.mxu0 %vm7172_vm1, %v7171_v28 }
0x3aa8   :  { %3097 = vrot.lane.b32.xlu0 %v6872_v57, %s7174_s1  ;;  %6839 = vmatprep.subr.bf16.mxu0 %v7171_v28 }
0x3aab   :  { %6840 = vmatpush3.bf16.msra.mxu0 %v8324_v6 }
0x3aac   :  { %6851 = vmatprep.subr.bf16.mxu0 %v7171_v28 }
0x3ab2   :  { %6842 = vmatmul.mubr.msk.bf16.vlgmr.msra.gmra.mrb[96].mxu0 %vm99_vm0, %v5593_v10 }
0x3ab3   :  { %6852 = vmatpush3.bf16.msra.mxu0 %v5718_v48  ;;  %6853 = vmatprep.mubr.msk.bf16.mxu0 %vm7172_vm1, %v7171_v28 }
0x3ab4   :  { %6857 = vmatprep.subr.bf16.mxu0 %v7171_v28 }
0x3b1f   :  { %v5705_v13 = vpop.xlane.xlu0 %5704 }
0x3b20   :  { %7134 = vrcp.f32 %v5705_v13 }
0x3b23   :  { %v3098_v47 = vpop.permute.xlu0 %3097 }
0x3b2a   :  { %v7135_v32 = vpop.eup %7134 }
0x3b2b   :  { %v5707_v6 = vmul.f32 %v7135_v32, %v7133_v12 }
0x3b2d   :  { %v5708_v4 = vpack.c.bf16 %v5707_v6, %v5707_v6 }
0x3b2f   :  { %5710 = vrot.lane.b32.xlu1 %v5708_v4, %s7188_s25 }
0x3b33   :  { %1739 = vrot.lane.b32.xlu1 %v6870_v39, %s7176_s15 }
0x3b37   :  { %2418 = vrot.lane.b32.xlu1 %v6871_v54, %s7175_s3 }
0x3b3b   :  { %4450 = vrot.lane.b32.xlu1 %v6874_v27, %s7176_s15 }
0x3b3f   :  { %5128 = vrot.lane.b32.xlu1 %v6875_v14, %s7175_s3  ;;  %s5816_s3 = sshll.u32 %s7189_s8, 4  ;;  %s5817_s3 = int_to_ptr.vmem [resolvable:$true] %s5816_s3 }
0x3b40   :  { %s7147_s15 = scalar_lea.vmem %s5817_s3, 256  ;;  %p7152_p1 = scmp.lt.s32.totalorder %s5817_s3, %s5817_s3 }
0x3b41   :  { %p7148_p0 = scmp.ne.s32.totalorder %s5817_s3, %s7147_s15  ;;  %p7153_p2 = scmp.lt.s32.totalorder %s7147_s15, %s7147_s15 }
0x3b43   :  { %p7154_p3 = por %p7153_p2, %p7152_p1 }
0x3b45   :  { %p7155_p4 = pnand %p7154_p3, %p7148_p0 }
0x3ba1   :  { %v5711_v42 = vpop.permute.xlu1 %5710 }
0x3ba2   :  { %6854 = vmatmul.mubr.msk.bf16.vlgmr.msra.gmra.mrb[104].mxu0 %vm440_vm7, %v5711_v42 }
0x3ba3   :  { %6858 = vmatpush3.bf16.msra.mxu0 %v8355_v26  ;;  %6861 = vmatprep.mubr.msk.bf16.mxu0 %vm7172_vm1, %v7171_v28 }
0x3ba4   :  { %6859 = vmatprep.subr.bf16.mxu0 %v7171_v28 }
0x3ba5   :  { %v1740_v44 = vpop.permute.xlu1 %1739 }
0x3ba6   :  { %1743 = vst.msk [vmem:[#allocation2] sm:$0xff] %vm1742_vm4, %v1740_v44 }
0x3ba7   :  { %6860 = vmatpush3.bf16.msra.mxu0 %v8364_v61 }
0x3ba9   :  { %v2419_v24 = vpop.permute.xlu1 %2418 }
0x3baa   :  { %2422 = vst.msk [vmem:[#allocation2] sm:$0xff] %vm2421_vm8, %v2419_v24 }
0x3bab   :  { %3101 = vst.msk [vmem:[#allocation2] sm:$0xff] %vm3100_vm3, %v3098_v47 }
0x3bad   :  { %v4451_v15 = vpop.permute.xlu1 %4450 }
0x3bae   :  { %4453 = vst.msk [vmem:[#allocation2 + $0x8] sm:$0xff] %vm1742_vm4, %v4451_v15 }
0x3bb1   :  { %v5129_v40 = vpop.permute.xlu1 %5128 }
0x3bb2   :  { %5131 = vst.msk [vmem:[#allocation2 + $0x8] sm:$0xff] %vm2421_vm8, %v5129_v40 }
0x3c75   :  { %v5754_v26 = vpop.f32.mrb[104].mxu0 }
0x3c76   :  { %v5760_v49 = vpack.c.bf16 %v5754_v26, %v5754_v26  ;;  %v6855_v17 = vpop.f32.mrb[105].mxu0 }
0x3c77   :  { %v5757_v20 = vpop.f32.mrb[106].mxu0 }
0x3c78   :  { %v6856_v28 = vpop.f32.mrb[107].mxu0  ;;  %6862 = vmatmul.mubr.msk.bf16.vlgmr.msra.gmra.mrb[96].mxu0 %vm99_vm0, %v5760_v49 }
0x3d4b   :  { %v5798_v11 = vpop.f32.mrb[96].mxu0 }
0x3d4c   :  { %v6876_v61 = vadd.f32 %v8427_v1, %v5798_v11  ;;  %v6863_v56 = vpop.f32.mrb[97].mxu0 }
0x3d4d   :  { %v5801_v31 = vpop.f32.mrb[98].mxu0 }
0x3d4e   :  { %5806 = vrot.lane.b32.xlu1 %v6876_v61, %s7174_s1  ;;  %v6864_v36 = vpop.f32.mrb[99].mxu0 }
0x3dc0   :  { %v5807_v19 = vpop.permute.xlu1 %5806 }
0x3dc1   :  { %5809 = vst.msk [vmem:[#allocation2 + $0x8] sm:$0xff] %vm3100_vm3, %v5807_v19 }
0x3dc2   :  { %7158 = shalt.err (!%p7155_p4)
}
0x3dc3   :  { %s7159_s17 = scalar_lea.hbm %s8657_s9, 256 }
0x3dc4   :  { %p7160_p5 = scmp.ne.s32.totalorder %s8657_s9, %s7159_s17  ;;  %p7163_p6 = scmp.lt.u32.totalorder %s7159_s17, %s8657_s9 }
0x3dc6   :  { %p7165_p7 = pnand %p7163_p6, %p7160_p5 }
0x3dc8   :  { %7168 = shalt.err (!%p7165_p7)
}
0x3dc9   :  { %5819 = dma.vmem_to_hbm [thread:$0]  %s5817_s3, 256, %s8657_s9, [#allocation3]  }
0x3dca   :  { %7169 = dma.done.wait [#allocation3], 256  }
0x3dcb   :  { %7170 = vsyncadd [#allocation3], 4294967040 }
0x3dcc   :  { %5823 = vsyncpa [#allocation3], 1 }

</bundles_post_ra>
